<compile_context>
chip_gen: v7x
topology: tpu7x:2x2x1
jax: 0.10.0
libtpu: 0.0.40
codegen_flags: <defaults>
</compile_context>

<pallas_src>
import functools

import jax
import jax.numpy as jnp
from jax.experimental import pallas as pl
from jax.experimental.pallas import tpu as pltpu


def duration_predictor_kernel(
    lens_ref, bp_ref,                          # scalar-prefetch args (SMEM)
    x_ref, gb_ref, w1_ref, w2_ref, vecs_ref,   # blocked / full-extent operands
    out_ref,
    *, kernel_size, eps, compute_dtype, conv1_im2col):
    K = kernel_size
    halo = K // 2
    B, T, Cin = x_ref.shape
    F = w2_ref.shape[-1]
    BT = B * T
    f32 = jnp.float32

    b0 = pl.program_id(0) * B

    # ---- masks built in-kernel from prefetched lengths (no mask DMA) -------
    tcol = jax.lax.broadcasted_iota(jnp.int32, (T, 1), 0)     # (T,1) sublane iota
    trow = jax.lax.broadcasted_iota(jnp.int32, (1, T), 1)     # (1,T) lane iota
    # channel-broadcast form (time on sublanes) for masking (BT, C) activations
    mask_sub = jnp.concatenate(
        [(tcol < lens_ref[b0 + bi]).astype(f32) for bi in range(B)], axis=0)
    # lane-major form (time on lanes) for the final (B, T) store
    mask_lane = jnp.concatenate(
        [(trow < lens_ref[b0 + bi]).astype(f32) for bi in range(B)], axis=0)

    # Edge masks: zero the rows a roll wraps across a sequence / batch-slab
    # edge, reproducing the conv's zero padding.  Depend only on time index.
    tflat = jnp.concatenate([tcol] * B, axis=0)               # (BT, 1)
    edge = {}
    for dk in range(K):
        s = halo - dk
        if s > 0:
            edge[s] = (tflat >= s).astype(f32)
        elif s < 0:
            edge[s] = (tflat < T + s).astype(f32)

    def taps(h):
        # h: (BT, c) f32 -> list of K shifted taps (roll on the XLU; wrapped
        # rows zeroed by the edge mask so they contribute exactly zero).
        out = []
        for dk in range(K):
            s = halo - dk
            if s == 0:
                out.append(h)
            else:
                out.append(pltpu.roll(h, shift=s % BT, axis=0) * edge[s])
        return out

    def conv1(h):                 # (BT, Cin) -> (BT, F)
        tp = taps(h)
        if conv1_im2col:          # small Cin: one matmul, deeper contraction
            cols = jnp.concatenate(tp, axis=-1).astype(compute_dtype)
            return jnp.dot(cols, w1_ref[...], preferred_element_type=f32)
        acc = None
        for dk in range(K):
            c = jnp.dot(tp[dk].astype(compute_dtype), w1_ref[dk],
                        preferred_element_type=f32)
            acc = c if acc is None else acc + c
        return acc

    def conv2(h):                 # (BT, F) -> (BT, F): K accumulated dots
        tp = taps(h)
        acc = None
        for dk in range(K):
            c = jnp.dot(tp[dk].astype(compute_dtype), w2_ref[dk],
                        preferred_element_type=f32)
            acc = c if acc is None else acc + c
        return acc

    def layer_norm(h, gamma, beta):   # normalize over channels (lane axis)
        m = jnp.mean(h, axis=-1, keepdims=True)
        v = jnp.mean((h - m) ** 2, axis=-1, keepdims=True)
        return (h - m) * jax.lax.rsqrt(v + eps) * gamma + beta

    vecs = vecs_ref[...]                                      # (5, F) f32
    g1, be1, g2, be2, wp = vecs[0], vecs[1], vecs[2], vecs[3], vecs[4]
    gb = gb_ref[...]                                          # (B, 2, F) f32

    h = x_ref[...].astype(f32).reshape(BT, Cin) * mask_sub
    h = conv1(h).reshape(B, T, F) + gb[:, 0:1, :]   # conv bias + global bias (hoisted)
    h = layer_norm(jnp.maximum(h, 0.0), g1, be1)
    # dropout: identity at inference
    h = h.reshape(BT, F) * mask_sub
    h = conv2(h).reshape(B, T, F) + gb[:, 1:2, :]
    h = layer_norm(jnp.maximum(h, 0.0), g2, be2)
    hm = h * mask_sub.reshape(B, T, 1)
    # 1x1 projection on the VPU (lane reduce) -> lane-dense (B, T) store.
    # hm is already length-masked, so (sum + bp) * mask == sum + bp * mask.
    y = (jnp.sum(hm * wp, axis=-1) + bp_ref[0]) * mask_lane
    out_ref[...] = y.astype(out_ref.dtype)


def _vmem_budget_bytes():
    """7/8 of reported VMEM capacity; conservative fallback fits v7x (64 MiB)."""
    try:
        info = pltpu.get_tpu_info()
        cap = getattr(info, "vmem_capacity_bytes", None)
        if cap:
            return (int(cap) * 7) // 8
    except Exception:
        pass
    return 48 * 1024 * 1024


def _pick_b_tile(n, per_b, fixed, budget, t_pad, m_target=256, want_steps=4):
    """Largest divisor of n that fits the VMEM budget while leaving a few grid
    steps for pipelining (>=2 keeps both v7x TensorCores busy), but never below
    the MXU M-dim fill target b_tile * T_pad >= m_target when a bigger fitting
    tile exists."""
    divs = [d for d in range(1, n + 1) if n % d == 0]
    fits = [d for d in divs if fixed + d * per_b <= budget]
    if not fits:
        return 1
    cand = [d for d in fits if n // d >= want_steps] or fits[:1]
    b = cand[-1]
    if b * t_pad < m_target:
        bigger = [d for d in fits if d * t_pad >= m_target]
        if bigger:
            b = bigger[0]
    return b


def duration_predictor(x, lengths, spkr_vec, speed, params, *, kernel_size,
                       eps=1e-4, b_tile=None, compute_dtype=None,
                       conv1_im2col=None, lane_pad=128, vmem_limit_bytes=None):
    """x: (N, T, Cin) any float dtype (streamed as-is), lengths: (N,) int,
    spkr_vec: (N, E), speed: (N,).  Returns (N, T) f32 == torch's
    `(proj(..) * x_mask).squeeze(1)` with x_mask the binary prefix mask from
    `lengths`.  compute_dtype controls the conv matmul operands only
    (default bf16 -> MXU-native on v5e/v6e/v7x); accumulation, LayerNorm and
    all elementwise math stay f32."""
    assert kernel_size % 2 == 1, "module assumes odd kernel_size ('same' conv)"
    N, T, Cin = x.shape
    K = kernel_size
    F = params["w1"].shape[-1]
    if compute_dtype is None:
        compute_dtype = jnp.bfloat16
    f32 = jnp.float32

    # Lane-dense output: pad T to a multiple of 128 (tail masked via lengths).
    T_pad = ((T + lane_pad - 1) // lane_pad) * lane_pad
    if T_pad != T:
        x = jnp.pad(x, ((0, 0), (0, T_pad - T), (0, 0)))

    # Hoisted global biases: speaker_proj + speed_proj (tiny matvecs kept in
    # XLA), conv biases folded in, packed as one (N, 2, F) input.
    gb = (spkr_vec.astype(f32) @ params["wsp"].astype(f32) + params["bsp"]
          + speed.astype(f32)[:, None] @ params["wsd"].astype(f32) + params["bsd"])
    gb1 = gb[:, :F] + params["b1"].reshape(1, F)
    gb2 = gb[:, F:] + params["b2"].reshape(1, F)
    gbs = jnp.stack([gb1, gb2], axis=1).astype(f32)           # (N, 2, F)

    if conv1_im2col is None:
        conv1_im2col = Cin < 128
    if conv1_im2col:
        w1p = params["w1"].reshape(K * Cin, F).astype(compute_dtype)
    else:
        w1p = params["w1"].astype(compute_dtype)              # (K, Cin, F)
    w2p = params["w2"].astype(compute_dtype)                  # (K, F, F)

    # Small per-layer vectors packed into one array (one DMA / one VMEM tile).
    vecs = jnp.concatenate([
        params["g1"].reshape(1, F), params["be1"].reshape(1, F),
        params["g2"].reshape(1, F), params["be2"].reshape(1, F),
        params["wp"].reshape(1, F)], axis=0).astype(f32)      # (5, F)

    lens_i32 = lengths.astype(jnp.int32).reshape(N)           # scalar prefetch
    bp = params["bp"].reshape(1).astype(f32)                  # scalar prefetch

    budget = int(vmem_limit_bytes or _vmem_budget_bytes())
    x_bytes = jnp.dtype(x.dtype).itemsize
    w_bytes = jnp.dtype(compute_dtype).itemsize
    fixed = 2 * (K * Cin * F + K * F * F) * w_bytes + 2 * 5 * F * 4
    per_b = (2 * T_pad * Cin * x_bytes + 2 * 2 * F * 4 + 2 * T_pad * 4
             + T_pad * 4 * (4 * F + (K * Cin if conv1_im2col else 0) + 2 * Cin + 16))
    if b_tile is None:
        b_tile = _pick_b_tile(N, per_b, fixed, budget, T_pad)
    assert N % b_tile == 0, (N, b_tile)
    G = N // b_tile

    kernel = functools.partial(duration_predictor_kernel,
                               kernel_size=K, eps=eps,
                               compute_dtype=compute_dtype,
                               conv1_im2col=conv1_im2col)

    grid_spec = pltpu.PrefetchScalarGridSpec(
        num_scalar_prefetch=2,
        grid=(G,),
        in_specs=[
            pl.BlockSpec((b_tile, T_pad, Cin), lambda g, lens, bpv: (g, 0, 0)),
            pl.BlockSpec((b_tile, 2, F), lambda g, lens, bpv: (g, 0, 0)),
            pl.BlockSpec(w1p.shape, lambda g, lens, bpv: (0,) * w1p.ndim),
            pl.BlockSpec((K, F, F), lambda g, lens, bpv: (0, 0, 0)),
            pl.BlockSpec((5, F), lambda g, lens, bpv: (0, 0)),
        ],
        out_specs=pl.BlockSpec((None, b_tile, T_pad),
                               lambda g, lens, bpv: (g, 0, 0)),
    )

    out = pl.pallas_call(
        kernel,
        out_shape=jax.ShapeDtypeStruct((G, b_tile, T_pad), jnp.float32),
        grid_spec=grid_spec,
        compiler_params=pltpu.CompilerParams(
            dimension_semantics=("parallel",),
            vmem_limit_bytes=budget),
    )(lens_i32, bp, x, gbs, w1p, w2p, vecs)
    return out.reshape(N, T_pad)[:, :T]


def _reference(x, x_mask, spkr_vec, speed, params, *, kernel_size, eps=1e-4):
    """Pure-JAX reference (same layout) for correctness checking."""
    pad = kernel_size // 2
    F = params["w1"].shape[-1]

    def conv(h, w, b):  # h: (N, T, Cin), w: (K, Cin, Cout)
        hp = jnp.pad(h, ((0, 0), (pad, pad), (0, 0)))
        T = h.shape[1]
        acc = sum(jnp.einsum("ntc,cf->ntf", hp[:, dk:dk + T, :], w[dk])
                  for dk in range(kernel_size))
        return acc + b

    def ln(h, g, be):
        m = jnp.mean(h, -1, keepdims=True)
        v = jnp.mean((h - m) ** 2, -1, keepdims=True)
        return (h - m) * jax.lax.rsqrt(v + eps) * g + be

    gb = (spkr_vec @ params["wsp"] + params["bsp"]
          + speed[:, None] @ params["wsd"] + params["bsd"])   # (N, 2F)
    gb1, gb2 = gb[:, None, :F], gb[:, None, F:]

    h = x * x_mask
    h = jnp.maximum(conv(h, params["w1"], params["b1"]) + gb1, 0.0)
    h = ln(h, params["g1"], params["be1"])
    h = h * x_mask
    h = jnp.maximum(conv(h, params["w2"], params["b2"]) + gb2, 0.0)
    h = ln(h, params["g2"], params["be2"])
    h = h * x_mask
    y = h @ params["wp"] + params["bp"]
    return (y * x_mask)[..., 0]


if __name__ == "__main__":
    N, Cin, T, F, K, E = 4, 8, 16, 32, 3, 16

    key = jax.random.PRNGKey(0)
    ks = jax.random.split(key, 16)

    # Deterministic synthetic parameters (shapes from the module __init__,
    # pre-arranged to the layouts documented above).
    params = {
        "w1": 0.1 * jax.random.normal(ks[0], (K, Cin, F), jnp.float32),
        "b1": 0.1 * jax.random.normal(ks[1], (1, F), jnp.float32),
        "g1": jnp.ones((1, F), jnp.float32),
        "be1": jnp.zeros((1, F), jnp.float32),
        "w2": 0.1 * jax.random.normal(ks[2], (K, F, F), jnp.float32),
        "b2": 0.1 * jax.random.normal(ks[3], (1, F), jnp.float32),
        "g2": jnp.ones((1, F), jnp.float32),
        "be2": jnp.zeros((1, F), jnp.float32),
        "wp": 0.1 * jax.random.normal(ks[4], (F, 1), jnp.float32),
        "bp": 0.1 * jax.random.normal(ks[5], (1, 1), jnp.float32),
        "wsp": 0.1 * jax.random.normal(ks[6], (E, 2 * F), jnp.float32),
        "bsp": 0.1 * jax.random.normal(ks[7], (1, 2 * F), jnp.float32),
        "wsd": 0.1 * jax.random.normal(ks[8], (1, 2 * F), jnp.float32),
        "bsd": 0.1 * jax.random.normal(ks[9], (1, 2 * F), jnp.float32),
    }

    # Example inputs (time-major layout; see layout comment above).
    x = jax.random.normal(ks[10], (N, T, Cin), jnp.float32)
    lengths = jnp.array([T, T - 4, T - 7, 5], jnp.int32)
    x_mask = (jnp.arange(T)[None, :] < lengths[:, None]).astype(
        jnp.float32)[:, :, None]                       # (N, T, 1) for the reference
    spkr_vec = jax.random.normal(ks[11], (N, E), jnp.float32)
    speed = jnp.array([1.0, 1.25, 0.8, 1.1], jnp.float32)

    ref = _reference(x, x_mask, spkr_vec, speed, params, kernel_size=K, eps=1e-4)

    # f32 operand path, auto b_tile (here 2 -> grid of 2), im2col conv1.
    out = duration_predictor(x, lengths, spkr_vec, speed, params,
                             kernel_size=K, eps=1e-4,
                             compute_dtype=jnp.float32)
    jax.block_until_ready(out)
    assert out.shape == (N, T)
    assert jnp.allclose(out, ref, atol=1e-4, rtol=1e-4), (
        float(jnp.max(jnp.abs(out - ref))))

    # Whole batch in one block + per-tap conv1 path (covers the Cin>=128 code
    # path and the grid-of-1 case).
    out_b = duration_predictor(x, lengths, spkr_vec, speed, params,
                               kernel_size=K, eps=1e-4,
                               compute_dtype=jnp.float32,
                               b_tile=N, conv1_im2col=False)
    jax.block_until_ready(out_b)
    assert jnp.allclose(out_b, ref, atol=1e-4, rtol=1e-4), (
        float(jnp.max(jnp.abs(out_b - ref))))

    # Default path: bf16 MXU operands (recommended on v5e/v6e/v7x), f32
    # accumulation and f32 LayerNorm; loose tolerance vs the f32 reference.
    # TODO(synk): confirm bf16-operand tolerance is acceptable for downstream
    # duration rounding; pass compute_dtype=jnp.float32 otherwise.
    out_bf16 = duration_predictor(x, lengths, spkr_vec, speed, params,
                                  kernel_size=K, eps=1e-4)
    jax.block_until_ready(out_bf16)
    assert jnp.allclose(out_bf16, ref, atol=1e-1, rtol=1e-1), (
        float(jnp.max(jnp.abs(out_bf16 - ref))))

    print("KERNEL_OK")
</pallas_src>

<mosaic_0001>
module attributes {stable_mosaic.version = 11 : i64} {
  func.func @duration_predictor_kernel(%arg0: i32, %arg1: memref<4xi32, #tpu.memory_space<smem>>, %arg2: memref<1xf32, #tpu.memory_space<smem>>, %arg3: memref<2x128x8xf32, #tpu.memory_space<vmem>>, %arg4: memref<2x2x32xf32, #tpu.memory_space<vmem>>, %arg5: memref<24x32xf32, #tpu.memory_space<vmem>>, %arg6: memref<3x32x32xf32, #tpu.memory_space<vmem>>, %arg7: memref<5x32xf32, #tpu.memory_space<vmem>>, %arg8: memref<1x2x128xf32, #tpu.memory_space<vmem>>) attributes {dimension_semantics = [#tpu.dimension_semantics<parallel>], iteration_bounds = array<i64: 2>, scalar_prefetch = 2 : i64, scratch_operands = 0 : i64, tpu.core_type = #tpu.core_type<tc>, window_params = [{transform_indices = @transform_0, window_bounds = array<i64: 2, 128, 8>}, {transform_indices = @transform_1, window_bounds = array<i64: 2, 2, 32>}, {pipeline_mode = #tpu.pipeline_mode<synchronous>, transform_indices = @transform_2, window_bounds = array<i64: 24, 32>}, {pipeline_mode = #tpu.pipeline_mode<synchronous>, transform_indices = @transform_3, window_bounds = array<i64: 3, 32, 32>}, {pipeline_mode = #tpu.pipeline_mode<synchronous>, transform_indices = @transform_4, window_bounds = array<i64: 5, 32>}, {transform_indices = @transform_5, window_bounds = array<i64: 1, 2, 128>}]} {
    %c2_i32 = arith.constant 2 : i32
    %0 = arith.muli %arg0, %c2_i32 : i32
    %1 = tpu.iota {dimensions = array<i32: 0>} : vector<128x1xi32>
    %2 = tpu.iota {dimensions = array<i32: 1>} : vector<1x128xi32>
    %c0_i32 = arith.constant 0 : i32
    %3 = arith.addi %0, %c0_i32 : i32
    %4 = arith.index_cast %3 : i32 to index
    %5 = memref.load %arg1[%4] : memref<4xi32, #tpu.memory_space<smem>>
    %6 = vector.broadcast %5 : i32 to vector<128x1xi32>
    %7 = arith.cmpi slt, %1, %6 : vector<128x1xi32>
    %8 = arith.extui %7 : vector<128x1xi1> to vector<128x1xi32>
    %9 = arith.sitofp %8 : vector<128x1xi32> to vector<128x1xf32>
    %c1_i32 = arith.constant 1 : i32
    %10 = arith.addi %0, %c1_i32 : i32
    %11 = arith.index_cast %10 : i32 to index
    %12 = memref.load %arg1[%11] : memref<4xi32, #tpu.memory_space<smem>>
    %13 = vector.broadcast %12 : i32 to vector<128x1xi32>
    %14 = arith.cmpi slt, %1, %13 : vector<128x1xi32>
    %15 = arith.extui %14 : vector<128x1xi1> to vector<128x1xi32>
    %16 = arith.sitofp %15 : vector<128x1xi32> to vector<128x1xf32>
    %17 = tpu.concatenate %9, %16 in 0 : vector<128x1xf32>, vector<128x1xf32> -> vector<256x1xf32>
    %c0_i32_0 = arith.constant 0 : i32
    %18 = arith.addi %0, %c0_i32_0 : i32
    %19 = arith.index_cast %18 : i32 to index
    %20 = memref.load %arg1[%19] : memref<4xi32, #tpu.memory_space<smem>>
    %21 = vector.broadcast %20 : i32 to vector<1x128xi32>
    %22 = arith.cmpi slt, %2, %21 : vector<1x128xi32>
    %23 = arith.extui %22 : vector<1x128xi1> to vector<1x128xi32>
    %24 = arith.sitofp %23 : vector<1x128xi32> to vector<1x128xf32>
    %c1_i32_1 = arith.constant 1 : i32
    %25 = arith.addi %0, %c1_i32_1 : i32
    %26 = arith.index_cast %25 : i32 to index
    %27 = memref.load %arg1[%26] : memref<4xi32, #tpu.memory_space<smem>>
    %28 = vector.broadcast %27 : i32 to vector<1x128xi32>
    %29 = arith.cmpi slt, %2, %28 : vector<1x128xi32>
    %30 = arith.extui %29 : vector<1x128xi1> to vector<1x128xi32>
    %31 = arith.sitofp %30 : vector<1x128xi32> to vector<1x128xf32>
    %32 = tpu.concatenate %24, %31 in 0 : vector<1x128xf32>, vector<1x128xf32> -> vector<2x128xf32>
    %33 = tpu.concatenate %1, %1 in 0 : vector<128x1xi32>, vector<128x1xi32> -> vector<256x1xi32>
    %c1_i32_2 = arith.constant 1 : i32
    %34 = vector.broadcast %c1_i32_2 : i32 to vector<256x1xi32>
    %35 = arith.cmpi sge, %33, %34 : vector<256x1xi32>
    %36 = arith.extui %35 : vector<256x1xi1> to vector<256x1xi32>
    %37 = arith.sitofp %36 : vector<256x1xi32> to vector<256x1xf32>
    %c127_i32 = arith.constant 127 : i32
    %38 = vector.broadcast %c127_i32 : i32 to vector<256x1xi32>
    %39 = arith.cmpi slt, %33, %38 : vector<256x1xi32>
    %40 = arith.extui %39 : vector<256x1xi1> to vector<256x1xi32>
    %41 = arith.sitofp %40 : vector<256x1xi32> to vector<256x1xf32>
    %c0 = arith.constant 0 : index
    %c0_3 = arith.constant 0 : index
    %42 = vector.load %arg7[%c0, %c0_3] : memref<5x32xf32, #tpu.memory_space<vmem>>, vector<5x32xf32>
    %43 = vector.extract_strided_slice %42 {offsets = [0, 0], sizes = [1, 32], strides = [1, 1]} : vector<5x32xf32> to vector<1x32xf32>
    %44 = vector.shape_cast %43 : vector<1x32xf32> to vector<32xf32>
    %45 = vector.extract_strided_slice %42 {offsets = [1, 0], sizes = [1, 32], strides = [1, 1]} : vector<5x32xf32> to vector<1x32xf32>
    %46 = vector.shape_cast %45 : vector<1x32xf32> to vector<32xf32>
    %47 = vector.extract_strided_slice %42 {offsets = [2, 0], sizes = [1, 32], strides = [1, 1]} : vector<5x32xf32> to vector<1x32xf32>
    %48 = vector.shape_cast %47 : vector<1x32xf32> to vector<32xf32>
    %49 = vector.extract_strided_slice %42 {offsets = [3, 0], sizes = [1, 32], strides = [1, 1]} : vector<5x32xf32> to vector<1x32xf32>
    %50 = vector.shape_cast %49 : vector<1x32xf32> to vector<32xf32>
    %51 = vector.extract_strided_slice %42 {offsets = [4, 0], sizes = [1, 32], strides = [1, 1]} : vector<5x32xf32> to vector<1x32xf32>
    %52 = vector.shape_cast %51 : vector<1x32xf32> to vector<32xf32>
    %c0_4 = arith.constant 0 : index
    %c0_5 = arith.constant 0 : index
    %c0_6 = arith.constant 0 : index
    %53 = vector.load %arg4[%c0_4, %c0_5, %c0_6] : memref<2x2x32xf32, #tpu.memory_space<vmem>>, vector<2x2x32xf32>
    %c0_7 = arith.constant 0 : index
    %c0_8 = arith.constant 0 : index
    %c0_9 = arith.constant 0 : index
    %54 = vector.load %arg3[%c0_7, %c0_8, %c0_9] : memref<2x128x8xf32, #tpu.memory_space<vmem>>, vector<2x128x8xf32>
    %55 = vector.shape_cast %54 : vector<2x128x8xf32> to vector<256x8xf32>
    %56 = vector.broadcast %17 : vector<256x1xf32> to vector<256x8xf32>
    %57 = arith.mulf %55, %56 : vector<256x8xf32>
    %c1_i32_10 = arith.constant 1 : i32
    %58 = tpu.dynamic_rotate %57 by %c1_i32_10 dim 0 : vector<256x8xf32>, i32 -> vector<256x8xf32>
    %59 = vector.broadcast %37 : vector<256x1xf32> to vector<256x8xf32>
    %60 = arith.mulf %58, %59 : vector<256x8xf32>
    %c255_i32 = arith.constant 255 : i32
    %61 = tpu.dynamic_rotate %57 by %c255_i32 dim 0 : vector<256x8xf32>, i32 -> vector<256x8xf32>
    %62 = vector.broadcast %41 : vector<256x1xf32> to vector<256x8xf32>
    %63 = arith.mulf %61, %62 : vector<256x8xf32>
    %64 = tpu.concatenate %60, %57, %63 in 1 : vector<256x8xf32>, vector<256x8xf32>, vector<256x8xf32> -> vector<256x24xf32>
    %c0_11 = arith.constant 0 : index
    %c0_12 = arith.constant 0 : index
    %65 = vector.load %arg5[%c0_11, %c0_12] : memref<24x32xf32, #tpu.memory_space<vmem>>, vector<24x32xf32>
    %cst = arith.constant dense<0.000000e+00> : vector<256x32xf32>
    %66 = tpu.matmul %64, %65, %cst {dimension_numbers = #tpu.dot_dimension_numbers<[1], [0], [0], [1], [0, 0, 1, 1], [], []>} : vector<256x24xf32>, vector<24x32xf32>, vector<256x32xf32> -> vector<256x32xf32>
    %67 = vector.shape_cast %66 : vector<256x32xf32> to vector<2x128x32xf32>
    %68 = vector.extract_strided_slice %53 {offsets = [0, 0, 0], sizes = [2, 1, 32], strides = [1, 1, 1]} : vector<2x2x32xf32> to vector<2x1x32xf32>
    %69 = vector.broadcast %68 : vector<2x1x32xf32> to vector<2x128x32xf32>
    %70 = arith.addf %67, %69 : vector<2x128x32xf32>
    %cst_13 = arith.constant 0.000000e+00 : f32
    %71 = vector.broadcast %cst_13 : f32 to vector<2x128x32xf32>
    %72 = arith.maximumf %70, %71 : vector<2x128x32xf32>
    %cst_14 = arith.constant dense<0.000000e+00> : vector<2x128xf32>
    %73 = vector.multi_reduction <add>, %72, %cst_14 [2] : vector<2x128x32xf32> to vector<2x128xf32>
    %74 = vector.shape_cast %73 : vector<2x128xf32> to vector<2x128x1xf32>
    %cst_15 = arith.constant 3.200000e+01 : f32
    %75 = vector.broadcast %cst_15 : f32 to vector<2x128x1xf32>
    %76 = arith.divf %74, %75 : vector<2x128x1xf32>
    %77 = vector.broadcast %76 : vector<2x128x1xf32> to vector<2x128x32xf32>
    %78 = arith.subf %72, %77 : vector<2x128x32xf32>
    %79 = arith.mulf %78, %78 : vector<2x128x32xf32>
    %cst_16 = arith.constant dense<0.000000e+00> : vector<2x128xf32>
    %80 = vector.multi_reduction <add>, %79, %cst_16 [2] : vector<2x128x32xf32> to vector<2x128xf32>
    %81 = vector.shape_cast %80 : vector<2x128xf32> to vector<2x128x1xf32>
    %cst_17 = arith.constant 3.200000e+01 : f32
    %82 = vector.broadcast %cst_17 : f32 to vector<2x128x1xf32>
    %83 = arith.divf %81, %82 : vector<2x128x1xf32>
    %84 = vector.broadcast %76 : vector<2x128x1xf32> to vector<2x128x32xf32>
    %85 = arith.subf %72, %84 : vector<2x128x32xf32>
    %cst_18 = arith.constant 9.99999974E-5 : f32
    %86 = vector.broadcast %cst_18 : f32 to vector<2x128x1xf32>
    %87 = arith.addf %83, %86 : vector<2x128x1xf32>
    %88 = math.rsqrt %87 : vector<2x128x1xf32>
    %89 = vector.broadcast %88 : vector<2x128x1xf32> to vector<2x128x32xf32>
    %90 = arith.mulf %85, %89 : vector<2x128x32xf32>
    %91 = vector.shape_cast %44 : vector<32xf32> to vector<1x1x32xf32>
    %92 = vector.broadcast %91 : vector<1x1x32xf32> to vector<2x128x32xf32>
    %93 = arith.mulf %90, %92 : vector<2x128x32xf32>
    %94 = vector.shape_cast %46 : vector<32xf32> to vector<1x1x32xf32>
    %95 = vector.broadcast %94 : vector<1x1x32xf32> to vector<2x128x32xf32>
    %96 = arith.addf %93, %95 : vector<2x128x32xf32>
    %97 = vector.shape_cast %96 : vector<2x128x32xf32> to vector<256x32xf32>
    %98 = vector.broadcast %17 : vector<256x1xf32> to vector<256x32xf32>
    %99 = arith.mulf %97, %98 : vector<256x32xf32>
    %c1_i32_19 = arith.constant 1 : i32
    %100 = tpu.dynamic_rotate %99 by %c1_i32_19 dim 0 : vector<256x32xf32>, i32 -> vector<256x32xf32>
    %101 = vector.broadcast %37 : vector<256x1xf32> to vector<256x32xf32>
    %102 = arith.mulf %100, %101 : vector<256x32xf32>
    %c255_i32_20 = arith.constant 255 : i32
    %103 = tpu.dynamic_rotate %99 by %c255_i32_20 dim 0 : vector<256x32xf32>, i32 -> vector<256x32xf32>
    %104 = vector.broadcast %41 : vector<256x1xf32> to vector<256x32xf32>
    %105 = arith.mulf %103, %104 : vector<256x32xf32>
    %c0_21 = arith.constant 0 : index
    %c0_22 = arith.constant 0 : index
    %c0_23 = arith.constant 0 : index
    %106 = vector.load %arg6[%c0_21, %c0_22, %c0_23] : memref<3x32x32xf32, #tpu.memory_space<vmem>>, vector<1x32x32xf32>
    %107 = vector.shape_cast %106 : vector<1x32x32xf32> to vector<32x32xf32>
    %cst_24 = arith.constant dense<0.000000e+00> : vector<256x32xf32>
    %108 = tpu.matmul %102, %107, %cst_24 {dimension_numbers = #tpu.dot_dimension_numbers<[1], [0], [0], [1], [0, 0, 1, 1], [], []>} : vector<256x32xf32>, vector<32x32xf32>, vector<256x32xf32> -> vector<256x32xf32>
    %c1 = arith.constant 1 : index
    %c0_25 = arith.constant 0 : index
    %c0_26 = arith.constant 0 : index
    %109 = vector.load %arg6[%c1, %c0_25, %c0_26] : memref<3x32x32xf32, #tpu.memory_space<vmem>>, vector<1x32x32xf32>
    %110 = vector.shape_cast %109 : vector<1x32x32xf32> to vector<32x32xf32>
    %cst_27 = arith.constant dense<0.000000e+00> : vector<256x32xf32>
    %111 = tpu.matmul %99, %110, %cst_27 {dimension_numbers = #tpu.dot_dimension_numbers<[1], [0], [0], [1], [0, 0, 1, 1], [], []>} : vector<256x32xf32>, vector<32x32xf32>, vector<256x32xf32> -> vector<256x32xf32>
    %112 = arith.addf %108, %111 : vector<256x32xf32>
    %c2 = arith.constant 2 : index
    %c0_28 = arith.constant 0 : index
    %c0_29 = arith.constant 0 : index
    %113 = vector.load %arg6[%c2, %c0_28, %c0_29] : memref<3x32x32xf32, #tpu.memory_space<vmem>>, vector<1x32x32xf32>
    %114 = vector.shape_cast %113 : vector<1x32x32xf32> to vector<32x32xf32>
    %cst_30 = arith.constant dense<0.000000e+00> : vector<256x32xf32>
    %115 = tpu.matmul %105, %114, %cst_30 {dimension_numbers = #tpu.dot_dimension_numbers<[1], [0], [0], [1], [0, 0, 1, 1], [], []>} : vector<256x32xf32>, vector<32x32xf32>, vector<256x32xf32> -> vector<256x32xf32>
    %116 = arith.addf %112, %115 : vector<256x32xf32>
    %117 = vector.shape_cast %116 : vector<256x32xf32> to vector<2x128x32xf32>
    %118 = vector.extract_strided_slice %53 {offsets = [0, 1, 0], sizes = [2, 1, 32], strides = [1, 1, 1]} : vector<2x2x32xf32> to vector<2x1x32xf32>
    %119 = vector.broadcast %118 : vector<2x1x32xf32> to vector<2x128x32xf32>
    %120 = arith.addf %117, %119 : vector<2x128x32xf32>
    %cst_31 = arith.constant 0.000000e+00 : f32
    %121 = vector.broadcast %cst_31 : f32 to vector<2x128x32xf32>
    %122 = arith.maximumf %120, %121 : vector<2x128x32xf32>
    %cst_32 = arith.constant dense<0.000000e+00> : vector<2x128xf32>
    %123 = vector.multi_reduction <add>, %122, %cst_32 [2] : vector<2x128x32xf32> to vector<2x128xf32>
    %124 = vector.shape_cast %123 : vector<2x128xf32> to vector<2x128x1xf32>
    %cst_33 = arith.constant 3.200000e+01 : f32
    %125 = vector.broadcast %cst_33 : f32 to vector<2x128x1xf32>
    %126 = arith.divf %124, %125 : vector<2x128x1xf32>
    %127 = vector.broadcast %126 : vector<2x128x1xf32> to vector<2x128x32xf32>
    %128 = arith.subf %122, %127 : vector<2x128x32xf32>
    %129 = arith.mulf %128, %128 : vector<2x128x32xf32>
    %cst_34 = arith.constant dense<0.000000e+00> : vector<2x128xf32>
    %130 = vector.multi_reduction <add>, %129, %cst_34 [2] : vector<2x128x32xf32> to vector<2x128xf32>
    %131 = vector.shape_cast %130 : vector<2x128xf32> to vector<2x128x1xf32>
    %cst_35 = arith.constant 3.200000e+01 : f32
    %132 = vector.broadcast %cst_35 : f32 to vector<2x128x1xf32>
    %133 = arith.divf %131, %132 : vector<2x128x1xf32>
    %134 = vector.broadcast %126 : vector<2x128x1xf32> to vector<2x128x32xf32>
    %135 = arith.subf %122, %134 : vector<2x128x32xf32>
    %cst_36 = arith.constant 9.99999974E-5 : f32
    %136 = vector.broadcast %cst_36 : f32 to vector<2x128x1xf32>
    %137 = arith.addf %133, %136 : vector<2x128x1xf32>
    %138 = math.rsqrt %137 : vector<2x128x1xf32>
    %139 = vector.broadcast %138 : vector<2x128x1xf32> to vector<2x128x32xf32>
    %140 = arith.mulf %135, %139 : vector<2x128x32xf32>
    %141 = vector.shape_cast %48 : vector<32xf32> to vector<1x1x32xf32>
    %142 = vector.broadcast %141 : vector<1x1x32xf32> to vector<2x128x32xf32>
    %143 = arith.mulf %140, %142 : vector<2x128x32xf32>
    %144 = vector.shape_cast %50 : vector<32xf32> to vector<1x1x32xf32>
    %145 = vector.broadcast %144 : vector<1x1x32xf32> to vector<2x128x32xf32>
    %146 = arith.addf %143, %145 : vector<2x128x32xf32>
    %147 = vector.shape_cast %17 : vector<256x1xf32> to vector<2x128x1xf32>
    %148 = vector.broadcast %147 : vector<2x128x1xf32> to vector<2x128x32xf32>
    %149 = arith.mulf %146, %148 : vector<2x128x32xf32>
    %150 = vector.shape_cast %52 : vector<32xf32> to vector<1x1x32xf32>
    %151 = vector.broadcast %150 : vector<1x1x32xf32> to vector<2x128x32xf32>
    %152 = arith.mulf %149, %151 : vector<2x128x32xf32>
    %cst_37 = arith.constant dense<0.000000e+00> : vector<2x128xf32>
    %153 = vector.multi_reduction <add>, %152, %cst_37 [2] : vector<2x128x32xf32> to vector<2x128xf32>
    %c0_38 = arith.constant 0 : index
    %154 = memref.load %arg2[%c0_38] : memref<1xf32, #tpu.memory_space<smem>>
    %155 = vector.broadcast %154 : f32 to vector<2x128xf32>
    %156 = arith.addf %153, %155 : vector<2x128xf32>
    %157 = arith.mulf %156, %32 : vector<2x128xf32>
    %c0_39 = arith.constant 0 : index
    %c0_40 = arith.constant 0 : index
    %c0_41 = arith.constant 0 : index
    %158 = vector.load %arg8[%c0_39, %c0_40, %c0_41] : memref<1x2x128xf32, #tpu.memory_space<vmem>>, vector<1x2x128xf32>
    %159 = vector.shape_cast %158 : vector<1x2x128xf32> to vector<2x128xf32>
    %160 = vector.shape_cast %157 : vector<2x128xf32> to vector<1x2x128xf32>
    tpu.vector_store %arg8[%c0_39, %c0_40, %c0_41], %160 {strides = array<i32>} : memref<1x2x128xf32, #tpu.memory_space<vmem>>, vector<1x2x128xf32>,
    return
  }
  func.func @transform_0(%arg0: i32, %arg1: memref<4xi32, #tpu.memory_space<smem>>, %arg2: memref<1xf32, #tpu.memory_space<smem>>) -> (i32, i32, i32) {
    %c0_i32 = arith.constant 0 : i32
    %c0_i32_0 = arith.constant 0 : i32
    %c0_i32_1 = arith.constant 0 : i32
    return %arg0, %c0_i32, %c0_i32_0 : i32, i32, i32
  }
  func.func @transform_1(%arg0: i32, %arg1: memref<4xi32, #tpu.memory_space<smem>>, %arg2: memref<1xf32, #tpu.memory_space<smem>>) -> (i32, i32, i32) {
    %c0_i32 = arith.constant 0 : i32
    %c0_i32_0 = arith.constant 0 : i32
    %c0_i32_1 = arith.constant 0 : i32
    return %arg0, %c0_i32, %c0_i32_0 : i32, i32, i32
  }
  func.func @transform_2(%arg0: i32, %arg1: memref<4xi32, #tpu.memory_space<smem>>, %arg2: memref<1xf32, #tpu.memory_space<smem>>) -> (i32, i32) {
    %c0_i32 = arith.constant 0 : i32
    %c0_i32_0 = arith.constant 0 : i32
    %c0_i32_1 = arith.constant 0 : i32
    return %c0_i32, %c0_i32_0 : i32, i32
  }
  func.func @transform_3(%arg0: i32, %arg1: memref<4xi32, #tpu.memory_space<smem>>, %arg2: memref<1xf32, #tpu.memory_space<smem>>) -> (i32, i32, i32) {
    %c0_i32 = arith.constant 0 : i32
    %c0_i32_0 = arith.constant 0 : i32
    %c0_i32_1 = arith.constant 0 : i32
    %c0_i32_2 = arith.constant 0 : i32
    return %c0_i32, %c0_i32_0, %c0_i32_1 : i32, i32, i32
  }
  func.func @transform_4(%arg0: i32, %arg1: memref<4xi32, #tpu.memory_space<smem>>, %arg2: memref<1xf32, #tpu.memory_space<smem>>) -> (i32, i32) {
    %c0_i32 = arith.constant 0 : i32
    %c0_i32_0 = arith.constant 0 : i32
    %c0_i32_1 = arith.constant 0 : i32
    return %c0_i32, %c0_i32_0 : i32, i32
  }
  func.func @transform_5(%arg0: i32, %arg1: memref<4xi32, #tpu.memory_space<smem>>, %arg2: memref<1xf32, #tpu.memory_space<smem>>) -> (i32, i32, i32) {
    %c0_i32 = arith.constant 0 : i32
    %c0_i32_0 = arith.constant 0 : i32
    %c0_i32_1 = arith.constant 0 : i32
    return %arg0, %c0_i32, %c0_i32_0 : i32, i32, i32
  }
}

</mosaic_0001>

<bundles_post_ra>
// kernel: tpu_custom_call.1
= control target key start
LH: loop header
LB: loop body
LE: loop exit
PB: predicated region body
PF: predicated region fallthrough
CT: control target
= control target key end

     0   :  { %s9384_s0 = inlined_call_operand.vmem [shape: s32[4], index: 0, kind: input, shape index: {}]   ;;  %s9385_s1 = inlined_call_operand.<no memory space> [shape: f32[1], index: 1, kind: input, shape index: {}]   ;;  %s9386_s2 = inlined_call_operand.vmem [shape: f32[4,128,8], index: 2, kind: input, shape index: {}]   ;;  %s9387_s3 = inlined_call_operand.vmem [shape: f32[4,2,32], index: 3, kind: input, shape index: {}]   ;;  %s9388_s4 = inlined_call_operand.vmem [shape: f32[24,32], index: 4, kind: input, shape index: {}]   ;;  %s9389_s5 = inlined_call_operand.vmem [shape: f32[3,32,32], index: 5, kind: input, shape index: {}]   ;;  %s9390_s6 = inlined_call_operand.vmem [shape: f32[5,32], index: 6, kind: input, shape index: {}]   ;;  %s9391_s7 = inlined_call_operand.hbm [shape: f32[2,2,128], index: 7, kind: output, shape index: {}]  }
   0x1   :  { %s12_s26 = sshll.u32 %s9384_s0, 4  ;;  %16 = sst [smem:[#allocation4]] %s9385_s1  ;;  %s13_s26 = int_to_ptr.vmem [resolvable:$true] %s12_s26 }
   0x2   :  { %s5852_s29 = scalar_lea.vmem %s13_s26, 16  ;;  %p5857_p1 = scmp.lt.s32.totalorder %s13_s26, %s13_s26 }
   0x3   :  { %p5853_p0 = scmp.ne.s32.totalorder %s13_s26, %s5852_s29  ;;  %p5858_p2 = scmp.lt.s32.totalorder %s5852_s29, %s5852_s29 }
   0x5   :  { %p5859_p3 = por %p5858_p2, %p5857_p1 }
   0x7   :  { %p5860_p4 = pnand %p5859_p3, %p5853_p0 }
   0x9   :  { %5863 = shalt.err (!%p5860_p4)  }
   0xa   :  { %s5930_s30 = smov [#allocation3]  }
   0xb   :  { %15 = dma.vmem_to_smem %s13_s26, 16, %s5930_s30, [#allocation2] }
   0xc   :  { %5908 = dma.done.wait [#allocation2], 16 }
   0xd   :  { %5909 = vsyncadd [#allocation2], 4294967280 }
   0xe   :  { %18 = sfence }
   0xf   :  { %19 = vsyncpa [#allocation6], 0 }
  0x10   :  { %21 = vsyncpa [#allocation6 + $0x1], 0  ;;  %s5984_s0 = smov 0   ;;  %s5986_s8 = smov 0  }
  0x11   :  { %s5988_s1 = smov 0   ;;  %s5990_s9 = smov 0  }
  0x12 LB: > { %s6005_s10 = sadd.s32 4294967295, %s5928_s9   ;;  %s4869_s11 = sadd.s32 4294967294, %s5928_s9   ;;  %s5928_s9 = sphi %s5990_s9, %s9944_s9   ;;  %s5924_s1 = sphi %s5988_s1, %s9943_s1   ;;  %s5920_s8 = sphi %s5986_s8, %s9942_s8   ;;  %s5916_s0 = sphi %s5984_s0, %s9941_s0  }
  0x13   : > { %s6009_s12 = sadd.s32 1, %s5928_s9   ;;  %s149_s13 = sadd.s32 1, %s5924_s1 }
  0x14   : > { %s146_s14 = ssub.s32 %s5928_s9, %s6009_s12  ;;  %p159_p5 = scmp.ne.s32.totalorder %s5924_s1, %s5920_s8 }
  0x15   : > { %p147_p6 = scmp.eq.s32.totalorder %s146_s14, 0  ;;  %p160_p7 = scmp.eq.s32.totalorder %s6005_s10, 1 }
  0x16   : > { %p165_p8 = scmp.ne.s32.totalorder %s5920_s8, %s5916_s0  ;;  %p166_p9 = scmp.eq.s32.totalorder %s4869_s11, 1 }
  0x17   : > { %s6020_s15 = scalar_select %p147_p6, %s5924_s1, %s149_s13  }
  0x18   : > { %p6022_p10 = por %p160_p7, %p159_p5  ;;  %p6026_p11 = por %p166_p9, %p165_p8 }
  0x19   : > { %p4872_p12 = scmp.ge.s32.totalorder %s5928_s9, 1  ;;  %p212_p13 = scmp.lt.s32.totalorder %s5928_s9, 3 }
  0x1b   : > { %p213_p0 = pnand %p4872_p12, %p212_p13 }
  0x1d   : > { %216 = sbr.rel (%p213_p0) target bundleno = 1945 (0x799), region = 40 }
  0x24   : > { %s6033_s18 = sshll.u32 %s6005_s10, 1  ;;  %v9394_v0 = vlaneseq  ;;  %v5931_v1 = vmov 0   ;;  %v9392_v12 = vmov 0.0   ;;  %v5933_v15 = vmov 1.0   ;;  %s5935_s26 = smov 8  }
  0x25   : > { %5570 = vset.pattern.permute.xlu1 %v5931_v1  ;;  %5559 = vset.pattern.permute.xlu0 %v5931_v1  ;;  %s279_s19 = sld [smem:[#allocation3 + %s6033_s18]]  ;;  %s329_s20 = sadd.s32 1, %s6033_s18 }
  0x26   : > { %v6037_v2 = vshrl.u32 %v9394_v0, 7  ;;  %s330_s21 = sld [smem:[#allocation3 + %s329_s20]]  ;;  %p247_p1 = scmp.lt.s32.totalorder %s6033_s18, 3 }
  0x27   : > { %s5936_s27 = smov 16   ;;  %s243_s20 = sand.u32 1, %s5920_s8  }
  0x28   : > { %9599 = vst [vmem:[#allocation9_spill] sm:$0xff] %v6037_v2  ;;  %v6040_v3 = vadd.s32 32, %v6037_v2  ;;  %v6043_v4 = vadd.s32 8, %v6037_v2  ;;  %v6046_v5 = vadd.s32 40, %v6037_v2  ;;  %v6051_v7 = vadd.s32 16, %v6037_v2  ;;  %s9946_s18 = smov (!%p247_p1, %s6033_s18), 3 }
  0x29   : > { %v6054_v8 = vadd.s32 24, %v6037_v2  ;;  %v6059_v9 = vadd.s32 56, %v6037_v2  ;;  %v6062_v10 = vadd.s32 48, %v6037_v2  ;;  %v6065_v11 = vadd.s32 72, %v6037_v2  ;;  %s5056_s22 = sshll.u32 %s9946_s18, 7  ;;  %s5937_s29 = smov [#allocation5]  }
  0x2a   : > { %v6073_v14 = vadd.s32 64, %v6037_v2  ;;  %v6097_v27 = vadd.s32 88, %v6037_v2  ;;  %v6102_v28 = vadd.s32 80, %v6037_v2  ;;  %v6112_v33 = vadd.s32 104, %v6037_v2  ;;  %s6213_s25 = scalar_lea.vmem %s9386_s2, %s5056_s22  ;;  %s5868_s30 = sshll.u32 %s5937_s29, 4  ;;  %s5869_s30 = int_to_ptr.vmem [resolvable:$false] %s5868_s30 }
  0x2b   : > { %v6048_v6 = vstv %s279_s19  ;;  %v6117_v34 = vadd.s32 96, %v6037_v2  ;;  %v6126_v39 = vadd.s32 120, %v6037_v2  ;;  %v6131_v40 = vadd.s32 112, %v6037_v2  ;;  %s4878_s19 = sshll.u32 %s9946_s18, 1  ;;  %s5053_s18 = sshll.u32 %s6005_s10, 5 }
  0x2c   : > { %9600 = vst [vmem:[#allocation10_spill] sm:$0xff] %v6048_v6  ;;  %vm285_vm0 = vcmp.lt.s32.totalorder %v6040_v3, %v6048_v6  ;;  %vm281_vm1 = vcmp.lt.s32.totalorder %v6037_v2, %v6048_v6  ;;  %vm282_vm2 = vcmp.lt.s32.totalorder %v6043_v4, %v6048_v6  ;;  %vm286_vm3 = vcmp.lt.s32.totalorder %v6046_v5, %v6048_v6  ;;  %s7222_s22 = scalar_lea.vmem %s9387_s3, %s4878_s19  ;;  %s4231_s19 = sld [smem:[#allocation4]] }
  0x2d   : > { %v4884_v13 = vsel %vm285_vm0, 1.0, %v9392_v12  ;;  %v4880_v17 = vsel %vm281_vm1, 1.0, %v9392_v12  ;;  %v4881_v18 = vsel %vm282_vm2, 1.0, %v9392_v12  ;;  %v4885_v20 = vsel %vm286_vm3, 1.0, %v9392_v12  ;;  %s4785_s10 = scalar_lea.sflag [#allocation6], %s243_s20  ;;  %s5870_s11 = scalar_lea.vmem %s5869_s30, 64 }
  0x2e   : > { %v5571_v16 = vpack.i.bf16 %v5933_v15, %v4884_v13  ;;  %v5560_v19 = vpack.i.bf16 %v4881_v18, %v4880_v17  ;;  %vm283_vm4 = vcmp.lt.s32.totalorder %v6051_v7, %v6048_v6  ;;  %vm284_vm5 = vcmp.lt.s32.totalorder %v6054_v8, %v6048_v6 }
  0x2f   : > { %v5576_v21 = vpack.i.bf16 %v4885_v20, %v5933_v15  ;;  %v4882_v22 = vsel %vm283_vm4, 1.0, %v9392_v12  ;;  %v4883_v23 = vsel %vm284_vm5, 1.0, %v9392_v12  ;;  %vm288_vm6 = vcmp.lt.s32.totalorder %v6059_v9, %v6048_v6 }
  0x30   : > { %5572 = vperm.xlu1 %5570, %v5571_v16   ;;  %5561 = vperm.xlu0 %5559, %v5560_v19   ;;  %v5565_v24 = vpack.i.bf16 %v4883_v23, %v4882_v22  ;;  %v4887_v25 = vsel %vm288_vm6, 1.0, %v9392_v12  ;;  %vm287_vm7 = vcmp.lt.s32.totalorder %v6062_v10, %v6048_v6  ;;  %vm290_vm8 = vcmp.lt.s32.totalorder %v6065_v11, %v6048_v6 }
  0x31   : > { %v4886_v26 = vsel %vm287_vm7, 1.0, %v9392_v12  ;;  %vm289_vm9 = vcmp.lt.s32.totalorder %v6073_v14, %v6048_v6  ;;  %v5586_v29 = vpack.i.bf16 %v4887_v25, %v5933_v15  ;;  %v4889_v31 = vsel %vm290_vm8, 1.0, %v9392_v12  ;;  %v487_v25 = vld [vmem:[%s6213_s25] sm:$0xff] }
  0x32   : > { %v5581_v30 = vpack.i.bf16 %v5933_v15, %v4886_v26  ;;  %v4888_v32 = vsel %vm289_vm9, 1.0, %v9392_v12  ;;  %vm292_vm10 = vcmp.lt.s32.totalorder %v6097_v27, %v6048_v6  ;;  %vm291_vm11 = vcmp.lt.s32.totalorder %v6102_v28, %v6048_v6 }
  0x33   : > { %v5596_v35 = vpack.i.bf16 %v4889_v31, %v5933_v15  ;;  %v5591_v36 = vpack.i.bf16 %v5933_v15, %v4888_v32  ;;  %v4891_v37 = vsel %vm292_vm10, 1.0, %v9392_v12  ;;  %v4890_v38 = vsel %vm291_vm11, 1.0, %v9392_v12  ;;  %v489_v32 = vld [vmem:[%s6213_s25 + $0x10] sm:$0xff] }
  0x34   : > { %5577 = vperm.xlu1 %5570, %v5576_v21   ;;  %5566 = vperm.xlu0 %5559, %v5565_v24   ;;  %vm294_vm12 = vcmp.lt.s32.totalorder %v6112_v33, %v6048_v6  ;;  %vm293_vm13 = vcmp.lt.s32.totalorder %v6117_v34, %v6048_v6  ;;  %v5606_v41 = vpack.i.bf16 %v4891_v37, %v5933_v15  ;;  %v6141_v45 = vstv %s330_s21  ;;  %v488_v24 = vld [vmem:[%s6213_s25 + $0x8] sm:$0xff]  ;;  %s9325_s21 = sshll.u32 %s243_s20, 1 }
  0x35   : > { %v5601_v42 = vpack.i.bf16 %v5933_v15, %v4890_v38  ;;  %v4893_v43 = vsel %vm294_vm12, 1.0, %v9392_v12  ;;  %v4892_v44 = vsel %vm293_vm13, 1.0, %v9392_v12  ;;  %vm296_vm14 = vcmp.lt.s32.totalorder %v6126_v39, %v6048_v6  ;;  %9601 = vst [vmem:[#allocation11_spill] sm:$0xff] %v6141_v45  ;;  %s245_s23 = scalar_lea.vmem [#allocation5], %s9325_s21 }
  0x36   : > { %vm295_vm15 = vcmp.lt.s32.totalorder %v6131_v40, %v6048_v6  ;;  %v5616_v46 = vpack.i.bf16 %v4893_v43, %v5933_v15  ;;  %v5611_v47 = vpack.i.bf16 %v5933_v15, %v4892_v44  ;;  %v4895_v48 = vsel %vm296_vm14, 1.0, %v9392_v12  ;;  %v491_v43 = vld [vmem:[%s6213_s25 + $0x20] sm:$0xff]  ;;  %s4798_s24 = sshll.u32 %s245_s23, 4  ;;  %s9342_s24 = int_to_ptr.vmem [resolvable:$true] %s4798_s24 }
  0x37   : > { %v4894_v49 = vsel %vm295_vm15, 1.0, %v9392_v12  ;;  %vm333_vm0 = vcmp.lt.s32.totalorder %v6043_v4, %v6141_v45  ;;  %vm332_vm1 = vcmp.lt.s32.totalorder %v6037_v2, %v6141_v45  ;;  %v5626_v50 = vpack.i.bf16 %v4895_v48, %v5933_v15  ;;  %s5864_s28 = scalar_lea.vmem %s9342_s24, 32  ;;  %p5871_p5 = scmp.lt.s32.totalorder %s9342_s24, %s5869_s30 }
  0x38   : > { %5587 = vperm.xlu1 %5570, %v5586_v29   ;;  %5582 = vperm.xlu0 %5559, %v5581_v30   ;;  %v5621_v51 = vpack.i.bf16 %v5933_v15, %v4894_v49  ;;  %v4897_v52 = vsel %vm333_vm0, 1.0, %v9392_v12  ;;  %v4896_v53 = vsel %vm332_vm1, 1.0, %v9392_v12  ;;  %vm335_vm2 = vcmp.lt.s32.totalorder %v6054_v8, %v6141_v45  ;;  %p5865_p2 = scmp.ne.s32.totalorder %s9342_s24, %s5864_s28  ;;  %p5872_p6 = scmp.lt.s32.totalorder %s5870_s11, %s5864_s28 }
  0x39   : > { %vm451_vm3 = vcmp.lt.s32.totalorder %v6126_v39, 127  ;;  %vm334_vm4 = vcmp.lt.s32.totalorder %v6051_v7, %v6141_v45  ;;  %v5636_v54 = vpack.i.bf16 %v4897_v52, %v5933_v15  ;;  %v5631_v55 = vpack.i.bf16 %v5933_v15, %v4896_v53  ;;  %v494_v52 = vld [vmem:[%s6213_s25 + $0x38] sm:$0xff] }
  0x3a   : > { %v4899_v56 = vsel %vm335_vm2, 1.0, %v9392_v12  ;;  %v4915_v57 = vsel %vm451_vm3, 1.0, %v9392_v12  ;;  %v4898_v58 = vsel %vm334_vm4, 1.0, %v9392_v12  ;;  %vm338_vm5 = vcmp.lt.s32.totalorder %v6062_v10, %v6141_v45  ;;  %p5866_p3 = pnand %p5865_p2, %p6022_p10  ;;  %p5873_p7 = por %p5872_p6, %p5871_p5 }
  0x3b   : > { %vm339_vm6 = vcmp.lt.s32.totalorder %v6059_v9, %v6141_v45  ;;  %vm336_vm7 = vcmp.lt.s32.totalorder %v6040_v3, %v6141_v45  ;;  %vm337_vm8 = vcmp.lt.s32.totalorder %v6046_v5, %v6141_v45  ;;  %v5646_v59 = vpack.i.bf16 %v4899_v56, %v4915_v57 }
  0x3c   : > { %5597 = vperm.xlu1 %5570, %v5596_v35   ;;  %5592 = vperm.xlu0 %5559, %v5591_v36   ;;  %v5641_v60 = vpack.i.bf16 %v5933_v15, %v4898_v58  ;;  %v4902_v61 = vsel %vm338_vm5, 1.0, %v9392_v12  ;;  %v4903_v62 = vsel %vm339_vm6, 1.0, %v9392_v12  ;;  %v4900_v63 = vsel %vm336_vm7, 1.0, %v9392_v12  ;;  %p5867_p4 = pneg %p5866_p3 }
  0x3d   : > { %v4901_v1 = vsel %vm337_vm8, 1.0, %v9392_v12  ;;  %vm342_vm9 = vcmp.lt.s32.totalorder %v6102_v28, %v6141_v45  ;;  %vm343_vm10 = vcmp.lt.s32.totalorder %v6097_v27, %v6141_v45  ;;  %vm340_vm11 = vcmp.lt.s32.totalorder %v6073_v14, %v6141_v45 }
  0x3e   : > { %vm341_vm12 = vcmp.lt.s32.totalorder %v6065_v11, %v6141_v45  ;;  %v5656_v3 = vpack.i.bf16 %v4903_v62, %v4902_v61  ;;  %v5651_v4 = vpack.i.bf16 %v4901_v1, %v4900_v63  ;;  %v4906_v5 = vsel %vm342_vm9, 1.0, %v9392_v12  ;;  %p5874_p8 = pnand %p5873_p7, %p5867_p4 }
  0x3f   : > { %v4907_v7 = vsel %vm343_vm10, 1.0, %v9392_v12  ;;  %v4904_v8 = vsel %vm340_vm11, 1.0, %v9392_v12  ;;  %v4905_v9 = vsel %vm341_vm12, 1.0, %v9392_v12  ;;  %vm346_vm13 = vcmp.lt.s32.totalorder %v6131_v40, %v6141_v45 }
  0x40   : > { %5607 = vperm.xlu1 %5570, %v5606_v41   ;;  %5602 = vperm.xlu0 %5559, %v5601_v42   ;;  %vm347_vm14 = vcmp.lt.s32.totalorder %v6126_v39, %v6141_v45  ;;  %vm344_vm15 = vcmp.lt.s32.totalorder %v6117_v34, %v6141_v45  ;;  %vm345_vm0 = vcmp.lt.s32.totalorder %v6112_v33, %v6141_v45  ;;  %v4910_v13 = vsel %vm346_vm13, 1.0, %v9392_v12  ;;  %v490_v33 = vld [vmem:[%s6213_s25 + $0x18] sm:$0xff]  ;;  %v492_v42 = vld [vmem:[%s6213_s25 + $0x28] sm:$0xff] }
  0x41   : > { %v5666_v10 = vpack.i.bf16 %v4907_v7, %v4906_v5  ;;  %v5661_v11 = vpack.i.bf16 %v4905_v9, %v4904_v8  ;;  %v4911_v14 = vsel %vm347_vm14, 1.0, %v9392_v12  ;;  %v4908_v16 = vsel %vm344_vm15, 1.0, %v9392_v12  ;;  %v497_v9 = vld [vmem:[%s6213_s25 + $0x50] sm:$0xff] }
  0x42   : > { %v4909_v17 = vsel %vm345_vm0, 1.0, %v9392_v12  ;;  %vm388_vm1 = vcmp.ge.s32.totalorder %v6037_v2, 1  ;;  %v5676_v18 = vpack.i.bf16 %v4911_v14, %v4910_v13  ;;  %v5934_v22 = vmov 1.0|1.0  }
  0x43   : > { %v5671_v19 = vpack.i.bf16 %v4909_v17, %v4908_v16  ;;  %v4914_v20 = vsel %vm388_vm1, 1.0, %v9392_v12  ;;  %vm743_vm2 = vcmp.lt.s32.totalorder %v6037_v2, 1  ;;  %vm920_vm3 = vcmp.lt.s32.totalorder %v6037_v2, 7 }
  0x44   : > { %5617 = vperm.xlu1 %5570, %v5616_v46   ;;  %5612 = vperm.xlu0 %5559, %v5611_v47   ;;  %v5681_v21 = vpack.i.bf16 %v5933_v15, %v4914_v20  ;;  %vm1321_vm4 = vcmask 64512   ;;  %vm1354_vm5 = vcmask 130048   ;;  %vm1390_vm6 = vcmask 195584  }
  0x45   : > { %vm1784_vm7 = vcmask 261120   ;;  %vm386_vm9 = vcmask 1040384   ;;  %vm4601_vm11 = vcmask 130112   ;;  %vm4608_vm12 = vcmask 195712  }
  0x46   : > { %vm4615_vm13 = vcmask 261312   ;;  %vm4622_vm14 = vcmask 326912   ;;  %vm4629_vm15 = vcmask 392512   ;;  %vm4636_vm0 = vcmask 458112  }
  0x47   : > { %vm4643_vm1 = vcmask 523712  }
  0x48   : > { %5627 = vperm.xlu1 %5570, %v5626_v50   ;;  %5622 = vperm.xlu0 %5559, %v5621_v51   ;;  %v493_v51 = vld [vmem:[%s6213_s25 + $0x30] sm:$0xff] }
  0x4c   : > { %5637 = vperm.xlu1 %5570, %v5636_v54   ;;  %5632 = vperm.xlu0 %5559, %v5631_v55  }
  0x50   : > { %5647 = vperm.xlu1 %5570, %v5646_v59   ;;  %5642 = vperm.xlu0 %5559, %v5641_v60   ;;  %v496_v59 = vld [vmem:[%s6213_s25 + $0x48] sm:$0xff]  ;;  %v495_v60 = vld [vmem:[%s6213_s25 + $0x40] sm:$0xff] }
  0x54   : > { %5657 = vperm.xlu1 %5570, %v5656_v3   ;;  %5652 = vperm.xlu0 %5559, %v5651_v4  }
  0x58   : > { %5667 = vperm.xlu1 %5570, %v5666_v10   ;;  %5662 = vperm.xlu0 %5559, %v5661_v11   ;;  %v498_v10 = vld [vmem:[%s6213_s25 + $0x58] sm:$0xff] }
  0x5c   : > { %5677 = vperm.xlu1 %5570, %v5676_v18   ;;  %5672 = vperm.xlu0 %5559, %v5671_v19  }
  0x60   : > { %5687 = vperm.xlu1 %5570, %v5934_v22   ;;  %5682 = vperm.xlu0 %5559, %v5681_v21  }
  0x64   : > { %5697 = vperm.xlu1 %5570, %v5934_v22   ;;  %5692 = vperm.xlu0 %5559, %v5934_v22  }
  0x68   : > { %5707 = vperm.xlu1 %5570, %v5934_v22   ;;  %5702 = vperm.xlu0 %5559, %v5934_v22  }
  0x6c   : > { %5717 = vperm.xlu1 %5570, %v5934_v22   ;;  %5712 = vperm.xlu0 %5559, %v5934_v22  }
  0xaf   : > { %v6215_v15 = vpop.permute.xlu1 %5572  ;;  %v5562_v23 = vpop.permute.xlu0 %5561 }
  0xb0   : > { %v6219_v26 = vunpack.i.h.bf16 %v5562_v23  ;;  %v6221_v27 = vunpack.i.l.bf16 %v5562_v23  ;;  %v6242_v36 = vunpack.i.l.bf16 %v6215_v15 }
  0xb2   : > { %9602 = vst [vmem:[#allocation12_spill] sm:$0xff] %v6219_v26  ;;  %9603 = vst [vmem:[#allocation13_spill] sm:$0xff] %v6221_v27  ;;  %v6226_v29 = vmul.f32 %v6219_v26, %v488_v24  ;;  %v6229_v30 = vmul.f32 %v6221_v27, %v487_v25  ;;  %v6275_v49 = vmul.f32 %v6242_v36, %v491_v43  ;;  %v499_v24 = vld [vmem:[%s6213_s25 + $0x60] sm:$0xff]  ;;  %v500_v25 = vld [vmem:[%s6213_s25 + $0x68] sm:$0xff] }
  0xb3   : > { %v6223_v28 = vpop.permute.xlu1 %5577  ;;  %v5567_v31 = vpop.permute.xlu0 %5566  ;;  %9606 = vst [vmem:[#allocation16_spill] sm:$0xff] %v6242_v36 }
  0xb4   : > { %v6233_v34 = vunpack.i.h.bf16 %v5567_v31  ;;  %v6235_v35 = vunpack.i.l.bf16 %v5567_v31  ;;  %1099 = vrot.lane.b32.xlu0 %v6226_v29, %s5935_s26  ;;  %1097 = vrot.lane.b32.xlu1 %v6229_v30, %s5935_s26  ;;  %v6245_v37 = vunpack.i.h.bf16 %v6223_v28  ;;  %v712_v61 = vrot.slane %v6226_v29, 7 }
  0xb5   : > { %v9395_v62 = vrot.slane %v6229_v30, 7  ;;  %v715_v11 = vrot.slane %v6275_v49, 7 }
  0xb6   : > { %9604 = vst [vmem:[#allocation14_spill] sm:$0xff] %v6233_v34  ;;  %9605 = vst [vmem:[#allocation15_spill] sm:$0xff] %v6235_v35  ;;  %v6250_v39 = vmul.f32 %v6235_v35, %v489_v32  ;;  %v6253_v40 = vmul.f32 %v6233_v34, %v490_v33  ;;  %v6272_v48 = vmul.f32 %v6245_v37, %v492_v42 }
  0xb7   : > { %9607 = vst [vmem:[#allocation17_spill] sm:$0xff] %v6245_v37  ;;  %v6247_v38 = vpop.permute.xlu1 %5587  ;;  %v6255_v41 = vpop.permute.xlu0 %5582  ;;  %v6340_v16 = vsel %vm743_vm2, %v9395_v62, %v712_v61 }
  0xb8   : > { %1101 = vrot.lane.b32.xlu0 %v6250_v39, %s5935_s26  ;;  %1103 = vrot.lane.b32.xlu1 %v6253_v40, %s5935_s26  ;;  %v6264_v44 = vunpack.i.h.bf16 %v6247_v38  ;;  %v6267_v46 = vunpack.i.l.bf16 %v6255_v41  ;;  %v713_v63 = vrot.slane %v6250_v39, 7  ;;  %v714_v13 = vrot.slane %v6253_v40, 7  ;;  %9614 = vst [vmem:[#allocation24_spill] sm:$0xff] %v6340_v16  ;;  %v514_v16 = vld [vmem:[%s6213_s25 + $0xd8] sm:$0xff] }
  0xb9   : > { %v716_v14 = vrot.slane %v6272_v48, 7 }
  0xba   : > { %9608 = vst [vmem:[#allocation18_spill] sm:$0xff] %v6264_v44  ;;  %9609 = vst [vmem:[#allocation19_spill] sm:$0xff] %v6267_v46  ;;  %v6294_v56 = vmul.f32 %v6267_v46, %v493_v51  ;;  %v6297_v57 = vmul.f32 %v6264_v44, %v494_v52  ;;  %v6344_v17 = vsel %vm743_vm2, %v712_v61, %v713_v63  ;;  %v501_v61 = vld [vmem:[%s6213_s25 + $0x70] sm:$0xff] }
  0xbb   : > { %v6269_v47 = vpop.permute.xlu1 %5597  ;;  %v6277_v50 = vpop.permute.xlu0 %5592  ;;  %9615 = vst [vmem:[#allocation25_spill] sm:$0xff] %v6344_v17  ;;  %v6371_v32 = vsel %vm743_vm2, %v713_v63, %v714_v13  ;;  %v6375_v33 = vsel %vm743_vm2, %v715_v11, %v716_v14  ;;  %v502_v63 = vld [vmem:[%s6213_s25 + $0x78] sm:$0xff] }
  0xbc   : > { %1107 = vrot.lane.b32.xlu0 %v6272_v48, %s5935_s26  ;;  %1105 = vrot.lane.b32.xlu1 %v6275_v49, %s5935_s26  ;;  %v6286_v53 = vunpack.i.h.bf16 %v6269_v47  ;;  %v6289_v54 = vunpack.i.l.bf16 %v6277_v50  ;;  %v717_v31 = vrot.slane %v6294_v56, 7  ;;  %9618 = vst [vmem:[#allocation28_spill] sm:$0xff] %v6371_v32  ;;  %9619 = vst [vmem:[#allocation29_spill] sm:$0xff] %v6375_v33  ;;  %v9626_v45 = vrot.slane %v6297_v57, 7  ;;  %v512_v33 = vld [vmem:[%s6213_s25 + $0xc8] sm:$0xff] }
  0xbe   : > { %9610 = vst [vmem:[#allocation20_spill] sm:$0xff] %v6286_v53  ;;  %9611 = vst [vmem:[#allocation21_spill] sm:$0xff] %v6289_v54  ;;  %v6320_v5 = vmul.f32 %v6286_v53, %v496_v59  ;;  %v6323_v7 = vmul.f32 %v6289_v54, %v495_v60  ;;  %v6408_v12 = vsel %vm743_vm2, %v716_v14, %v717_v31  ;;  %v504_v14 = vld [vmem:[%s6213_s25 + $0x88] sm:$0xff]  ;;  %v506_v53 = vld [vmem:[%s6213_s25 + $0x98] sm:$0xff] }
  0xbf   : > { %v6291_v55 = vpop.permute.xlu1 %5607  ;;  %v6299_v58 = vpop.permute.xlu0 %5602  ;;  %9623 = vst [vmem:[#allocation33_spill] sm:$0xff] %v6408_v12  ;;  %v508_v54 = vld [vmem:[%s6213_s25 + $0xa8] sm:$0xff] }
  0xc0   : > { %1109 = vrot.lane.b32.xlu0 %v6294_v56, %s5935_s26  ;;  %1111 = vrot.lane.b32.xlu1 %v6297_v57, %s5935_s26  ;;  %v6312_v1 = vunpack.i.h.bf16 %v6291_v55  ;;  %v6315_v3 = vunpack.i.l.bf16 %v6299_v58  ;;  %v9629_v6 = vrot.slane %v6323_v7, 7 }
  0xc2   : > { %9612 = vst [vmem:[#allocation22_spill] sm:$0xff] %v6312_v1  ;;  %9613 = vst [vmem:[#allocation23_spill] sm:$0xff] %v6315_v3  ;;  %v6355_v21 = vmul.f32 %v6315_v3, %v497_v9  ;;  %v6358_v22 = vmul.f32 %v6312_v1, %v498_v10  ;;  %v509_v1 = vld [vmem:[%s6213_s25 + $0xb0] sm:$0xff] }
  0xc3   : > { %v6317_v4 = vpop.permute.xlu1 %5617  ;;  %v6325_v8 = vpop.permute.xlu0 %5612 }
  0xc4   : > { %1115 = vrot.lane.b32.xlu0 %v6320_v5, %s5935_s26  ;;  %1113 = vrot.lane.b32.xlu1 %v6323_v7, %s5935_s26  ;;  %v6347_v18 = vunpack.i.h.bf16 %v6317_v4  ;;  %v6350_v19 = vunpack.i.l.bf16 %v6325_v8 }
  0xc6   : > { %9616 = vst [vmem:[#allocation26_spill] sm:$0xff] %v6347_v18  ;;  %9617 = vst [vmem:[#allocation27_spill] sm:$0xff] %v6350_v19  ;;  %v6386_v52 = vmul.f32 %v6350_v19, %v499_v24  ;;  %v6389_v59 = vmul.f32 %v6347_v18, %v500_v25  ;;  %v6404_v25 = vsel %vm743_vm2, %v714_v13, %v715_v11  ;;  %v503_v13 = vld [vmem:[%s6213_s25 + $0x80] sm:$0xff] }
  0xc7   : > { %v6352_v20 = vpop.permute.xlu1 %5627  ;;  %v6360_v23 = vpop.permute.xlu0 %5622  ;;  %9622 = vst [vmem:[#allocation32_spill] sm:$0xff] %v6404_v25 }
  0xc8   : > { %1117 = vrot.lane.b32.xlu0 %v6355_v21, %s5935_s26  ;;  %1119 = vrot.lane.b32.xlu1 %v6358_v22, %s5935_s26  ;;  %v6378_v42 = vunpack.i.h.bf16 %v6352_v20  ;;  %v6381_v43 = vunpack.i.l.bf16 %v6360_v23 }
  0xca   : > { %9620 = vst [vmem:[#allocation30_spill] sm:$0xff] %v6378_v42  ;;  %9621 = vst [vmem:[#allocation31_spill] sm:$0xff] %v6381_v43  ;;  %v6419_v10 = vmul.f32 %v6381_v43, %v501_v61  ;;  %v6422_v24 = vmul.f32 %v6378_v42, %v502_v63  ;;  %v6436_v61 = vsel %vm743_vm2, %v717_v31, %v9626_v45  ;;  %v9628_v63 = vrot.slane %v6320_v5, 7 }
  0xcb   : > { %v6383_v51 = vpop.permute.xlu1 %5637  ;;  %v6391_v60 = vpop.permute.xlu0 %5632  ;;  %9627 = vst [vmem:[#allocation36_spill] sm:$0xff] %v6436_v61  ;;  %v722_v61 = vrot.slane %v6358_v22, 7 }
  0xcc   : > { %1121 = vrot.lane.b32.xlu0 %v6386_v52, %s5935_s26  ;;  %1123 = vrot.lane.b32.xlu1 %v6389_v59, %s5935_s26  ;;  %v6411_v0 = vunpack.i.h.bf16 %v6383_v51  ;;  %v6414_v62 = vunpack.i.l.bf16 %v6391_v60  ;;  %v6444_v42 = vsel %vm743_vm2, %v9629_v6, %v9628_v63  ;;  %v505_v63 = vld [vmem:[%s6213_s25 + $0x90] sm:$0xff] }
  0xcd   : > { %9630 = vst [vmem:[#allocation37_spill] sm:$0xff] %v6444_v42 }
  0xce   : > { %9624 = vst [vmem:[#allocation34_spill] sm:$0xff] %v6411_v0  ;;  %9625 = vst [vmem:[#allocation35_spill] sm:$0xff] %v6414_v62  ;;  %v6456_v45 = vmul.f32 %v6414_v62, %v503_v13  ;;  %v6459_v31 = vmul.f32 %v6411_v0, %v504_v14  ;;  %v889_v13 = vrot.slane %v6226_v29, 1  ;;  %v890_v29 = vrot.slane %v6250_v39, 1  ;;  %v507_v14 = vld [vmem:[%s6213_s25 + $0xa0] sm:$0xff] }
  0xcf   : > { %v6416_v9 = vpop.permute.xlu1 %5647  ;;  %v6424_v11 = vpop.permute.xlu0 %5642 }
  0xd0   : > { %1125 = vrot.lane.b32.xlu0 %v6419_v10, %s5935_s26  ;;  %1127 = vrot.lane.b32.xlu1 %v6422_v24, %s5935_s26  ;;  %v6447_v43 = vunpack.i.h.bf16 %v6416_v9  ;;  %v6450_v18 = vunpack.i.l.bf16 %v6424_v11  ;;  %v727_v12 = vrot.slane %v6456_v45, 7 }
  0xd2   : > { %9631 = vst [vmem:[#allocation38_spill] sm:$0xff] %v6447_v43  ;;  %9632 = vst [vmem:[#allocation39_spill] sm:$0xff] %v6450_v18  ;;  %v6483_v37 = vmul.f32 %v6450_v18, %v505_v63  ;;  %v6486_v36 = vmul.f32 %v6447_v43, %v506_v53  ;;  %v892_v43 = vrot.slane %v6275_v49, 1  ;;  %v6522_v18 = vunpack.i.l.bf16 %v6223_v28 }
  0xd3   : > { %v6452_v19 = vpop.permute.xlu1 %5657  ;;  %v5653_v6 = vpop.permute.xlu0 %5652  ;;  %v6541_v28 = vunpack.i.h.bf16 %v6255_v41 }
  0xd4   : > { %v6462_v3 = vunpack.i.l.bf16 %v6452_v19  ;;  %v6467_v44 = vunpack.i.h.bf16 %v5653_v6  ;;  %1129 = vrot.lane.b32.xlu0 %v6456_v45, %s5935_s26  ;;  %1131 = vrot.lane.b32.xlu1 %v6459_v31, %s5935_s26  ;;  %v6478_v62 = vunpack.i.l.bf16 %v5653_v6  ;;  %v891_v6 = vrot.slane %v6253_v40, 1  ;;  %9639 = vst [vmem:[#allocation45_spill] sm:$0xff] %v6522_v18 }
  0xd5   : > { %v950_v40 = vsel %vm920_vm3, %v889_v13, %v890_v29  ;;  %9643 = vst [vmem:[#allocation47_spill] sm:$0xff] %v6541_v28  ;;  %v729_v17 = vrot.slane %v6483_v37, 7 }
  0xd6   : > { %9633 = vst [vmem:[#allocation40_spill] sm:$0xff] %v6462_v3  ;;  %9634 = vst [vmem:[#allocation41_spill] sm:$0xff] %v6467_v44  ;;  %v6476_v0 = vmul.f32 %v6462_v3, %v509_v1  ;;  %v6489_v35 = vmul.f32 %v6467_v44, %v508_v54  ;;  %v6499_v1 = vunpack.i.h.bf16 %v6215_v15  ;;  %v6507_v39 = vmul.f32 %v6478_v62, %v507_v14  ;;  %v518_v54 = vld [vmem:[%s6213_s25 + $0xf8] sm:$0xff] }
  0xd7   : > { %9635 = vst [vmem:[#allocation42_spill] sm:$0xff] %v6478_v62  ;;  %v6480_v46 = vpop.permute.xlu1 %5667  ;;  %v9637_v3 = vrot.slane %v6229_v30, 1  ;;  %v894_v15 = vrot.slane %v6294_v56, 1  ;;  %v893_v14 = vrot.slane %v6272_v48, 1  ;;  %v6545_v62 = vunpack.i.l.bf16 %v6269_v47 }
  0xd8   : > { %1133 = vrot.lane.b32.xlu0 %v6483_v37, %s5935_s26  ;;  %1135 = vrot.lane.b32.xlu1 %v6486_v36, %s5935_s26  ;;  %9636 = vst [vmem:[#allocation43_spill] sm:$0xff] %v6499_v1  ;;  %v9640_v49 = vrot.slane %v6476_v0, 1  ;;  %v9641_v56 = vrot.slane %v6489_v35, 1  ;;  %v1034_v26 = vmul.f32 %v6522_v18, %v950_v40  ;;  %v948_v41 = vsel %vm920_vm3, %v891_v6, %v892_v43 }
  0xd9   : > { %v951_v44 = vsel %vm920_vm3, %v9637_v3, %v889_v13  ;;  %v6538_v13 = vunpack.i.l.bf16 %v6247_v38  ;;  %9644 = vst [vmem:[#allocation48_spill] sm:$0xff] %v6545_v62  ;;  %v896_v38 = vrot.slane %v6323_v7, 1  ;;  %v895_v47 = vrot.slane %v6297_v57, 1 }
  0xda   : > { %v6535_v3 = vsel %vm920_vm3, %v9641_v56, %v9640_v49  ;;  %v1033_v48 = vmul.f32 %v6499_v1, %v951_v44  ;;  %v949_v49 = vsel %vm920_vm3, %v890_v29, %v891_v6  ;;  %v6554_v56 = vunpack.i.h.bf16 %v6277_v50 }
  0xdb   : > { %v6504_v63 = vpop.permute.xlu1 %5677  ;;  %9642 = vst [vmem:[#allocation46_spill] sm:$0xff] %v6538_v13  ;;  %v946_v44 = vsel %vm920_vm3, %v893_v14, %v894_v15  ;;  %v947_v29 = vsel %vm920_vm3, %v892_v43, %v893_v14  ;;  %v6567_v50 = vunpack.i.h.bf16 %v6299_v58  ;;  %v898_v6 = vrot.slane %v6355_v21, 1 }
  0xdc   : > { %v6516_v53 = vunpack.i.h.bf16 %v6504_v63  ;;  %1137 = vrot.lane.b32.xlu0 %v6507_v39, %s5935_s26  ;;  %1139 = vrot.lane.b32.xlu1 %v6489_v35, %s5935_s26  ;;  %9646 = vst [vmem:[#allocation50_spill] sm:$0xff] %v6554_v56  ;;  %v1035_v40 = vmul.f32 %v6541_v28, %v949_v49  ;;  %v1036_v27 = vmul.f32 %v6538_v13, %v948_v41  ;;  %v6579_v43 = vunpack.i.h.bf16 %v6325_v8 }
  0xdd   : > { %9647 = vst [vmem:[#allocation51_spill] sm:$0xff] %v6567_v50  ;;  %v899_v58 = vrot.slane %v6358_v22, 1  ;;  %v1037_v14 = vmul.f32 %v6554_v56, %v947_v29  ;;  %v944_v42 = vsel %vm920_vm3, %v895_v47, %v896_v38  ;;  %v6586_v49 = vunpack.i.l.bf16 %v6317_v4 }
  0xde   : > { %9638 = vst [vmem:[#allocation44_spill] sm:$0xff] %v6516_v53  ;;  %v6548_v34 = vmul.f32 %v6516_v53, %v518_v54  ;;  %v897_v54 = vrot.slane %v6320_v5, 1  ;;  %v6573_v53 = vunpack.i.l.bf16 %v6291_v55  ;;  %9649 = vst [vmem:[#allocation53_spill] sm:$0xff] %v6579_v43  ;;  %v6589_v55 = vunpack.i.h.bf16 %v6360_v23 }
  0xdf   : > { %9650 = vst [vmem:[#allocation54_spill] sm:$0xff] %v6586_v49  ;;  %v900_v41 = vrot.slane %v6386_v52, 1  ;;  %v945_v8 = vsel %vm920_vm3, %v894_v15, %v895_v47  ;;  %v941_v22 = vsel %vm920_vm3, %v898_v6, %v899_v58  ;;  %v6658_v32 = vunpack.i.h.bf16 %v6480_v46 }
  0xe0   : > { %9645 = vst [vmem:[#allocation49_spill] sm:$0xff] %v6548_v34  ;;  %1227 = vrot.lane.b32.xlu0 %v1034_v26, %s5936_s27  ;;  %1225 = vrot.lane.b32.xlu1 %v1033_v48, %s5936_s27  ;;  %9648 = vst [vmem:[#allocation52_spill] sm:$0xff] %v6573_v53  ;;  %v1038_v26 = vmul.f32 %v6545_v62, %v946_v44  ;;  %v1039_v29 = vmul.f32 %v6567_v50, %v945_v8  ;;  %v721_v48 = vrot.slane %v6355_v21, 7 }
  0xe1   : > { %9651 = vst [vmem:[#allocation55_spill] sm:$0xff] %v6589_v55  ;;  %v942_v4 = vsel %vm920_vm3, %v897_v54, %v898_v6  ;;  %v943_v23 = vsel %vm920_vm3, %v896_v38, %v897_v54  ;;  %v9653_v15 = vrot.slane %v6548_v34, 7  ;;  %v6614_v8 = vunpack.i.l.bf16 %v6352_v20  ;;  %v5663_v38 = vpop.permute.xlu0 %5662  ;;  %9664 = vst [vmem:[#allocation63_spill] sm:$0xff] %v6658_v32 }
  0xe2   : > { %v724_v44 = vrot.slane %v6389_v59, 7  ;;  %v1041_v21 = vmul.f32 %v6579_v43, %v943_v23  ;;  %v1042_v54 = vmul.f32 %v6586_v49, %v942_v4  ;;  %v1043_v20 = vmul.f32 %v6589_v55, %v941_v22 }
  0xe3   : > { %9655 = vst [vmem:[#allocation57_spill] sm:$0xff] %v6614_v8  ;;  %v6628_v23 = vunpack.i.l.bf16 %v6383_v51  ;;  %v726_v6 = vrot.slane %v6422_v24, 7  ;;  %v725_v4 = vrot.slane %v6419_v10, 7  ;;  %v6640_v22 = vunpack.i.h.bf16 %v5663_v38  ;;  %v511_v51 = vld [vmem:[%s6213_s25 + $0xc0] sm:$0xff] }
  0xe4   : > { %1229 = vrot.lane.b32.xlu0 %v1035_v40, %s5936_s27  ;;  %1231 = vrot.lane.b32.xlu1 %v1036_v27, %s5936_s27  ;;  %v1040_v40 = vmul.f32 %v6573_v53, %v944_v42  ;;  %v9652_v27 = vrot.slane %v6229_v30, 7  ;;  %v723_v42 = vrot.slane %v6386_v52, 7  ;;  %v6632_v52 = vunpack.i.h.bf16 %v6452_v19 }
  0xe5   : > { %9656 = vst [vmem:[#allocation58_spill] sm:$0xff] %v6628_v23  ;;  %9659 = vst [vmem:[#allocation60_spill] sm:$0xff] %v6640_v22  ;;  %v728_v19 = vrot.slane %v6459_v31, 7  ;;  %v6646_v25 = vunpack.i.l.bf16 %v5663_v38 }
  0xe6   : > { %v6611_v47 = vsel %vm743_vm2, %v9653_v15, %v9652_v27  ;;  %v940_v27 = vsel %vm920_vm3, %v899_v58, %v900_v41  ;;  %9657 = vst [vmem:[#allocation59_spill] sm:$0xff] %v6632_v52  ;;  %v510_v58 = vld [vmem:[%s6213_s25 + $0xb8] sm:$0xff] }
  0xe7   : > { %9654 = vst [vmem:[#allocation56_spill] sm:$0xff] %v6611_v47  ;;  %9660 = vst [vmem:[#allocation61_spill] sm:$0xff] %v6646_v25  ;;  %v730_v47 = vrot.slane %v6486_v36, 7 }
  0xe8   : > { %1235 = vrot.lane.b32.xlu0 %v1038_v26, %s5936_s27  ;;  %1233 = vrot.lane.b32.xlu1 %v1037_v14, %s5936_s27  ;;  %v9658_v26 = vrot.slane %v6389_v59, 1 }
  0xea   : > { %v939_v14 = vsel %vm920_vm3, %v900_v41, %v9658_v26  ;;  %v9661_v41 = vrot.slane %v6323_v7, 7  ;;  %v9662_v26 = vrot.slane %v6297_v57, 7  ;;  %v9665_v7 = vrot.slane %v6229_v30, 1 }
  0xeb   : > { %v9666_v57 = vrot.slane %v6548_v34, 1  ;;  %v6689_v34 = vmul.f32 %v6640_v22, %v512_v33  ;;  %v1044_v33 = vmul.f32 %v6614_v8, %v940_v27  ;;  %v6726_v27 = vsel %vm743_vm2, %v726_v6, %v727_v12 }
  0xec   : > { %v6655_v15 = vsel %vm743_vm2, %v9662_v26, %v9661_v41  ;;  %1237 = vrot.lane.b32.xlu0 %v1039_v29, %s5936_s27  ;;  %1239 = vrot.lane.b32.xlu1 %v1040_v40, %s5936_s27  ;;  %v6674_v41 = vunpack.i.l.bf16 %v6480_v46  ;;  %v731_v26 = vrot.slane %v6507_v39, 7  ;;  %v9668_v29 = vrot.slane %v6320_v5, 7  ;;  %v513_v40 = vld [vmem:[%s6213_s25 + $0xd0] sm:$0xff] }
  0xed   : > { %9663 = vst [vmem:[#allocation62_spill] sm:$0xff] %v6655_v15  ;;  %v6671_v38 = vsel %vm920_vm3, %v9666_v57, %v9665_v7  ;;  %v6678_v15 = vmul.f32 %v6632_v52, %v510_v58  ;;  %v6693_v46 = vsel %vm743_vm2, %v721_v48, %v722_v61  ;;  %v6697_v7 = vsel %vm743_vm2, %v722_v61, %v723_v42 }
  0xee   : > { %9667 = vst [vmem:[#allocation64_spill] sm:$0xff] %v6674_v41  ;;  %v6685_v30 = vsel %vm743_vm2, %v9668_v29, %v721_v48  ;;  %v6701_v58 = vsel %vm743_vm2, %v723_v42, %v724_v44  ;;  %v6704_v5 = vmul.f32 %v6646_v25, %v511_v51  ;;  %v732_v57 = vrot.slane %v6489_v35, 7 }
  0xef   : > { %v6710_v29 = vsel %vm743_vm2, %v724_v44, %v725_v4  ;;  %v6713_v48 = vunpack.i.h.bf16 %v6391_v60  ;;  %v6718_v61 = vmul.f32 %v6658_v32, %v514_v16  ;;  %v6722_v42 = vsel %vm743_vm2, %v725_v4, %v726_v6  ;;  %v1387_v60 = vld [vmem:[%s9388_s4] sm:$0xff]  ;;  %v1388_v44 = vld [vmem:[%s9388_s4 + $0x8] sm:$0xff] }
  0xf0   : > { %1243 = vrot.lane.b32.xlu0 %v1042_v54, %s5936_s27  ;;  %1241 = vrot.lane.b32.xlu1 %v1041_v21, %s5936_s27  ;;  %v6735_v21 = vmul.f32 %v6674_v41, %v513_v40  ;;  %v9671_v16 = vrot.slane %v6419_v10, 1  ;;  %v9672_v54 = vrot.slane %v6389_v59, 1  ;;  %v6745_v6 = vsel %vm743_vm2, %v727_v12, %v728_v19 }
  0xf1   : > { %9669 = vst [vmem:[#allocation65_spill] sm:$0xff] %v6713_v48  ;;  %9670 = vst [vmem:[#allocation66_spill] sm:$0xff] %v6718_v61  ;;  %v6749_v51 = vsel %vm743_vm2, %v728_v19, %v729_v17  ;;  %v734_v32 = vrot.slane %v6678_v15, 7  ;;  %v736_v40 = vrot.slane %v6689_v34, 7  ;;  %v6755_v41 = vsel %vm743_vm2, %v729_v17, %v730_v47 }
  0xf2   : > { %v938_v4 = vsel %vm920_vm3, %v9672_v54, %v9671_v16  ;;  %v6759_v59 = vsel %vm743_vm2, %v730_v47, %v731_v26  ;;  %v903_v16 = vrot.slane %v6422_v24, 1  ;;  %v904_v12 = vrot.slane %v6456_v45, 1  ;;  %v1389_v47 = vld [vmem:[%s9388_s4 + $0x10] sm:$0xff] }
  0xf3   : > { %v6765_v19 = vsel %vm743_vm2, %v731_v26, %v732_v57  ;;  %v5422_v54 = vpack.c.bf16 %v1388_v44, %v1387_v60  ;;  %v1045_v17 = vmul.f32 %v6713_v48, %v939_v14  ;;  %v9456_v22 = vrot.slane %v6718_v61, 7 }
  0xf4   : > { %1245 = vrot.lane.b32.xlu0 %v1043_v20, %s5936_s27  ;;  %1247 = vrot.lane.b32.xlu1 %v1044_v33, %s5936_s27  ;;  %v733_v24 = vrot.slane %v6476_v0, 7  ;;  %v735_v45 = vrot.slane %v6704_v5, 7  ;;  %v6777_v26 = vunpack.i.l.bf16 %v6416_v9  ;;  %v6780_v60 = vunpack.i.h.bf16 %v6424_v11 }
  0xf5   : > { %v1046_v20 = vmul.f32 %v6628_v23, %v938_v4  ;;  %5423 = vmatprep.subr.bf16.mxu0 %v5422_v54  ;;  %v737_v14 = vrot.slane %v6735_v21, 7  ;;  %v905_v4 = vrot.slane %v6459_v31, 1 }
  0xf6   : > { %9673 = vst [vmem:[#allocation67_spill] sm:$0xff] %v6777_v26  ;;  %9674 = vst [vmem:[#allocation68_spill] sm:$0xff] %v6780_v60  ;;  %5425 = vmatpush3.bf16.msra.mxu0 %v5422_v54  ;;  %v6786_v33 = vsel %vm743_vm2, %v732_v57, %v733_v24  ;;  %v6790_v44 = vsel %vm743_vm2, %v733_v24, %v734_v32  ;;  %v6794_v9 = vsel %vm743_vm2, %v734_v32, %v735_v45 }
  0xf7   : > { %v6798_v11 = vsel %vm743_vm2, %v735_v45, %v736_v40  ;;  %v906_v54 = vrot.slane %v6483_v37, 1  ;;  %v936_v57 = vsel %vm920_vm3, %v903_v16, %v904_v12  ;;  %5204 = vmatprep.subr.mxu0 %v1389_v47  ;;  %v6808_v32 = vsel %vm743_vm2, %v736_v40, %v737_v14 }
  0xf8   : > { %1249 = vrot.lane.b32.xlu0 %v1045_v17, %s5936_s27  ;;  %1251 = vrot.lane.b32.xlu1 %v1046_v20, %s5936_s27  ;;  %v6814_v24 = vsel %vm743_vm2, %v737_v14, %v9456_v22  ;;  %v9675_v37 = vrot.slane %v6419_v10, 1  ;;  %v1048_v17 = vmul.f32 %v6777_v26, %v936_v57  ;;  %v907_v20 = vrot.slane %v6486_v36, 1 }
  0xf9   : > { %v908_v40 = vrot.slane %v6507_v39, 1  ;;  %v935_v25 = vsel %vm920_vm3, %v904_v12, %v905_v4  ;;  %v934_v14 = vsel %vm920_vm3, %v905_v4, %v906_v54  ;;  %v9676_v4 = vrot.slane %v6489_v35, 1  ;;  %v5673_v35 = vpop.permute.xlu0 %5672 }
  0xfa   : > { %v937_v31 = vsel %vm920_vm3, %v9675_v37, %v903_v16  ;;  %5205 = vmatpush3.msra.mxu0 %v1389_v47  ;;  %v1049_v10 = vmul.f32 %v6499_v1, %v935_v25  ;;  %v1050_v16 = vmul.f32 %v6522_v18, %v934_v14  ;;  %v933_v47 = vsel %vm920_vm3, %v906_v54, %v907_v20  ;;  %v9685_v18 = vld [vmem:[#allocation24_spill] sm:$0xff] }
  0xfb   : > { %v1047_v45 = vmul.f32 %v6780_v60, %v937_v31  ;;  %v932_v36 = vsel %vm920_vm3, %v907_v20, %v908_v40  ;;  %v1051_v39 = vmul.f32 %v6541_v28, %v933_v47  ;;  %v931_v25 = vsel %vm920_vm3, %v908_v40, %v9676_v4  ;;  %v515_v47 = vld [vmem:[%s6213_s25 + $0xe0] sm:$0xff] }
  0xfc   : > { %1255 = vrot.lane.b32.xlu1 %v1048_v17, %s5936_s27  ;;  %v1052_v12 = vmul.f32 %v6538_v13, %v932_v36  ;;  %v1053_v54 = vmul.f32 %v6554_v56, %v931_v25  ;;  %v1054_v57 = vmul.f32 %v6545_v62, %v6535_v3  ;;  %v911_v37 = vrot.slane %v6678_v15, 1  ;;  %v6870_v36 = vpop.permute.xlu1 %5687 }
  0xfd   : > { %1253 = vrot.lane.b32.xlu0 %v1047_v45, %s5936_s27  ;;  %v912_v31 = vrot.slane %v6704_v5, 1  ;;  %v9677_v45 = vrot.slane %v6476_v0, 1  ;;  %v6865_v14 = vunpack.i.l.bf16 %v5673_v35  ;;  %v6992_v13 = vunpack.i.h.bf16 %v6870_v36 }
  0xfe   : > { %v6995_v28 = vunpack.i.l.bf16 %v6870_v36 }
  0xff   : > { %v929_v17 = vsel %vm920_vm3, %v9677_v45, %v911_v37  ;;  %v928_v20 = vsel %vm920_vm3, %v911_v37, %v912_v31  ;;  %9678 = vst [vmem:[#allocation69_spill] sm:$0xff] %v6865_v14  ;;  %v6894_v37 = vunpack.i.l.bf16 %v6504_v63  ;;  %v915_v45 = vrot.slane %v6718_v61, 1 }
 0x100   : > { %1259 = vrot.lane.b32.xlu1 %v1050_v16, %s5936_s27  ;;  %v1055_v3 = vmul.f32 %v6567_v50, %v929_v17  ;;  %v1056_v40 = vmul.f32 %v6573_v53, %v928_v20  ;;  %v914_v16 = vrot.slane %v6735_v21, 1  ;;  %v6887_v4 = vpop.permute.xlu1 %5697  ;;  %v517_v17 = vld [vmem:[%s6213_s25 + $0xf0] sm:$0xff] }
 0x101   : > { %1257 = vrot.lane.b32.xlu0 %v1049_v10, %s5936_s27  ;;  %v913_v10 = vrot.slane %v6689_v34, 1  ;;  %9680 = vst [vmem:[#allocation71_spill] sm:$0xff] %v6894_v37  ;;  %v6905_v20 = vmul.f32 %v6894_v37, %v517_v17  ;;  %v9686_v37 = vld [vmem:[#allocation56_spill] sm:$0xff] }
 0x103   : > { %9682 = vst [vmem:[#allocation73_spill] sm:$0xff] %v6905_v20 }
 0x104   : > { %1263 = vrot.lane.b32.xlu1 %v1052_v12, %s5936_s27  ;;  %v926_v12 = vsel %vm920_vm3, %v913_v10, %v914_v16 }
 0x105   : > { %1261 = vrot.lane.b32.xlu0 %v1051_v39, %s5936_s27  ;;  %v6872_v39 = vpop.permute.xlu0 %5682 }
 0x106   : > { %v6982_v53 = vunpack.i.h.bf16 %v6872_v39  ;;  %v6985_v50 = vunpack.i.l.bf16 %v6872_v39 }
 0x108   : > { %1267 = vrot.lane.b32.xlu1 %v1054_v57, %s5936_s27  ;;  %v1058_v57 = vmul.f32 %v6586_v49, %v926_v12  ;;  %v918_v12 = vrot.slane %v6905_v20, 1  ;;  %v857_v1 = vmul.f32 %v6982_v53, %v9685_v18 }
 0x109   : > { %1265 = vrot.lane.b32.xlu0 %v1053_v54, %s5936_s27  ;;  %v6889_v25 = vpop.permute.xlu0 %5692 }
 0x10a   : > { %v7006_v36 = vunpack.i.h.bf16 %v6889_v25  ;;  %v7009_v18 = vunpack.i.l.bf16 %v6889_v25 }
 0x10c   : > { %1143 = vrot.lane.b32.xlu1 %v6678_v15, %s5935_s26  ;;  %v927_v15 = vsel %vm920_vm3, %v912_v31, %v913_v10  ;;  %v6896_v31 = vunpack.i.h.bf16 %v5673_v35 }
 0x10d   : > { %1141 = vrot.lane.b32.xlu0 %v6476_v0, %s5935_s26  ;;  %v6877_v0 = vmul.f32 %v6865_v14, %v515_v47  ;;  %v1057_v54 = vmul.f32 %v6579_v43, %v927_v15  ;;  %v6916_v10 = vpop.permute.xlu0 %5702 }
 0x10e   : > { %9681 = vst [vmem:[#allocation72_spill] sm:$0xff] %v6896_v31 }
 0x10f   : > { %9679 = vst [vmem:[#allocation70_spill] sm:$0xff] %v6877_v0 }
 0x110   : > { %1271 = vrot.lane.b32.xlu1 %v1056_v40, %s5936_s27  ;;  %v6914_v40 = vpop.permute.xlu1 %5707 }
 0x111   : > { %1269 = vrot.lane.b32.xlu0 %v1055_v3, %s5936_s27  ;;  %v925_v3 = vsel %vm920_vm3, %v914_v16, %v915_v45 }
 0x112   : > { %v1059_v47 = vmul.f32 %v6589_v55, %v925_v3 }
 0x114   : > { %1147 = vrot.lane.b32.xlu1 %v6689_v34, %s5935_s26  ;;  %v516_v34 = vld [vmem:[%s6213_s25 + $0xe8] sm:$0xff] }
 0x115   : > { %1145 = vrot.lane.b32.xlu0 %v6704_v5, %s5935_s26  ;;  %v916_v5 = vrot.slane %v6877_v0, 1  ;;  %v6912_v35 = vmul.f32 %v6896_v31, %v516_v34  ;;  %v856_v31 = vmul.f32 %v6985_v50, %v9686_v37 }
 0x117   : > { %v924_v63 = vsel %vm920_vm3, %v915_v45, %v916_v5  ;;  %v917_v15 = vrot.slane %v6912_v35, 1 }
 0x118   : > { %1275 = vrot.lane.b32.xlu1 %v1058_v57, %s5936_s27  ;;  %v1060_v16 = vmul.f32 %v6614_v8, %v924_v63  ;;  %v6930_v57 = vpop.permute.xlu0 %5712 }
 0x119   : > { %1273 = vrot.lane.b32.xlu0 %v1057_v54, %s5936_s27  ;;  %v6928_v54 = vpop.permute.xlu1 %5717  ;;  %v922_v45 = vsel %vm920_vm3, %v917_v15, %v918_v12 }
 0x11a   : > { %v1062_v63 = vmul.f32 %v6628_v23, %v922_v45 }
 0x11c   : > { %1151 = vrot.lane.b32.xlu1 %v6718_v61, %s5935_s26  ;;  %v9687_v61 = vld [vmem:[#allocation25_spill] sm:$0xff] }
 0x11d   : > { %1149 = vrot.lane.b32.xlu0 %v6735_v21, %s5935_s26  ;;  %v923_v21 = vsel %vm920_vm3, %v916_v5, %v917_v15  ;;  %v858_v37 = vmul.f32 %v6995_v28, %v9687_v61  ;;  %v7025_v61 = vunpack.i.l.bf16 %v6887_v4 }
 0x11e   : > { %v1061_v3 = vmul.f32 %v6713_v48, %v923_v21 }
 0x120   : > { %1279 = vrot.lane.b32.xlu1 %v1060_v16, %s5936_s27  ;;  %v9683_v16 = vld [vmem:[#allocation49_spill] sm:$0xff] }
 0x121   : > { %1277 = vrot.lane.b32.xlu0 %v1059_v47, %s5936_s27  ;;  %v9684_v15 = vrot.slane %v9683_v16, 1 }
 0x123   : > { %v921_v22 = vsel %vm920_vm3, %v918_v12, %v9684_v15 }
 0x124   : > { %1155 = vrot.lane.b32.xlu1 %v6912_v35, %s5935_s26  ;;  %v1063_v45 = vmul.f32 %v6780_v60, %v921_v22 }
 0x125   : > { %1153 = vrot.lane.b32.xlu0 %v6877_v0, %s5935_s26  ;;  %v9688_v0 = vld [vmem:[#allocation28_spill] sm:$0xff] }
 0x126   : > { %v1100_v17 = vpop.permute.xlu0 %1099  ;;  %v1098_v34 = vpop.permute.xlu1 %1097 }
 0x127   : > { %v1323_v39 = vsel %vm1321_vm4, %v857_v1, %v1100_v17  ;;  %v1322_v14 = vsel %vm1321_vm4, %v856_v31, %v1098_v34  ;;  %v859_v1 = vmul.f32 %v6992_v13, %v9688_v0  ;;  %v9689_v0 = vld [vmem:[#allocation29_spill] sm:$0xff] }
 0x128   : > { %1283 = vrot.lane.b32.xlu1 %v1062_v63, %s5936_s27 }
 0x129   : > { %1281 = vrot.lane.b32.xlu0 %v1061_v3, %s5936_s27  ;;  %v1064_v3 = vmul.f32 %v6777_v26, %v6671_v38 }
 0x12a   : > { %v1102_v5 = vpop.permute.xlu0 %1101  ;;  %v1104_v47 = vpop.permute.xlu1 %1103 }
 0x12c   : > { %1159 = vrot.lane.b32.xlu1 %v9683_v16, %s5935_s26 }
 0x12d   : > { %1157 = vrot.lane.b32.xlu0 %v6905_v20, %s5935_s26 }
 0x12e   : > { %v1108_v21 = vpop.permute.xlu0 %1107  ;;  %v1106_v48 = vpop.permute.xlu1 %1105 }
 0x130   : > { %1287 = vrot.lane.b32.xlu1 %v1064_v3, %s5936_s27 }
 0x131   : > { %1285 = vrot.lane.b32.xlu0 %v1063_v45, %s5936_s27  ;;  %s9340_s27 = scalar_lea.hbm %s9391_s7, %s5053_s18 }
 0x132   : > { %v1110_v63 = vpop.permute.xlu0 %1109  ;;  %v1112_v23 = vpop.permute.xlu1 %1111 }
 0x136   : > { %v6957_v12 = vpop.permute.xlu0 %1115  ;;  %v6959_v15 = vpop.permute.xlu1 %1113 }
 0x13a   : > { %v6961_v8 = vpop.permute.xlu0 %1117  ;;  %v6963_v55 = vpop.permute.xlu1 %1119 }
 0x13e   : > { %v6965_v49 = vpop.permute.xlu0 %1121  ;;  %v6967_v22 = vpop.permute.xlu1 %1123 }
 0x142   : > { %v6969_v60 = vpop.permute.xlu0 %1125  ;;  %v6971_v38 = vpop.permute.xlu1 %1127 }
 0x146   : > { %v6973_v45 = vpop.permute.xlu0 %1129  ;;  %v6975_v3 = vpop.permute.xlu1 %1131 }
 0x14a   : > { %v6977_v26 = vpop.permute.xlu0 %1133  ;;  %v6979_v43 = vpop.permute.xlu1 %1135 }
 0x14e   : > { %v6987_v62 = vpop.permute.xlu0 %1137  ;;  %v6989_v56 = vpop.permute.xlu1 %1139 }
 0x152   : > { %v1228_v52 = vpop.permute.xlu0 %1227  ;;  %v1226_v16 = vpop.permute.xlu1 %1225 }
 0x153   : > { %v1356_v20 = vsel %vm1354_vm5, %v1323_v39, %v1228_v52  ;;  %v1355_v2 = vsel %vm1354_vm5, %v1322_v14, %v1226_v16  ;;  %v1324_v52 = vsel %vm1321_vm4, %v858_v37, %v1102_v5  ;;  %v1325_v14 = vsel %vm1321_vm4, %v859_v1, %v1104_v47 }
 0x154   : > { %5206 = vmatprep.mubr.msk.f32.mxu0 %vm1390_vm6, %v1355_v2  ;;  %v7022_v16 = vunpack.i.h.bf16 %v6887_v4  ;;  %v861_v2 = vmul.f32 %v7006_v36, %v9689_v0 }
 0x155   : > { %5207 = vmatmul.mubr.msk.f32.vlgmr.msra.gmra.mrb[0].mxu0 %vm1390_vm6, %v1356_v20  ;;  %v9690_v20 = vld [vmem:[#allocation32_spill] sm:$0xff] }
 0x156   : > { %v1230_v31 = vpop.permute.xlu0 %1229  ;;  %v1232_v17 = vpop.permute.xlu1 %1231  ;;  %v860_v5 = vmul.f32 %v7009_v18, %v9690_v20  ;;  %v1327_v47 = vsel %vm1321_vm4, %v861_v2, %v1108_v21 }
 0x157   : > { %v1357_v34 = vsel %vm1354_vm5, %v1324_v52, %v1230_v31  ;;  %v1358_v25 = vsel %vm1354_vm5, %v1325_v14, %v1232_v17  ;;  %v7038_v14 = vunpack.i.h.bf16 %v6916_v10  ;;  %v7041_v31 = vunpack.i.l.bf16 %v6916_v10  ;;  %v9691_v17 = vld [vmem:[#allocation33_spill] sm:$0xff] }
 0x158   : > { %5209 = vmatprep.mubr.msk.f32.mxu0 %vm1390_vm6, %v1357_v34  ;;  %v1326_v39 = vsel %vm1321_vm4, %v860_v5, %v1106_v48  ;;  %v862_v34 = vmul.f32 %v7025_v61, %v9691_v17 }
 0x159   : > { %5210 = vmatmul.mubr.msk.f32.gmra.mrb[2].mxu0 %vm1390_vm6, %v1358_v25  ;;  %v9692_v25 = vld [vmem:[#allocation36_spill] sm:$0xff] }
 0x15a   : > { %v1236_v37 = vpop.permute.xlu0 %1235  ;;  %v1234_v1 = vpop.permute.xlu1 %1233  ;;  %v863_v21 = vmul.f32 %v7022_v16, %v9692_v25  ;;  %v1328_v48 = vsel %vm1321_vm4, %v862_v34, %v1110_v63 }
 0x15b   : > { %v1360_v52 = vsel %vm1354_vm5, %v1327_v47, %v1236_v37  ;;  %v1359_v4 = vsel %vm1354_vm5, %v1326_v39, %v1234_v1  ;;  %v7054_v47 = vunpack.i.h.bf16 %v6914_v40  ;;  %v7057_v39 = vunpack.i.l.bf16 %v6914_v40  ;;  %v9694_v37 = vld [vmem:[#allocation37_spill] sm:$0xff] }
 0x15c   : > { %5212 = vmatprep.mubr.msk.f32.mxu0 %vm1390_vm6, %v1359_v4  ;;  %v1329_v0 = vsel %vm1321_vm4, %v863_v21, %v1112_v23  ;;  %v865_v1 = vmul.f32 %v7038_v14, %v9694_v37  ;;  %v7072_v21 = vunpack.i.h.bf16 %v6930_v57 }
 0x15d   : > { %5213 = vmatmul.mubr.msk.f32.gmra.mrb[4].mxu0 %vm1390_vm6, %v1360_v52  ;;  %9693 = vst [vmem:[#allocation24_spill] sm:$0xff] %v7054_v47  ;;  %v9695_v52 = vld [vmem:[#allocation62_spill] sm:$0xff] }
 0x15e   : > { %v1238_v2 = vpop.permute.xlu0 %1237  ;;  %v1240_v20 = vpop.permute.xlu1 %1239  ;;  %v864_v63 = vmul.f32 %v7041_v31, %v9695_v52  ;;  %v1331_v23 = vsel %vm1321_vm4, %v865_v1, %v6957_v12  ;;  %9696 = vst [vmem:[#allocation56_spill] sm:$0xff] %v7072_v21  ;;  %v867_v12 = vmul.f32 %v7054_v47, %v6693_v46  ;;  %v7093_v46 = vunpack.i.l.bf16 %v6928_v54 }
 0x15f   : > { %v1361_v5 = vsel %vm1354_vm5, %v1328_v48, %v1238_v2  ;;  %v1362_v10 = vsel %vm1354_vm5, %v1329_v0, %v1240_v20  ;;  %v7075_v48 = vunpack.i.l.bf16 %v6930_v57  ;;  %v866_v0 = vmul.f32 %v7057_v39, %v6685_v30 }
 0x160   : > { %5215 = vmatprep.mubr.msk.f32.mxu0 %vm1390_vm6, %v1361_v5  ;;  %v1330_v4 = vsel %vm1321_vm4, %v864_v63, %v6959_v15  ;;  %v1333_v2 = vsel %vm1321_vm4, %v867_v12, %v6963_v55  ;;  %v7090_v30 = vunpack.i.h.bf16 %v6928_v54  ;;  %9699 = vst [vmem:[#allocation29_spill] sm:$0xff] %v7093_v46 }
 0x161   : > { %5216 = vmatmul.mubr.msk.f32.gmra.mrb[6].mxu0 %vm1390_vm6, %v1362_v10  ;;  %9697 = vst [vmem:[#allocation25_spill] sm:$0xff] %v7075_v48  ;;  %v1332_v15 = vsel %vm1321_vm4, %v866_v0, %v6961_v8  ;;  %v868_v37 = vmul.f32 %v7075_v48, %v6697_v7  ;;  %v869_v8 = vmul.f32 %v7072_v21, %v6701_v58 }
 0x162   : > { %v1244_v17 = vpop.permute.xlu0 %1243  ;;  %v1242_v34 = vpop.permute.xlu1 %1241  ;;  %9698 = vst [vmem:[#allocation28_spill] sm:$0xff] %v7090_v30  ;;  %v870_v7 = vmul.f32 %v7093_v46, %v6710_v29  ;;  %v871_v58 = vmul.f32 %v7090_v30, %v6722_v42  ;;  %v872_v29 = vmul.f32 %v6985_v50, %v6726_v27  ;;  %v873_v42 = vmul.f32 %v6982_v53, %v6745_v6 }
 0x163   : > { %v1364_v40 = vsel %vm1354_vm5, %v1331_v23, %v1244_v17  ;;  %v1363_v25 = vsel %vm1354_vm5, %v1330_v4, %v1242_v34  ;;  %v1334_v55 = vsel %vm1321_vm4, %v868_v37, %v6965_v49  ;;  %v1335_v1 = vsel %vm1321_vm4, %v869_v8, %v6967_v22 }
 0x164   : > { %5218 = vmatprep.mubr.msk.f32.mxu0 %vm1390_vm6, %v1363_v25  ;;  %v1336_v49 = vsel %vm1321_vm4, %v870_v7, %v6969_v60  ;;  %v1337_v22 = vsel %vm1321_vm4, %v871_v58, %v6971_v38  ;;  %v1338_v60 = vsel %vm1321_vm4, %v872_v29, %v6973_v45  ;;  %v1339_v38 = vsel %vm1321_vm4, %v873_v42, %v6975_v3 }
 0x165   : > { %5219 = vmatmul.mubr.msk.f32.gmra.mrb[8].mxu0 %vm1390_vm6, %v1364_v40  ;;  %v874_v27 = vmul.f32 %v6995_v28, %v6749_v51  ;;  %v875_v6 = vmul.f32 %v6992_v13, %v6755_v41  ;;  %v876_v51 = vmul.f32 %v7009_v18, %v6759_v59  ;;  %v877_v41 = vmul.f32 %v7006_v36, %v6765_v19 }
 0x166   : > { %v1246_v20 = vpop.permute.xlu0 %1245  ;;  %v1248_v5 = vpop.permute.xlu1 %1247 }
 0x167   : > { %v1365_v57 = vsel %vm1354_vm5, %v1332_v15, %v1246_v20  ;;  %v1366_v10 = vsel %vm1354_vm5, %v1333_v2, %v1248_v5  ;;  %v1340_v45 = vsel %vm1321_vm4, %v874_v27, %v6977_v26  ;;  %v1341_v3 = vsel %vm1321_vm4, %v875_v6, %v6979_v43 }
 0x168   : > { %5221 = vmatprep.mubr.msk.f32.mxu0 %vm1390_vm6, %v1365_v57  ;;  %v1342_v26 = vsel %vm1321_vm4, %v876_v51, %v6987_v62  ;;  %v1343_v43 = vsel %vm1321_vm4, %v877_v41, %v6989_v56  ;;  %v879_v62 = vmul.f32 %v7022_v16, %v6790_v44  ;;  %v881_v44 = vmul.f32 %v7038_v14, %v6798_v11 }
 0x169   : > { %5222 = vmatmul.mubr.msk.f32.gmra.mrb[10].mxu0 %vm1390_vm6, %v1366_v10  ;;  %v883_v11 = vmul.f32 %v7054_v47, %v6814_v24 }
 0x16a   : > { %v1250_v52 = vpop.permute.xlu0 %1249  ;;  %v1252_v63 = vpop.permute.xlu1 %1251 }
 0x16b   : > { %v1367_v54 = vsel %vm1354_vm5, %v1334_v55, %v1250_v52  ;;  %v1368_v23 = vsel %vm1354_vm5, %v1335_v1, %v1252_v63  ;;  %v878_v1 = vmul.f32 %v7025_v61, %v6786_v33  ;;  %v880_v33 = vmul.f32 %v7041_v31, %v6794_v9 }
 0x16c   : > { %5224 = vmatprep.mubr.msk.f32.mxu0 %vm1390_vm6, %v1367_v54  ;;  %v882_v9 = vmul.f32 %v7057_v39, %v6808_v32 }
 0x16d   : > { %5225 = vmatmul.mubr.msk.f32.gmra.mrb[12].mxu0 %vm1390_vm6, %v1368_v23 }
 0x16e   : > { %v1256_v17 = vpop.permute.xlu1 %1255 }
 0x16f   : > { %v1254_v4 = vpop.permute.xlu0 %1253  ;;  %v1370_v40 = vsel %vm1354_vm5, %v1337_v22, %v1256_v17 }
 0x170   : > { %v1369_v34 = vsel %vm1354_vm5, %v1336_v49, %v1254_v4 }
 0x171   : > { %5227 = vmatprep.mubr.msk.f32.mxu0 %vm1390_vm6, %v1369_v34 }
 0x172   : > { %5228 = vmatmul.mubr.msk.f32.gmra.mrb[14].mxu0 %vm1390_vm6, %v1370_v40  ;;  %v1260_v0 = vpop.permute.xlu1 %1259 }
 0x173   : > { %v1258_v25 = vpop.permute.xlu0 %1257  ;;  %v1372_v15 = vsel %vm1354_vm5, %v1339_v38, %v1260_v0 }
 0x174   : > { %v1371_v12 = vsel %vm1354_vm5, %v1338_v60, %v1258_v25 }
 0x175   : > { %5230 = vmatprep.mubr.msk.f32.mxu0 %vm1390_vm6, %v1371_v12 }
 0x176   : > { %5231 = vmatmul.mubr.msk.f32.gmra.mrb[16].mxu0 %vm1390_vm6, %v1372_v15  ;;  %v1264_v20 = vpop.permute.xlu1 %1263  ;;  %v740_v15 = vrot.slane %v6912_v35, 7 }
 0x177   : > { %v1262_v2 = vpop.permute.xlu0 %1261  ;;  %v1374_v57 = vsel %vm1354_vm5, %v1341_v3, %v1264_v20 }
 0x178   : > { %v1373_v5 = vsel %vm1354_vm5, %v1340_v45, %v1262_v2  ;;  %v9700_v45 = vld [vmem:[#allocation70_spill] sm:$0xff] }
 0x179   : > { %5233 = vmatprep.mubr.msk.f32.mxu0 %vm1390_vm6, %v1373_v5  ;;  %v739_v3 = vrot.slane %v9700_v45, 7  ;;  %v9701_v2 = vld [vmem:[#allocation66_spill] sm:$0xff]  ;;  %v9703_v5 = vld [vmem:[#allocation9_spill] sm:$0xff] }
 0x17a   : > { %5234 = vmatmul.mubr.msk.f32.gmra.mrb[18].mxu0 %vm1390_vm6, %v1374_v57  ;;  %v1268_v37 = vpop.permute.xlu1 %1267  ;;  %v9702_v20 = vrot.slane %v9701_v2, 7 }
 0x17b   : > { %v1266_v10 = vpop.permute.xlu0 %1265  ;;  %v1376_v55 = vsel %vm1354_vm5, %v1343_v43, %v1268_v37  ;;  %v746_v35 = vsel %vm743_vm2, %v739_v3, %v740_v15 }
 0x17c   : > { %v1375_v8 = vsel %vm1354_vm5, %v1342_v26, %v1266_v10  ;;  %v747_v57 = vsel %vm743_vm2, %v9702_v20, %v739_v3  ;;  %v885_v41 = vmul.f32 %v7072_v21, %v746_v35 }
 0x17d   : > { %5236 = vmatprep.mubr.msk.f32.mxu0 %vm1390_vm6, %v1375_v8  ;;  %v884_v51 = vmul.f32 %v7075_v48, %v747_v57 }
 0x17e   : > { %5237 = vmatmul.mubr.msk.f32.gmra.mrb[20].mxu0 %vm1390_vm6, %v1376_v55  ;;  %v1144_v19 = vpop.permute.xlu1 %1143 }
 0x17f   : > { %v1142_v59 = vpop.permute.xlu0 %1141  ;;  %v1345_v52 = vsel %vm1321_vm4, %v879_v62, %v1144_v19 }
 0x180   : > { %v1344_v56 = vsel %vm1321_vm4, %v878_v1, %v1142_v59  ;;  %v9704_v59 = vld [vmem:[#allocation73_spill] sm:$0xff] }
 0x181   : > { %v741_v19 = vrot.slane %v9704_v59, 7 }
 0x182   : > { %v1272_v54 = vpop.permute.xlu1 %1271 }
 0x183   : > { %v1270_v63 = vpop.permute.xlu0 %1269  ;;  %v1378_v7 = vsel %vm1354_vm5, %v1345_v52, %v1272_v54  ;;  %v9705_v52 = vld [vmem:[#allocation49_spill] sm:$0xff] }
 0x184   : > { %v1377_v23 = vsel %vm1354_vm5, %v1344_v56, %v1270_v63  ;;  %v745_v56 = vsel %vm743_vm2, %v740_v15, %v741_v19  ;;  %v9706_v63 = vrot.slane %v9705_v52, 7 }
 0x185   : > { %5239 = vmatprep.mubr.msk.f32.mxu0 %vm1390_vm6, %v1377_v23  ;;  %v886_v23 = vmul.f32 %v7093_v46, %v745_v56 }
 0x186   : > { %5240 = vmatmul.mubr.msk.f32.gmra.mrb[22].mxu0 %vm1390_vm6, %v1378_v7  ;;  %v1148_v49 = vpop.permute.xlu1 %1147  ;;  %v744_v54 = vsel %vm743_vm2, %v741_v19, %v9706_v63 }
 0x187   : > { %v1146_v58 = vpop.permute.xlu0 %1145  ;;  %v1347_v4 = vsel %vm1321_vm4, %v881_v44, %v1148_v49  ;;  %v887_v7 = vmul.f32 %v7090_v30, %v744_v54 }
 0x188   : > { %v1346_v22 = vsel %vm1321_vm4, %v880_v33, %v1146_v58 }
 0x18a   : > { %v1276_v34 = vpop.permute.xlu1 %1275 }
 0x18b   : > { %v1274_v17 = vpop.permute.xlu0 %1273  ;;  %v1380_v29 = vsel %vm1354_vm5, %v1347_v4, %v1276_v34  ;;  %v485_v34 = vld [vmem:[%s7222_s22] sm:$0x3] }
 0x18c   : > { %v1379_v40 = vsel %vm1354_vm5, %v1346_v22, %v1274_v17  ;;  %v7225_v17 = vsub.s32 0, %v9703_v5 }
 0x18d   : > { %5242 = vmatprep.mubr.msk.f32.mxu0 %vm1390_vm6, %v1379_v40 }
 0x18e   : > { %5243 = vmatmul.mubr.msk.f32.gmra.mrb[24].mxu0 %vm1390_vm6, %v1380_v29  ;;  %v1152_v60 = vpop.permute.xlu1 %1151  ;;  %9707 = vst [vmem:[#allocation32_spill] sm:$0xff] %v7225_v17  ;;  %v1715_v40 = vrot.slane %v485_v34, %v7225_v17 }
 0x18f   : > { %v1150_v42 = vpop.permute.xlu0 %1149  ;;  %v1349_v25 = vsel %vm1321_vm4, %v883_v11, %v1152_v60 }
 0x190   : > { %v1348_v38 = vsel %vm1321_vm4, %v882_v9, %v1150_v42 }
 0x192   : > { %v1280_v12 = vpop.permute.xlu1 %1279 }
 0x193   : > { %v1278_v0 = vpop.permute.xlu0 %1277  ;;  %v1382_v6 = vsel %vm1354_vm5, %v1349_v25, %v1280_v12 }
 0x194   : > { %v1381_v27 = vsel %vm1354_vm5, %v1348_v38, %v1278_v0 }
 0x195   : > { %5245 = vmatprep.mubr.msk.f32.mxu0 %vm1390_vm6, %v1381_v27 }
 0x196   : > { %5246 = vmatmul.mubr.msk.f32.gmra.mrb[26].mxu0 %vm1390_vm6, %v1382_v6  ;;  %v1156_v24 = vpop.permute.xlu1 %1155 }
 0x197   : > { %v1154_v32 = vpop.permute.xlu0 %1153  ;;  %v1351_v43 = vsel %vm1321_vm4, %v885_v41, %v1156_v24 }
 0x198   : > { %v1350_v26 = vsel %vm1321_vm4, %v884_v51, %v1154_v32 }
 0x19a   : > { %v1284_v37 = vpop.permute.xlu1 %1283 }
 0x19b   : > { %v1282_v10 = vpop.permute.xlu0 %1281  ;;  %v1384_v55 = vsel %vm1354_vm5, %v1351_v43, %v1284_v37 }
 0x19c   : > { %v1383_v8 = vsel %vm1354_vm5, %v1350_v26, %v1282_v10 }
 0x19d   : > { %5248 = vmatprep.mubr.msk.f32.mxu0 %vm1390_vm6, %v1383_v8 }
 0x19e   : > { %5249 = vmatmul.mubr.msk.f32.gmra.mrb[28].mxu0 %vm1390_vm6, %v1384_v55  ;;  %v1160_v62 = vpop.permute.xlu1 %1159 }
 0x19f   : > { %v1158_v1 = vpop.permute.xlu0 %1157  ;;  %v1353_v49 = vsel %vm1321_vm4, %v887_v7, %v1160_v62 }
 0x1a0   : > { %v1352_v58 = vsel %vm1321_vm4, %v886_v23, %v1158_v1  ;;  %vm4664_vm4 = vcmask 720512  }
 0x1a2   : > { %v1288_v44 = vpop.permute.xlu1 %1287 }
 0x1a3   : > { %v1286_v33 = vpop.permute.xlu0 %1285  ;;  %v1386_v4 = vsel %vm1354_vm5, %v1353_v49, %v1288_v44 }
 0x1a4   : > { %v1385_v22 = vsel %vm1354_vm5, %v1352_v58, %v1286_v33  ;;  %v486_v58 = vld [vmem:[%s7222_s22 + $0x2] sm:$0x3]  ;;  %vm4671_vm5 = vcmask 786112  }
 0x1a5   : > { %5251 = vmatprep.mubr.msk.f32.mxu0 %vm1390_vm6, %v1385_v22 }
 0x1a6   : > { %5252 = vmatmul.mubr.msk.f32.gmra.mrb[30].mxu0 %vm1390_vm6, %v1386_v4  ;;  %v7284_v4 = vrot.slane %v486_v58, %v7225_v17  ;;  %vm4678_vm6 = vcmask 851712  }
 0x228   : > { %v5208_v29 = vpop.f32.mrb[0].mxu0 }
 0x229   : > { %v7229_v42 = vadd.f32 %v5208_v29, %v1715_v40  ;;  %v1553_v60 = vpop.f32.mrb[1].mxu0 }
 0x22a   : > { %v7231_v9 = vadd.f32 %v1715_v40, %v1553_v60 }
 0x22b   : > { %v1753_v12 = vmax.f32 %v7229_v42, 0.0  ;;  %v4950_v42 = vld [vmem:[%s9389_s5 + $0x30] sm:$0xff] }
 0x22c   : > { %v1752_v11 = vmax.f32 %v7231_v9, 0.0  ;;  %v5211_v38 = vpop.f32.mrb[2].mxu0  ;;  %v4948_v9 = vld [vmem:[%s9389_s5 + $0x20] sm:$0xff] }
 0x22d   : > { %v7234_v25 = vadd.f32 %v5211_v38, %v1715_v40  ;;  %v1563_v0 = vpop.f32.mrb[3].mxu0  ;;  %v1788_v2 = vsel %vm1784_vm7, %v1753_v12, 0.0 }
 0x22e   : > { %v7237_v15 = vadd.f32 %v1715_v40, %v1563_v0  ;;  %v1785_v27 = vsel %vm1784_vm7, %v1752_v11, 0.0 }
 0x22f   : > { %1786 = vadd.xlane.f32.xlu0 %v1785_v27 }
 0x230   : > { %v5214_v6 = vpop.f32.mrb[4].mxu0  ;;  %v9532_v32 = vmax.f32 %v7237_v15, 0.0  ;;  %v9708_v30 = vmax.f32 %v7237_v15, 0.0  ;;  %v9711_v15 = vmax.f32 %v7234_v25, 0.0 }
 0x231   : > { %v7242_v45 = vadd.f32 %v5214_v6, %v1715_v40  ;;  %v1573_v3 = vpop.f32.mrb[5].mxu0 }
 0x232   : > { %v7245_v24 = vadd.f32 %v1715_v40, %v1573_v3  ;;  %v1791_v26 = vsel %vm1784_vm7, %v9532_v32, 0.0 }
 0x233   : > { %1789 = vadd.xlane.f32.xlu0 %v1788_v2 }
 0x234   : > { %v5217_v20 = vpop.f32.mrb[6].mxu0  ;;  %v9528_v51 = vmax.f32 %v7245_v24, 0.0 }
 0x235   : > { %v7250_v57 = vadd.f32 %v5217_v20, %v1715_v40  ;;  %v1583_v35 = vpop.f32.mrb[7].mxu0 }
 0x236   : > { %v7253_v41 = vadd.f32 %v1715_v40, %v1583_v35  ;;  %v1797_v59 = vsel %vm1784_vm7, %v9528_v51, 0.0 }
 0x237   : > { %1792 = vadd.xlane.f32.xlu0 %v1791_v26 }
 0x238   : > { %v5220_v43 = vpop.f32.mrb[8].mxu0  ;;  %v9515_v8 = vmax.f32 %v7253_v41, 0.0 }
 0x239   : > { %v7258_v10 = vadd.f32 %v5220_v43, %v1715_v40  ;;  %v1593_v37 = vpop.f32.mrb[9].mxu0 }
 0x23a   : > { %v7261_v55 = vadd.f32 %v1715_v40, %v1593_v37  ;;  %v1803_v63 = vsel %vm1784_vm7, %v9515_v8, 0.0 }
 0x23b   : > { %1798 = vadd.xlane.f32.xlu0 %v1797_v59 }
 0x23c   : > { %v5223_v19 = vpop.f32.mrb[10].mxu0  ;;  %v9512_v56 = vmax.f32 %v7261_v55, 0.0 }
 0x23d   : > { %v7266_v1 = vadd.f32 %v5223_v19, %v1715_v40  ;;  %v1603_v62 = vpop.f32.mrb[11].mxu0 }
 0x23e   : > { %v7269_v52 = vadd.f32 %v1715_v40, %v1603_v62  ;;  %v1809_v44 = vsel %vm1784_vm7, %v9512_v56, 0.0 }
 0x23f   : > { %1804 = vadd.xlane.f32.xlu0 %v1803_v63 }
 0x240   : > { %v5226_v54 = vpop.f32.mrb[12].mxu0  ;;  %v9511_v49 = vmax.f32 %v7269_v52, 0.0 }
 0x241   : > { %v7274_v23 = vadd.f32 %v5226_v54, %v1715_v40  ;;  %v1613_v7 = vpop.f32.mrb[13].mxu0 }
 0x242   : > { %v7278_v33 = vadd.f32 %v1715_v40, %v1613_v7  ;;  %v1815_v0 = vsel %vm1784_vm7, %v9511_v49, 0.0  ;;  %v9526_v49 = vmax.f32 %v7234_v25, 0.0  ;;  %v9713_v25 = vmax.f32 %v7242_v45, 0.0 }
 0x243   : > { %1810 = vadd.xlane.f32.xlu0 %v1809_v44  ;;  %v9520_v8 = vmax.f32 %v7274_v23, 0.0 }
 0x244   : > { %v9509_v60 = vmax.f32 %v7278_v33, 0.0 }
 0x245   : > { %v5229_v22 = vpop.f32.mrb[14].mxu0 }
 0x246   : > { %v7286_v34 = vadd.f32 %v5229_v22, %v1715_v40  ;;  %v1623_v29 = vpop.f32.mrb[15].mxu0 }
 0x247   : > { %v7289_v38 = vadd.f32 %v1715_v40, %v1623_v29  ;;  %1816 = vadd.xlane.f32.xlu0 %v1815_v0  ;;  %v1821_v40 = vsel %vm1784_vm7, %v9509_v60, 0.0 }
 0x249   : > { %v5232_v27 = vpop.f32.mrb[16].mxu0  ;;  %v9508_v2 = vmax.f32 %v7289_v38, 0.0 }
 0x24a   : > { %v7295_v6 = vadd.f32 %v5232_v27, %v7284_v4  ;;  %v1633_v3 = vpop.f32.mrb[17].mxu0 }
 0x24b   : > { %v7299_v20 = vadd.f32 %v7284_v4, %v1633_v3  ;;  %1822 = vadd.xlane.f32.xlu0 %v1821_v40  ;;  %v1827_v19 = vsel %vm1784_vm7, %v9508_v2, 0.0 }
 0x24d   : > { %v5235_v35 = vpop.f32.mrb[18].mxu0  ;;  %v9506_v37 = vmax.f32 %v7299_v20, 0.0 }
 0x24e   : > { %v7305_v26 = vadd.f32 %v5235_v35, %v7284_v4  ;;  %v1643_v43 = vpop.f32.mrb[19].mxu0 }
 0x24f   : > { %v7309_v59 = vadd.f32 %v7284_v4, %v1643_v43  ;;  %1828 = vadd.xlane.f32.xlu0 %v1827_v19  ;;  %v1833_v44 = vsel %vm1784_vm7, %v9506_v37, 0.0 }
 0x251   : > { %v5238_v62 = vpop.f32.mrb[20].mxu0  ;;  %v9505_v7 = vmax.f32 %v7309_v59, 0.0 }
 0x252   : > { %v7315_v63 = vadd.f32 %v5238_v62, %v7284_v4  ;;  %v1653_v54 = vpop.f32.mrb[21].mxu0 }
 0x253   : > { %v7319_v58 = vadd.f32 %v7284_v4, %v1653_v54  ;;  %1834 = vadd.xlane.f32.xlu0 %v1833_v44  ;;  %v1839_v29 = vsel %vm1784_vm7, %v9505_v7, 0.0 }
 0x255   : > { %v9503_v22 = vmax.f32 %v7319_v58, 0.0 }
 0x257   : > { %1840 = vadd.xlane.f32.xlu0 %v1839_v29  ;;  %v1845_v35 = vsel %vm1784_vm7, %v9503_v22, 0.0 }
 0x259   : > { %v5241_v0 = vpop.f32.mrb[22].mxu0 }
 0x25a   : > { %v7329_v27 = vadd.f32 %v5241_v0, %v7284_v4  ;;  %v1663_v3 = vpop.f32.mrb[23].mxu0 }
 0x25b   : > { %v7332_v40 = vadd.f32 %v7284_v4, %v1663_v3  ;;  %1846 = vadd.xlane.f32.xlu0 %v1845_v35 }
 0x25d   : > { %v9504_v43 = vmax.f32 %v7332_v40, 0.0 }
 0x25f   : > { %v1851_v19 = vsel %vm1784_vm7, %v9504_v43, 0.0 }
 0x260   : > { %1852 = vadd.xlane.f32.xlu0 %v1851_v19 }
 0x261   : > { %v5244_v62 = vpop.f32.mrb[24].mxu0 }
 0x262   : > { %v7342_v54 = vadd.f32 %v5244_v62, %v7284_v4  ;;  %v1673_v44 = vpop.f32.mrb[25].mxu0 }
 0x263   : > { %v7345_v29 = vadd.f32 %v7284_v4, %v1673_v44 }
 0x265   : > { %v9507_v0 = vmax.f32 %v7345_v29, 0.0 }
 0x267   : > { %v1857_v3 = vsel %vm1784_vm7, %v9507_v0, 0.0 }
 0x268   : > { %1858 = vadd.xlane.f32.xlu0 %v1857_v3 }
 0x269   : > { %v5247_v35 = vpop.f32.mrb[26].mxu0 }
 0x26a   : > { %v7352_v22 = vadd.f32 %v5247_v35, %v7284_v4  ;;  %v1683_v19 = vpop.f32.mrb[27].mxu0 }
 0x26b   : > { %v7355_v43 = vadd.f32 %v7284_v4, %v1683_v19 }
 0x26d   : > { %v9510_v62 = vmax.f32 %v7355_v43, 0.0 }
 0x26f   : > { %v1863_v44 = vsel %vm1784_vm7, %v9510_v62, 0.0 }
 0x270   : > { %1864 = vadd.xlane.f32.xlu0 %v1863_v44 }
 0x271   : > { %v5250_v7 = vpop.f32.mrb[28].mxu0 }
 0x272   : > { %v7362_v37 = vadd.f32 %v5250_v7, %v7284_v4  ;;  %v1693_v3 = vpop.f32.mrb[29].mxu0 }
 0x273   : > { %v7365_v0 = vadd.f32 %v7284_v4, %v1693_v3 }
 0x275   : > { %v9513_v35 = vmax.f32 %v7365_v0, 0.0 }
 0x277   : > { %v1869_v19 = vsel %vm1784_vm7, %v9513_v35, 0.0 }
 0x278   : > { %1870 = vadd.xlane.f32.xlu0 %v1869_v19  ;;  %v9516_v19 = vmax.f32 %v7242_v45, 0.0  ;;  %v9715_v45 = vmax.f32 %v7250_v57, 0.0 }
 0x279   : > { %v5253_v2 = vpop.f32.mrb[30].mxu0 }
 0x27a   : > { %v7372_v60 = vadd.f32 %v5253_v2, %v7284_v4  ;;  %v1703_v44 = vpop.f32.mrb[31].mxu0  ;;  %v1800_v35 = vsel %vm1784_vm7, %v9516_v19, 0.0  ;;  %v9521_v19 = vmax.f32 %v7286_v34, 0.0 }
 0x27b   : > { %v7375_v62 = vadd.f32 %v7284_v4, %v1703_v44  ;;  %v1794_v4 = vsel %vm1784_vm7, %v9526_v49, 0.0  ;;  %v9517_v44 = vmax.f32 %v7250_v57, 0.0 }
 0x27c   : > { %v9531_v7 = vmax.f32 %v7372_v60, 0.0  ;;  %v9709_v46 = vmax.f32 %v7372_v60, 0.0 }
 0x27d   : > { %v9514_v3 = vmax.f32 %v7375_v62, 0.0 }
 0x27e   : > { %v1878_v56 = vsel %vm1784_vm7, %v9531_v7, 0.0 }
 0x27f   : > { %1879 = vadd.xlane.f32.xlu1 %v1878_v56  ;;  %v1875_v2 = vsel %vm1784_vm7, %v9514_v3, 0.0  ;;  %v9518_v56 = vmax.f32 %v7258_v10, 0.0  ;;  %v9519_v3 = vmax.f32 %v7266_v1, 0.0 }
 0x280   : > { %1876 = vadd.xlane.f32.xlu0 %v1875_v2  ;;  %v1806_v2 = vsel %vm1784_vm7, %v9517_v44, 0.0  ;;  %v9522_v44 = vmax.f32 %v7295_v6, 0.0 }
 0x283   : > { %1795 = vadd.xlane.f32.xlu1 %v1794_v4  ;;  %v1812_v4 = vsel %vm1784_vm7, %v9518_v56, 0.0  ;;  %v9523_v56 = vmax.f32 %v7305_v26, 0.0 }
 0x287   : > { %1801 = vadd.xlane.f32.xlu1 %v1800_v35  ;;  %v1818_v35 = vsel %vm1784_vm7, %v9519_v3, 0.0  ;;  %v9524_v3 = vmax.f32 %v7315_v63, 0.0 }
 0x28b   : > { %1807 = vadd.xlane.f32.xlu1 %v1806_v2  ;;  %v1824_v2 = vsel %vm1784_vm7, %v9520_v8, 0.0  ;;  %v9525_v8 = vmax.f32 %v7329_v27, 0.0 }
 0x28f   : > { %1813 = vadd.xlane.f32.xlu1 %v1812_v4  ;;  %v1830_v4 = vsel %vm1784_vm7, %v9521_v19, 0.0  ;;  %v9527_v19 = vmax.f32 %v7342_v54, 0.0 }
 0x293   : > { %1819 = vadd.xlane.f32.xlu1 %v1818_v35  ;;  %v1836_v35 = vsel %vm1784_vm7, %v9522_v44, 0.0  ;;  %v9529_v44 = vmax.f32 %v7352_v22, 0.0 }
 0x297   : > { %1825 = vadd.xlane.f32.xlu1 %v1824_v2  ;;  %v1842_v2 = vsel %vm1784_vm7, %v9523_v56, 0.0  ;;  %v9530_v56 = vmax.f32 %v7362_v37, 0.0 }
 0x29b   : > { %1831 = vadd.xlane.f32.xlu1 %v1830_v4  ;;  %v1848_v4 = vsel %vm1784_vm7, %v9524_v3, 0.0  ;;  %v1872_v3 = vsel %vm1784_vm7, %v9530_v56, 0.0 }
 0x29f   : > { %1837 = vadd.xlane.f32.xlu1 %v1836_v35  ;;  %v1854_v35 = vsel %vm1784_vm7, %v9525_v8, 0.0 }
 0x2a3   : > { %1843 = vadd.xlane.f32.xlu1 %v1842_v2  ;;  %v1860_v2 = vsel %vm1784_vm7, %v9527_v19, 0.0 }
 0x2a7   : > { %1849 = vadd.xlane.f32.xlu1 %v1848_v4  ;;  %v1866_v4 = vsel %vm1784_vm7, %v9529_v44, 0.0 }
 0x2ab   : > { %1855 = vadd.xlane.f32.xlu1 %v1854_v35 }
 0x2af   : > { %1861 = vadd.xlane.f32.xlu1 %v1860_v2 }
 0x2b3   : > { %1867 = vadd.xlane.f32.xlu1 %v1866_v4 }
 0x2b7   : > { %1873 = vadd.xlane.f32.xlu1 %v1872_v3 }
 0x2bc   : > { %v1787_v35 = vpop.xlane.xlu0 %1786 }
 0x2bd   : > { %v1882_v8 = vmul.f32 0.03125, %v1787_v35 }
 0x2bf   : > { %v7443_v49 = vsub.f32 %v1752_v11, %v1882_v8  ;;  %v4949_v11 = vld [vmem:[%s9389_s5 + $0x28] sm:$0xff] }
 0x2c0   : > { %v1790_v19 = vpop.xlane.xlu0 %1789 }
 0x2c1   : > { %v1883_v2 = vmul.f32 0.03125, %v1790_v19  ;;  %v1946_v51 = vmul.f32 %v7443_v49, %v7443_v49 }
 0x2c3   : > { %v7449_v44 = vsub.f32 %v1753_v12, %v1883_v2  ;;  %v1978_v4 = vsel %vm1784_vm7, %v1946_v51, 0.0  ;;  %v5426_v12 = vpack.c.bf16 %v4949_v11, %v4948_v9  ;;  %v4951_v51 = vld [vmem:[%s9389_s5 + $0x38] sm:$0xff] }
 0x2c4   : > { %1979 = vadd.xlane.f32.xlu1 %v1978_v4  ;;  %v5430_v8 = vpack.c.bf16 %v4951_v51, %v4950_v42  ;;  %v1793_v19 = vpop.xlane.xlu0 %1792 }
 0x2c5   : > { %v1947_v3 = vmul.f32 %v7449_v44, %v7449_v44  ;;  %5427 = vmatprep.subr.bf16.mxu0 %v5426_v12 }
 0x2c6   : > { %5429 = vmatpush3.bf16.msra.mxu0 %v5426_v12 }
 0x2c7   : > { %v1981_v35 = vsel %vm1784_vm7, %v1947_v3, 0.0  ;;  %5431 = vmatprep.subr.bf16.mxu0 %v5430_v8 }
 0x2c8   : > { %1982 = vadd.xlane.f32.xlu1 %v1981_v35  ;;  %v1799_v2 = vpop.xlane.xlu0 %1798  ;;  %v1884_v35 = vmul.f32 0.03125, %v1793_v19 }
 0x2c9   : > { %v1886_v11 = vmul.f32 0.03125, %v1799_v2 }
 0x2ca   : > { %5433 = vmatpush3.bf16.msra.mxu0 %v5430_v8  ;;  %v7469_v9 = vsub.f32 %v9708_v30, %v1884_v35 }
 0x2cc   : > { %v1805_v4 = vpop.xlane.xlu0 %1804  ;;  %v1948_v19 = vmul.f32 %v7469_v9, %v7469_v9 }
 0x2cd   : > { %v1888_v30 = vmul.f32 0.03125, %v1805_v4 }
 0x2ce   : > { %v1984_v47 = vsel %vm1784_vm7, %v1948_v19, 0.0 }
 0x2d0   : > { %v1811_v3 = vpop.xlane.xlu0 %1810 }
 0x2d4   : > { %v1817_v56 = vpop.xlane.xlu0 %1816 }
 0x2d8   : > { %v1823_v51 = vpop.xlane.xlu0 %1822 }
 0x2dc   : > { %v1829_v4 = vpop.xlane.xlu0 %1828 }
 0x30c   : > { %v1880_v7 = vpop.xlane.xlu1 %1879 }
 0x30d   : > { %v1913_v32 = vmul.f32 0.03125, %v1880_v7  ;;  %v9710_v7 = vmax.f32 %v7245_v24, 0.0  ;;  %v9712_v24 = vmax.f32 %v7253_v41, 0.0  ;;  %v9714_v41 = vmax.f32 %v7261_v55, 0.0 }
 0x30f   : > { %v7473_v42 = vsub.f32 %v9709_v46, %v1913_v32  ;;  %v7481_v48 = vsub.f32 %v9710_v7, %v1886_v11  ;;  %v7493_v11 = vsub.f32 %v9712_v24, %v1888_v30 }
 0x310   : > { %v1796_v12 = vpop.xlane.xlu1 %1795 }
 0x311   : > { %v1885_v8 = vmul.f32 0.03125, %v1796_v12  ;;  %v1977_v21 = vmul.f32 %v7473_v42, %v7473_v42  ;;  %v1890_v12 = vmul.f32 0.03125, %v1811_v3  ;;  %v1950_v7 = vmul.f32 %v7481_v48, %v7481_v48 }
 0x313   : > { %v7485_v2 = vsub.f32 %v9711_v15, %v1885_v8  ;;  %v2071_v46 = vsel %vm1784_vm7, %v1977_v21, 0.0  ;;  %v7506_v30 = vsub.f32 %v9714_v41, %v1890_v12 }
 0x314   : > { %v1802_v32 = vpop.xlane.xlu1 %1801  ;;  %2072 = vadd.xlane.f32.xlu0 %v2071_v46  ;;  %v1892_v46 = vmul.f32 0.03125, %v1817_v56  ;;  %v9716_v56 = vmax.f32 %v7269_v52, 0.0 }
 0x315   : > { %v1887_v60 = vmul.f32 0.03125, %v1802_v32  ;;  %v1949_v35 = vmul.f32 %v7485_v2, %v7485_v2  ;;  %v1954_v12 = vmul.f32 %v7506_v30, %v7506_v30 }
 0x316   : > { %v7520_v57 = vsub.f32 %v9716_v56, %v1892_v46 }
 0x317   : > { %v7497_v8 = vsub.f32 %v9713_v25, %v1887_v60  ;;  %v1987_v21 = vsel %vm1784_vm7, %v1949_v35, 0.0  ;;  %v1990_v35 = vsel %vm1784_vm7, %v1950_v7, 0.0  ;;  %v1835_v25 = vpop.xlane.xlu0 %1834  ;;  %v9717_v7 = vmax.f32 %v7258_v10, 0.0 }
 0x318   : > { %1988 = vadd.xlane.f32.xlu1 %v1987_v21  ;;  %v1808_v15 = vpop.xlane.xlu1 %1807  ;;  %1985 = vadd.xlane.f32.xlu0 %v1984_v47  ;;  %v1952_v47 = vmul.f32 %v7493_v11, %v7493_v11  ;;  %v2002_v46 = vsel %vm1784_vm7, %v1954_v12, 0.0  ;;  %v9718_v10 = vmax.f32 %v7278_v33, 0.0 }
 0x319   : > { %v1889_v3 = vmul.f32 0.03125, %v1808_v15  ;;  %v1951_v19 = vmul.f32 %v7497_v8, %v7497_v8  ;;  %v1894_v15 = vmul.f32 0.03125, %v1823_v51  ;;  %v1956_v51 = vmul.f32 %v7520_v57, %v7520_v57 }
 0x31a   : > { %v1996_v41 = vsel %vm1784_vm7, %v1952_v47, 0.0  ;;  %v9719_v47 = vmax.f32 %v7266_v1, 0.0  ;;  %v9721_v1 = vmax.f32 %v7274_v23, 0.0 }
 0x31b   : > { %v7510_v32 = vsub.f32 %v9715_v45, %v1889_v3  ;;  %v1993_v60 = vsel %vm1784_vm7, %v1951_v19, 0.0  ;;  %v2008_v33 = vsel %vm1784_vm7, %v1956_v51, 0.0 }
 0x31c   : > { %1994 = vadd.xlane.f32.xlu1 %v1993_v60  ;;  %v1814_v24 = vpop.xlane.xlu1 %1813  ;;  %1991 = vadd.xlane.f32.xlu0 %v1990_v35  ;;  %v7537_v35 = vsub.f32 %v9718_v10, %v1894_v15  ;;  %v9720_v15 = vmax.f32 %v7289_v38, 0.0  ;;  %v9722_v38 = vmax.f32 %v7299_v20, 0.0 }
 0x31d   : > { %v1891_v21 = vmul.f32 0.03125, %v1814_v24  ;;  %v1953_v55 = vmul.f32 %v7510_v32, %v7510_v32  ;;  %v1896_v24 = vmul.f32 0.03125, %v1829_v4 }
 0x31f   : > { %v7526_v3 = vsub.f32 %v9717_v7, %v1891_v21  ;;  %v1999_v19 = vsel %vm1784_vm7, %v1953_v55, 0.0  ;;  %v1841_v21 = vpop.xlane.xlu0 %1840  ;;  %v7549_v4 = vsub.f32 %v9720_v15, %v1896_v24 }
 0x320   : > { %2000 = vadd.xlane.f32.xlu1 %v1999_v19  ;;  %v1820_v45 = vpop.xlane.xlu1 %1819  ;;  %1997 = vadd.xlane.f32.xlu0 %v1996_v41  ;;  %v1898_v41 = vmul.f32 0.03125, %v1835_v25  ;;  %v1900_v23 = vmul.f32 0.03125, %v1841_v21  ;;  %v9724_v21 = vmax.f32 %v7309_v59, 0.0 }
 0x321   : > { %v1893_v60 = vmul.f32 0.03125, %v1820_v45  ;;  %v1955_v52 = vmul.f32 %v7526_v3, %v7526_v3 }
 0x322   : > { %v7562_v24 = vsub.f32 %v9722_v38, %v1898_v41  ;;  %v7576_v41 = vsub.f32 %v9724_v21, %v1900_v23 }
 0x323   : > { %v7541_v55 = vsub.f32 %v9719_v47, %v1893_v60  ;;  %v2005_v56 = vsel %vm1784_vm7, %v1955_v52, 0.0  ;;  %v1958_v52 = vmul.f32 %v7537_v35, %v7537_v35  ;;  %v1847_v10 = vpop.xlane.xlu0 %1846  ;;  %v9723_v47 = vmax.f32 %v7286_v34, 0.0 }
 0x324   : > { %2006 = vadd.xlane.f32.xlu1 %v2005_v56  ;;  %v1826_v7 = vpop.xlane.xlu1 %1825  ;;  %2003 = vadd.xlane.f32.xlu0 %v2002_v46  ;;  %v1962_v34 = vmul.f32 %v7562_v24, %v7562_v24 }
 0x325   : > { %v1895_v19 = vmul.f32 0.03125, %v1826_v7  ;;  %v1957_v12 = vmul.f32 %v7541_v55, %v7541_v55 }
 0x326   : > { %v2026_v23 = vsel %vm1784_vm7, %v1962_v34, 0.0 }
 0x327   : > { %v7553_v45 = vsub.f32 %v9721_v1, %v1895_v19  ;;  %v2011_v60 = vsel %vm1784_vm7, %v1957_v12, 0.0  ;;  %v2014_v19 = vsel %vm1784_vm7, %v1958_v52, 0.0  ;;  %v1960_v12 = vmul.f32 %v7549_v4, %v7549_v4 }
 0x328   : > { %2012 = vadd.xlane.f32.xlu1 %v2011_v60  ;;  %v1832_v46 = vpop.xlane.xlu1 %1831  ;;  %2009 = vadd.xlane.f32.xlu0 %v2008_v33  ;;  %v1902_v1 = vmul.f32 0.03125, %v1847_v10  ;;  %v1853_v60 = vpop.xlane.xlu0 %1852  ;;  %v9725_v52 = vmax.f32 %v7295_v6, 0.0  ;;  %v1964_v10 = vmul.f32 %v7576_v41, %v7576_v41  ;;  %v9726_v6 = vmax.f32 %v7319_v58, 0.0 }
 0x329   : > { %v1897_v25 = vmul.f32 0.03125, %v1832_v46  ;;  %v1959_v51 = vmul.f32 %v7553_v45, %v7553_v45 }
 0x32a   : > { %v2032_v58 = vsel %vm1784_vm7, %v1964_v10, 0.0 }
 0x32b   : > { %v7566_v56 = vsub.f32 %v9723_v47, %v1897_v25  ;;  %v2017_v7 = vsel %vm1784_vm7, %v1959_v51, 0.0  ;;  %v2020_v51 = vsel %vm1784_vm7, %v1960_v12, 0.0  ;;  %v9727_v12 = vmax.f32 %v7305_v26, 0.0 }
 0x32c   : > { %2018 = vadd.xlane.f32.xlu1 %v2017_v7  ;;  %v1838_v33 = vpop.xlane.xlu1 %1837  ;;  %2015 = vadd.xlane.f32.xlu0 %v2014_v19  ;;  %v7593_v7 = vsub.f32 %v9726_v6, %v1902_v1  ;;  %v1904_v19 = vmul.f32 0.03125, %v1853_v60  ;;  %v9728_v1 = vmax.f32 %v7332_v40, 0.0  ;;  %v9729_v26 = vmax.f32 %v7315_v63, 0.0 }
 0x32d   : > { %v1899_v15 = vmul.f32 0.03125, %v1838_v33  ;;  %v1961_v20 = vmul.f32 %v7566_v56, %v7566_v56  ;;  %v1859_v33 = vpop.xlane.xlu0 %1858  ;;  %v9730_v40 = vmax.f32 %v7345_v29, 0.0  ;;  %v9731_v63 = vmax.f32 %v7329_v27, 0.0  ;;  %v2499_v29 = vld [vmem:[%s9389_s5 + $0x8] sm:$0xff] }
 0x32e   : > { %v7605_v60 = vsub.f32 %v9728_v1, %v1904_v19 }
 0x32f   : > { %v7582_v46 = vsub.f32 %v9725_v52, %v1899_v15  ;;  %v2023_v25 = vsel %vm1784_vm7, %v1961_v20, 0.0 }
 0x330   : > { %2024 = vadd.xlane.f32.xlu1 %v2023_v25  ;;  %v1844_v38 = vpop.xlane.xlu1 %1843  ;;  %2021 = vadd.xlane.f32.xlu0 %v2020_v51  ;;  %v1906_v25 = vmul.f32 0.03125, %v1859_v33 }
 0x331   : > { %v1901_v47 = vmul.f32 0.03125, %v1844_v38  ;;  %v1963_v59 = vmul.f32 %v7582_v46, %v7582_v46  ;;  %v1865_v51 = vpop.xlane.xlu0 %1864 }
 0x332   : > { %v7618_v19 = vsub.f32 %v9730_v40, %v1906_v25  ;;  %v1908_v33 = vmul.f32 0.03125, %v1865_v51 }
 0x333   : > { %v7597_v15 = vsub.f32 %v9727_v12, %v1901_v47  ;;  %v2029_v20 = vsel %vm1784_vm7, %v1963_v59, 0.0  ;;  %v1966_v59 = vmul.f32 %v7593_v7, %v7593_v7 }
 0x334   : > { %2030 = vadd.xlane.f32.xlu1 %v2029_v20  ;;  %v1850_v21 = vpop.xlane.xlu1 %1849  ;;  %2027 = vadd.xlane.f32.xlu0 %v2026_v23 }
 0x335   : > { %v1903_v52 = vmul.f32 0.03125, %v1850_v21  ;;  %v1965_v34 = vmul.f32 %v7597_v15, %v7597_v15  ;;  %v2038_v21 = vsel %vm1784_vm7, %v1966_v59, 0.0  ;;  %v1871_v25 = vpop.xlane.xlu0 %1870  ;;  %v1970_v59 = vmul.f32 %v7618_v19, %v7618_v19 }
 0x337   : > { %v7609_v38 = vsub.f32 %v9729_v26, %v1903_v52  ;;  %v2035_v47 = vsel %vm1784_vm7, %v1965_v34, 0.0  ;;  %v1968_v52 = vmul.f32 %v7605_v60, %v7605_v60  ;;  %v2498_v34 = vld [vmem:[%s9389_s5] sm:$0xff]  ;;  %v9732_v26 = vmax.f32 %v7355_v43, 0.0  ;;  %v2500_v43 = vld [vmem:[%s9389_s5 + $0x10] sm:$0xff] }
 0x338   : > { %2036 = vadd.xlane.f32.xlu1 %v2035_v47  ;;  %v1856_v23 = vpop.xlane.xlu1 %1855  ;;  %2033 = vadd.xlane.f32.xlu0 %v2032_v58  ;;  %v5434_v58 = vpack.c.bf16 %v2499_v29, %v2498_v34 }
 0x339   : > { %v1905_v6 = vmul.f32 0.03125, %v1856_v23  ;;  %v1967_v10 = vmul.f32 %v7609_v38, %v7609_v38  ;;  %v7638_v47 = vsub.f32 %v9732_v26, %v1908_v33  ;;  %v1910_v23 = vmul.f32 0.03125, %v1871_v25  ;;  %v2501_v33 = vld [vmem:[%s9389_s5 + $0x18] sm:$0xff] }
 0x33a   : > { %5435 = vmatprep.subr.bf16.mxu1 %v5434_v58 }
 0x33b   : > { %v7622_v12 = vsub.f32 %v9731_v63, %v1905_v6  ;;  %v2041_v20 = vsel %vm1784_vm7, %v1967_v10, 0.0  ;;  %v9733_v6 = vmax.f32 %v7342_v54, 0.0  ;;  %v2044_v63 = vsel %vm1784_vm7, %v1968_v52, 0.0  ;;  %5437 = vmatpush3.bf16.msra.mxu1 %v5434_v58 }
 0x33c   : > { %2042 = vadd.xlane.f32.xlu1 %v2041_v20  ;;  %v1862_v27 = vpop.xlane.xlu1 %1861  ;;  %2039 = vadd.xlane.f32.xlu0 %v2038_v21  ;;  %v1877_v20 = vpop.xlane.xlu0 %1876  ;;  %v5438_v54 = vpack.c.bf16 %v2501_v33, %v2500_v43  ;;  %v2050_v52 = vsel %vm1784_vm7, %v1970_v59, 0.0  ;;  %v1972_v25 = vmul.f32 %v7638_v47, %v7638_v47  ;;  %v5016_v59 = vld [vmem:[%s9389_s5 + $0x40] sm:$0xff]  ;;  %v9738_v33 = vmax.f32 %v7375_v62, 0.0 }
 0x33d   : > { %v1907_v1 = vmul.f32 0.03125, %v1862_v27  ;;  %v1969_v51 = vmul.f32 %v7622_v12, %v7622_v12  ;;  %v9734_v27 = vmax.f32 %v7365_v0, 0.0 }
 0x33e   : > { %5439 = vmatprep.subr.bf16.mxu1 %v5438_v54  ;;  %v2056_v43 = vsel %vm1784_vm7, %v1972_v25, 0.0 }
 0x33f   : > { %v7644_v10 = vsub.f32 %v9733_v6, %v1907_v1  ;;  %v2047_v40 = vsel %vm1784_vm7, %v1969_v51, 0.0  ;;  %v7661_v58 = vsub.f32 %v9734_v27, %v1910_v23  ;;  %v1912_v1 = vmul.f32 0.03125, %v1877_v20  ;;  %5441 = vmatpush3.bf16.msra.mxu1 %v5438_v54 }
 0x340   : > { %2048 = vadd.xlane.f32.xlu1 %v2047_v40  ;;  %v1868_v21 = vpop.xlane.xlu1 %1867  ;;  %2045 = vadd.xlane.f32.xlu0 %v2044_v63  ;;  %v9736_v51 = vmax.f32 %v7352_v22, 0.0  ;;  %v5017_v40 = vld [vmem:[%s9389_s5 + $0x48] sm:$0xff] }
 0x341   : > { %v1909_v34 = vmul.f32 0.03125, %v1868_v21  ;;  %v1971_v29 = vmul.f32 %v7644_v10, %v7644_v10  ;;  %9735 = vst [vmem:[#allocation33_spill] sm:$0xff] %v7661_v58  ;;  %v7674_v23 = vpack.c.bf16 %v5017_v40, %v5016_v59  ;;  %v7682_v20 = vsub.f32 %v9738_v33, %v1912_v1 }
 0x342   : > { %v9740_v21 = vmax.f32 %v7362_v37, 0.0 }
 0x343   : > { %v7665_v26 = vsub.f32 %v9736_v51, %v1909_v34  ;;  %v2053_v6 = vsel %vm1784_vm7, %v1971_v29, 0.0  ;;  %5443 = vmatprep.subr.bf16.mxu1 %v7674_v23  ;;  %9739 = vst [vmem:[#allocation37_spill] sm:$0xff] %v7682_v20  ;;  %v1974_v29 = vmul.f32 %v7661_v58, %v7661_v58  ;;  %v1976_v27 = vmul.f32 %v7682_v20, %v7682_v20 }
 0x344   : > { %2054 = vadd.xlane.f32.xlu1 %v2053_v6  ;;  %v1874_v0 = vpop.xlane.xlu1 %1873  ;;  %2051 = vadd.xlane.f32.xlu0 %v2050_v52 }
 0x345   : > { %9737 = vst [vmem:[#allocation36_spill] sm:$0xff] %v7665_v26  ;;  %v1911_v63 = vmul.f32 0.03125, %v1874_v0  ;;  %v1973_v22 = vmul.f32 %v7665_v26, %v7665_v26  ;;  %v2062_v62 = vsel %vm1784_vm7, %v1974_v29, 0.0  ;;  %v2068_v37 = vsel %vm1784_vm7, %v1976_v27, 0.0 }
 0x347   : > { %v7686_v54 = vsub.f32 %v9740_v21, %v1911_v63  ;;  %v2059_v34 = vsel %vm1784_vm7, %v1973_v22, 0.0  ;;  %v484_v63 = vld [vmem:[%s9390_s6] sm:$0x1f]  ;;  %v7702_v22 = vsub.s32 1, %v9703_v5 }
 0x348   : > { %2060 = vadd.xlane.f32.xlu1 %v2059_v34  ;;  %2057 = vadd.xlane.f32.xlu0 %v2056_v43  ;;  %v7705_v43 = vrot.slane %v484_v63, %v7225_v17 }
 0x349   : > { %9741 = vst [vmem:[#allocation62_spill] sm:$0xff] %v7686_v54  ;;  %v1975_v52 = vmul.f32 %v7686_v54, %v7686_v54  ;;  %9742 = vst [vmem:[#allocation70_spill] sm:$0xff] %v7702_v22  ;;  %v7708_v21 = vrot.slane %v484_v63, %v7702_v22 }
 0x34b   : > { %v2065_v25 = vsel %vm1784_vm7, %v1975_v52, 0.0 }
 0x34c   : > { %2066 = vadd.xlane.f32.xlu1 %v2065_v25  ;;  %2063 = vadd.xlane.f32.xlu0 %v2062_v62 }
 0x350   : > { %2069 = vadd.xlane.f32.xlu0 %v2068_v37  ;;  %v9743_v37 = vld [vmem:[#allocation13_spill] sm:$0xff] }
 0x351   : > { %v1980_v1 = vpop.xlane.xlu1 %1979 }
 0x352   : > { %v2074_v51 = vmul.f32 0.03125, %v1980_v1 }
 0x354   : > { %v2106_v6 = vadd.f32 0.0001, %v2074_v51 }
 0x355   : > { %v1983_v59 = vpop.xlane.xlu1 %1982 }
 0x356   : > { %5721 = vrsqrt.f32 %v2106_v6  ;;  %v2075_v40 = vmul.f32 0.03125, %v1983_v59  ;;  %v9745_v6 = vld [vmem:[#allocation12_spill] sm:$0xff] }
 0x358   : > { %v2107_v0 = vadd.f32 0.0001, %v2075_v40 }
 0x35a   : > { %5723 = vrsqrt.f32 %v2107_v0 }
 0x360   : > { %v5722_v33 = vpop.eup %5721 }
 0x361   : > { %v2170_v34 = vmul.f32 %v5722_v33, %v7443_v49 }
 0x363   : > { %v2206_v29 = vmul.f32 %v7705_v43, %v2170_v34 }
 0x364   : > { %v5724_v52 = vpop.eup %5723 }
 0x365   : > { %v2171_v25 = vmul.f32 %v5724_v52, %v7449_v44  ;;  %v2242_v62 = vadd.f32 %v7708_v21, %v2206_v29 }
 0x367   : > { %v2207_v27 = vmul.f32 %v7705_v43, %v2171_v25  ;;  %v7716_v1 = vmul.f32 %v9743_v37, %v2242_v62 }
 0x369   : > { %9744 = vst [vmem:[#allocation66_spill] sm:$0xff] %v7716_v1  ;;  %v2243_v51 = vadd.f32 %v7708_v21, %v2207_v27  ;;  %5262 = vmatprep.mubr.msk.f32.mxu0 %vm1784_vm7, %v7716_v1  ;;  %v9550_v49 = vrot.slane %v7716_v1, 1  ;;  %v9544_v44 = vrot.slane %v7716_v1, 7 }
 0x36b   : > { %v7722_v59 = vmul.f32 %v9745_v6, %v2243_v51 }
 0x36d   : > { %5263 = vmatmul.mubr.msk.f32.vlgmr.msra.gmra.mrb[32].mxu0 %vm1784_vm7, %v7722_v59  ;;  %v9543_v40 = vrot.slane %v7722_v59, 7  ;;  %v9551_v0 = vrot.slane %v7722_v59, 1 }
 0x36f   : > { %v7736_v63 = vsel %vm743_vm2, %v9544_v44, %v9543_v40  ;;  %v7744_v33 = vsel %vm920_vm3, %v9550_v49, %v9551_v0 }
 0x370   : > { %9746 = vst [vmem:[#allocation73_spill] sm:$0xff] %v7744_v33 }
 0x3a1   : > { %v2073_v34 = vpop.xlane.xlu0 %2072 }
 0x3a2   : > { %v2105_v29 = vmul.f32 0.03125, %v2073_v34 }
 0x3a4   : > { %v2137_v52 = vadd.f32 0.0001, %v2105_v29 }
 0x3a5   : > { %v1989_v25 = vpop.xlane.xlu1 %1988  ;;  %v1986_v62 = vpop.xlane.xlu0 %1985 }
 0x3a6   : > { %5725 = vrsqrt.f32 %v2137_v52  ;;  %v2077_v27 = vmul.f32 0.03125, %v1989_v25  ;;  %v2076_v51 = vmul.f32 0.03125, %v1986_v62 }
 0x3a8   : > { %v2109_v37 = vadd.f32 0.0001, %v2077_v27  ;;  %v2108_v6 = vadd.f32 0.0001, %v2076_v51 }
 0x3a9   : > { %v1995_v40 = vpop.xlane.xlu1 %1994  ;;  %v1992_v44 = vpop.xlane.xlu0 %1991 }
 0x3aa   : > { %5727 = vrsqrt.f32 %v2109_v37  ;;  %v2079_v22 = vmul.f32 0.03125, %v1995_v40  ;;  %v2078_v17 = vmul.f32 0.03125, %v1992_v44 }
 0x3ab   : > { %5729 = vrsqrt.f32 %v2108_v6 }
 0x3ac   : > { %v2111_v20 = vadd.f32 0.0001, %v2079_v22  ;;  %v2110_v54 = vadd.f32 0.0001, %v2078_v17 }
 0x3ad   : > { %v2001_v49 = vpop.xlane.xlu1 %2000  ;;  %v1998_v0 = vpop.xlane.xlu0 %1997 }
 0x3ae   : > { %5731 = vrsqrt.f32 %v2111_v20  ;;  %v2080_v34 = vmul.f32 0.03125, %v1998_v0  ;;  %v2081_v29 = vmul.f32 0.03125, %v2001_v49 }
 0x3af   : > { %5733 = vrsqrt.f32 %v2110_v54 }
 0x3b0   : > { %v5726_v33 = vpop.eup %5725  ;;  %v2112_v52 = vadd.f32 0.0001, %v2080_v34  ;;  %v2113_v37 = vadd.f32 0.0001, %v2081_v29 }
 0x3b1   : > { %v2201_v25 = vmul.f32 %v5726_v33, %v7473_v42  ;;  %v2007_v62 = vpop.xlane.xlu1 %2006  ;;  %v2004_v27 = vpop.xlane.xlu0 %2003 }
 0x3b2   : > { %v2083_v51 = vmul.f32 0.03125, %v2007_v62  ;;  %v2082_v58 = vmul.f32 0.03125, %v2004_v27  ;;  %5735 = vrsqrt.f32 %v2112_v52  ;;  %v9747_v52 = vld [vmem:[#allocation44_spill] sm:$0xff] }
 0x3b3   : > { %v2237_v6 = vmul.f32 %v7705_v43, %v2201_v25  ;;  %5737 = vrsqrt.f32 %v2113_v37 }
 0x3b4   : > { %v5728_v22 = vpop.eup %5727  ;;  %v2114_v17 = vadd.f32 0.0001, %v2082_v58  ;;  %v2115_v0 = vadd.f32 0.0001, %v2083_v51  ;;  %v5018_v58 = vld [vmem:[%s9389_s5 + $0x50] sm:$0xff] }
 0x3b5   : > { %v5730_v44 = vpop.eup %5729  ;;  %v2013_v40 = vpop.xlane.xlu1 %2012  ;;  %v2173_v54 = vmul.f32 %v5728_v22, %v7485_v2  ;;  %v2273_v49 = vadd.f32 %v7708_v21, %v2237_v6  ;;  %v5019_v2 = vld [vmem:[%s9389_s5 + $0x58] sm:$0xff] }
 0x3b6   : > { %v2010_v20 = vpop.xlane.xlu0 %2009  ;;  %v2172_v42 = vmul.f32 %v5730_v44, %v7469_v9  ;;  %v2085_v33 = vmul.f32 0.03125, %v2013_v40  ;;  %5739 = vrsqrt.f32 %v2114_v17  ;;  %v9750_v17 = vrot.slane %v7716_v1, 7 }
 0x3b7   : > { %v2084_v34 = vmul.f32 0.03125, %v2010_v20  ;;  %v2209_v29 = vmul.f32 %v7705_v43, %v2173_v54  ;;  %v7753_v62 = vmul.f32 %v9747_v52, %v2273_v49  ;;  %5741 = vrsqrt.f32 %v2115_v0  ;;  %v9749_v52 = vld [vmem:[#allocation14_spill] sm:$0xff] }
 0x3b8   : > { %v5732_v25 = vpop.eup %5731  ;;  %v2208_v9 = vmul.f32 %v7705_v43, %v2172_v42  ;;  %v5446_v54 = vpack.c.bf16 %v5019_v2, %v5018_v58  ;;  %v2117_v49 = vadd.f32 0.0001, %v2085_v33 }
 0x3b9   : > { %9748 = vst [vmem:[#allocation49_spill] sm:$0xff] %v7753_v62  ;;  %v2116_v27 = vadd.f32 0.0001, %v2084_v34  ;;  %v5734_v51 = vpop.eup %5733  ;;  %v2019_v37 = vpop.xlane.xlu1 %2018  ;;  %v2245_v22 = vadd.f32 %v7708_v21, %v2209_v29  ;;  %v9554_v44 = vrot.slane %v7753_v62, 7  ;;  %v2175_v40 = vmul.f32 %v5732_v25, %v7497_v8  ;;  %v9751_v8 = vld [vmem:[#allocation15_spill] sm:$0xff] }
 0x3ba   : > { %v2016_v6 = vpop.xlane.xlu0 %2015  ;;  %v2244_v20 = vadd.f32 %v7708_v21, %v2208_v9  ;;  %v2174_v42 = vmul.f32 %v5734_v51, %v7481_v48 }
 0x3bb   : > { %v7767_v26 = vmul.f32 %v9749_v52, %v2245_v22  ;;  %v2369_v34 = vsel %vm743_vm2, %v9554_v44, %v9750_v17  ;;  %5743 = vrsqrt.f32 %v2116_v27  ;;  %v2086_v29 = vmul.f32 0.03125, %v2016_v6 }
 0x3bc   : > { %v7777_v0 = vmul.f32 %v9751_v8, %v2244_v20  ;;  %v2370_v58 = vmul.f32 %v6985_v50, %v2369_v34  ;;  %v5736_v33 = vpop.eup %5735  ;;  %v2371_v22 = vmul.f32 %v6982_v53, %v7736_v63  ;;  %v2210_v52 = vmul.f32 %v7705_v43, %v2174_v42 }
 0x3bd   : > { %v2025_v2 = vpop.xlane.xlu1 %2024  ;;  %v2309_v9 = vrot.slane %v7767_v26, 7  ;;  %v2211_v17 = vmul.f32 %v7705_v43, %v2175_v40  ;;  %5745 = vrsqrt.f32 %v2117_v49  ;;  %v2087_v27 = vmul.f32 0.03125, %v2019_v37  ;;  %v5738_v34 = vpop.eup %5737 }
 0x3be   : > { %v2022_v25 = vpop.xlane.xlu0 %2021  ;;  %v2308_v48 = vrot.slane %v7777_v0, 7  ;;  %5265 = vmatprep.mubr.msk.f32.mxu0 %vm1784_vm7, %v7777_v0  ;;  %5318 = vmatprep.mubr.msk.f32.mxu1 %vm1784_vm7, %v2370_v58  ;;  %v2246_v63 = vadd.f32 %v7708_v21, %v2210_v52  ;;  %v2118_v6 = vadd.f32 0.0001, %v2086_v29  ;;  %v9752_v40 = vrot.slane %v7722_v59, 7  ;;  %v9753_v58 = vld [vmem:[#allocation16_spill] sm:$0xff] }
 0x3bf   : > { %5266 = vmatmul.mubr.msk.f32.gmra.mrb[34].mxu0 %vm1784_vm7, %v7767_v26  ;;  %5319 = vmatmul.mubr.msk.f32.vlgmr.msra.gmra.mrb[0].mxu1 %vm1784_vm7, %v2371_v22  ;;  %v2247_v51 = vadd.f32 %v7708_v21, %v2211_v17  ;;  %v2176_v49 = vmul.f32 %v5736_v33, %v7493_v11  ;;  %v9754_v17 = vld [vmem:[#allocation17_spill] sm:$0xff]  ;;  %v2089_v8 = vmul.f32 0.03125, %v2025_v2 }
 0x3c0   : > { %5445 = vmatpush3.bf16.msra.mxu1 %v7674_v23  ;;  %v2367_v20 = vsel %vm743_vm2, %v9752_v40, %v2308_v48  ;;  %v2366_v37 = vsel %vm743_vm2, %v2308_v48, %v2309_v9  ;;  %v7803_v22 = vmul.f32 %v9753_v58, %v2246_v63  ;;  %v5740_v44 = vpop.eup %5739  ;;  %v2088_v40 = vmul.f32 0.03125, %v2022_v25 }
 0x3c1   : > { %v2031_v42 = vpop.xlane.xlu1 %2030  ;;  %v7806_v29 = vmul.f32 %v9754_v17, %v2247_v51  ;;  %v2372_v23 = vmul.f32 %v6995_v28, %v2367_v20  ;;  %5447 = vmatprep.subr.bf16.mxu1 %v5446_v54  ;;  %v2373_v1 = vmul.f32 %v6992_v13, %v2366_v37  ;;  %v5742_v33 = vpop.eup %5741  ;;  %v2119_v63 = vadd.f32 0.0001, %v2087_v27 }
 0x3c2   : > { %v2028_v52 = vpop.xlane.xlu0 %2027  ;;  %v2310_v48 = vrot.slane %v7803_v22, 7  ;;  %5268 = vmatprep.mubr.msk.f32.mxu0 %vm1784_vm7, %v7803_v22  ;;  %5747 = vrsqrt.f32 %v2118_v6  ;;  %v2091_v51 = vmul.f32 0.03125, %v2031_v42  ;;  %v2212_v2 = vmul.f32 %v7705_v43, %v2176_v49 }
 0x3c3   : > { %9755 = vst [vmem:[#allocation74_spill] sm:$0xff] %v7806_v29  ;;  %v2311_v11 = vrot.slane %v7806_v29, 7  ;;  %5321 = vmatprep.mubr.msk.f32.mxu1 %vm1784_vm7, %v2372_v23  ;;  %5269 = vmatmul.mubr.msk.f32.gmra.mrb[36].mxu0 %vm1784_vm7, %v7806_v29  ;;  %v2177_v37 = vmul.f32 %v5738_v34, %v7510_v32  ;;  %v2178_v27 = vmul.f32 %v5740_v44, %v7506_v30  ;;  %v2121_v42 = vadd.f32 0.0001, %v2089_v8 }
 0x3c4   : > { %5322 = vmatmul.mubr.msk.f32.gmra.mrb[2].mxu1 %vm1784_vm7, %v2373_v1  ;;  %v2365_v58 = vsel %vm743_vm2, %v2309_v9, %v2310_v48  ;;  %v2120_v17 = vadd.f32 0.0001, %v2088_v40  ;;  %v2248_v1 = vadd.f32 %v7708_v21, %v2212_v2  ;;  %v2090_v62 = vmul.f32 0.03125, %v2028_v52  ;;  %v9756_v9 = vld [vmem:[#allocation19_spill] sm:$0xff] }
 0x3c5   : > { %v2037_v25 = vpop.xlane.xlu1 %2036  ;;  %v2364_v23 = vsel %vm743_vm2, %v2310_v48, %v2311_v11  ;;  %5449 = vmatpush3.bf16.msra.mxu1 %v5446_v54  ;;  %v5744_v6 = vpop.eup %5743  ;;  %v2213_v49 = vmul.f32 %v7705_v43, %v2177_v37  ;;  %v2374_v29 = vmul.f32 %v7009_v18, %v2365_v58  ;;  %5749 = vrsqrt.f32 %v2119_v63  ;;  %v9757_v37 = vld [vmem:[#allocation18_spill] sm:$0xff] }
 0x3c6   : > { %v2034_v20 = vpop.xlane.xlu0 %2033  ;;  %v2375_v32 = vmul.f32 %v7006_v36, %v2364_v23  ;;  %v7830_v34 = vmul.f32 %v9756_v9, %v2248_v1  ;;  %v2214_v48 = vmul.f32 %v7705_v43, %v2178_v27  ;;  %v2123_v44 = vadd.f32 0.0001, %v2091_v51 }
 0x3c7   : > { %v5746_v30 = vpop.eup %5745  ;;  %v2249_v54 = vadd.f32 %v7708_v21, %v2213_v49  ;;  %5324 = vmatprep.mubr.msk.f32.mxu1 %vm1784_vm7, %v2374_v29  ;;  %v2179_v40 = vmul.f32 %v5742_v33, %v7526_v3  ;;  %v2180_v58 = vmul.f32 %v5744_v6, %v7520_v57  ;;  %5751 = vrsqrt.f32 %v2121_v42 }
 0x3c8   : > { %v2312_v63 = vrot.slane %v7830_v34, 7  ;;  %5271 = vmatprep.mubr.msk.f32.mxu0 %vm1784_vm7, %v7830_v34  ;;  %v2092_v2 = vmul.f32 0.03125, %v2034_v20  ;;  %5325 = vmatmul.mubr.msk.f32.gmra.mrb[4].mxu1 %vm1784_vm7, %v2375_v32  ;;  %5753 = vrsqrt.f32 %v2120_v17  ;;  %v2122_v51 = vadd.f32 0.0001, %v2090_v62  ;;  %v9758_v62 = vld [vmem:[#allocation21_spill] sm:$0xff] }
 0x3c9   : > { %v2043_v8 = vpop.xlane.xlu1 %2042  ;;  %v7842_v23 = vmul.f32 %v9757_v37, %v2249_v54  ;;  %v2250_v29 = vadd.f32 %v7708_v21, %v2214_v48  ;;  %v2093_v27 = vmul.f32 0.03125, %v2037_v25  ;;  %v2215_v3 = vmul.f32 %v7705_v43, %v2179_v40 }
 0x3ca   : > { %v2040_v52 = vpop.xlane.xlu0 %2039  ;;  %v2363_v57 = vsel %vm743_vm2, %v2311_v11, %v2312_v63  ;;  %v2216_v33 = vmul.f32 %v7705_v43, %v2180_v58  ;;  %5755 = vrsqrt.f32 %v2123_v44  ;;  %v2181_v25 = vmul.f32 %v5746_v30, %v7541_v55 }
 0x3cb   : > { %v2313_v20 = vrot.slane %v7842_v23, 7  ;;  %5272 = vmatmul.mubr.msk.f32.gmra.mrb[38].mxu0 %vm1784_vm7, %v7842_v23  ;;  %v7853_v17 = vmul.f32 %v9758_v62, %v2250_v29  ;;  %v2124_v49 = vadd.f32 0.0001, %v2092_v2  ;;  %v2095_v32 = vmul.f32 0.03125, %v2043_v8  ;;  %v9759_v29 = vld [vmem:[#allocation20_spill] sm:$0xff] }
 0x3cc   : > { %v5748_v1 = vpop.eup %5747  ;;  %v2251_v11 = vadd.f32 %v7708_v21, %v2215_v3  ;;  %v2376_v48 = vmul.f32 %v7025_v61, %v2363_v57  ;;  %5757 = vrsqrt.f32 %v2122_v51  ;;  %v2094_v54 = vmul.f32 0.03125, %v2040_v52 }
 0x3cd   : > { %v2049_v6 = vpop.xlane.xlu1 %2048  ;;  %v2314_v44 = vrot.slane %v7853_v17, 7  ;;  %5274 = vmatprep.mubr.msk.f32.mxu0 %vm1784_vm7, %v7853_v17  ;;  %v2362_v40 = vsel %vm743_vm2, %v2312_v63, %v2313_v20  ;;  %v2125_v58 = vadd.f32 0.0001, %v2093_v27  ;;  %v2252_v8 = vadd.f32 %v7708_v21, %v2216_v33  ;;  %v9760_v33 = vld [vmem:[#allocation23_spill] sm:$0xff] }
 0x3ce   : > { %v2046_v42 = vpop.xlane.xlu0 %2045  ;;  %v7864_v55 = vmul.f32 %v9759_v29, %v2251_v11  ;;  %5327 = vmatprep.mubr.msk.f32.mxu1 %vm1784_vm7, %v2376_v48  ;;  %v2377_v30 = vmul.f32 %v7022_v16, %v2362_v40  ;;  %v2097_v2 = vmul.f32 0.03125, %v2049_v6  ;;  %v2217_v51 = vmul.f32 %v7705_v43, %v2181_v25 }
 0x3cf   : > { %v2361_v3 = vsel %vm743_vm2, %v2313_v20, %v2314_v44  ;;  %v2182_v57 = vmul.f32 %v5748_v1, %v7537_v35  ;;  %v5750_v27 = vpop.eup %5749  ;;  %5759 = vrsqrt.f32 %v2124_v49  ;;  %v2127_v11 = vadd.f32 0.0001, %v2095_v32 }
 0x3d0   : > { %v2315_v62 = vrot.slane %v7864_v55, 7  ;;  %5275 = vmatmul.mubr.msk.f32.gmra.mrb[40].mxu0 %vm1784_vm7, %v7864_v55  ;;  %5328 = vmatmul.mubr.msk.f32.gmra.mrb[6].mxu1 %vm1784_vm7, %v2377_v30  ;;  %v7878_v6 = vmul.f32 %v9760_v33, %v2252_v8  ;;  %v2126_v25 = vadd.f32 0.0001, %v2094_v54  ;;  %v2096_v48 = vmul.f32 0.03125, %v2046_v42  ;;  %v9761_v42 = vld [vmem:[#allocation22_spill] sm:$0xff] }
 0x3d1   : > { %v2055_v52 = vpop.xlane.xlu1 %2054  ;;  %v2253_v20 = vadd.f32 %v7708_v21, %v2217_v51  ;;  %v2378_v35 = vmul.f32 %v7041_v31, %v2361_v3  ;;  %v5752_v1 = vpop.eup %5751  ;;  %v2218_v30 = vmul.f32 %v7705_v43, %v2182_v57  ;;  %5761 = vrsqrt.f32 %v2125_v58 }
 0x3d2   : > { %v2052_v63 = vpop.xlane.xlu0 %2051  ;;  %v2316_v49 = vrot.slane %v7878_v6, 7  ;;  %5277 = vmatprep.mubr.msk.f32.mxu0 %vm1784_vm7, %v7878_v6  ;;  %v2360_v32 = vsel %vm743_vm2, %v2314_v44, %v2315_v62  ;;  %v2099_v40 = vmul.f32 0.03125, %v2055_v52  ;;  %v5754_v8 = vpop.eup %5753  ;;  %v2129_v54 = vadd.f32 0.0001, %v2097_v2 }
 0x3d3   : > { %v7889_v33 = vmul.f32 %v9761_v42, %v2253_v20  ;;  %5330 = vmatprep.mubr.msk.f32.mxu1 %vm1784_vm7, %v2378_v35  ;;  %v2379_v51 = vmul.f32 %v7038_v14, %v2360_v32  ;;  %v2254_v9 = vadd.f32 %v7708_v21, %v2218_v30  ;;  %v2098_v37 = vmul.f32 0.03125, %v2052_v63  ;;  %v9762_v63 = vld [vmem:[#allocation27_spill] sm:$0xff]  ;;  %v9772_v42 = vld [vmem:[#allocation29_spill] sm:$0xff] }
 0x3d4   : > { %v2183_v44 = vmul.f32 %v5750_v27, %v7553_v45  ;;  %v2359_v52 = vsel %vm743_vm2, %v2315_v62, %v2316_v49  ;;  %v5756_v57 = vpop.eup %5755  ;;  %5763 = vrsqrt.f32 %v2127_v11  ;;  %v2128_v58 = vadd.f32 0.0001, %v2096_v48 }
 0x3d5   : > { %v2061_v3 = vpop.xlane.xlu1 %2060  ;;  %v2317_v2 = vrot.slane %v7889_v33, 7  ;;  %5278 = vmatmul.mubr.msk.f32.gmra.mrb[42].mxu0 %vm1784_vm7, %v7889_v33  ;;  %5331 = vmatmul.mubr.msk.f32.gmra.mrb[8].mxu1 %vm1784_vm7, %v2379_v51  ;;  %v2380_v20 = vmul.f32 %v7057_v39, %v2359_v52  ;;  %5765 = vrsqrt.f32 %v2126_v25  ;;  %v2131_v35 = vadd.f32 0.0001, %v2099_v40 }
 0x3d6   : > { %v2058_v29 = vpop.xlane.xlu0 %2057  ;;  %v7903_v32 = vmul.f32 %v9762_v63, %v2254_v9  ;;  %v2219_v45 = vmul.f32 %v7705_v43, %v2183_v44  ;;  %v5758_v62 = vpop.eup %5757  ;;  %v2101_v11 = vmul.f32 0.03125, %v2061_v3  ;;  %v2184_v48 = vmul.f32 %v5754_v8, %v7549_v4  ;;  %v9763_v44 = vld [vmem:[#allocation24_spill] sm:$0xff] }
 0x3d7   : > { %5333 = vmatprep.mubr.msk.f32.mxu1 %vm1784_vm7, %v2380_v20  ;;  %v2358_v27 = vsel %vm743_vm2, %v2316_v49, %v2317_v2  ;;  %v2185_v30 = vmul.f32 %v5752_v1, %v7566_v56  ;;  %5767 = vrsqrt.f32 %v2129_v54  ;;  %v2130_v9 = vadd.f32 0.0001, %v2098_v37  ;;  %v9764_v56 = vld [vmem:[#allocation26_spill] sm:$0xff] }
 0x3d8   : > { %v2318_v25 = vrot.slane %v7903_v32, 7  ;;  %5280 = vmatprep.mubr.msk.f32.mxu0 %vm1784_vm7, %v7903_v32  ;;  %v2255_v40 = vadd.f32 %v7708_v21, %v2219_v45  ;;  %5769 = vrsqrt.f32 %v2128_v58  ;;  %v2381_v52 = vmul.f32 %v9763_v44, %v2358_v27  ;;  %v9765_v45 = vld [vmem:[#allocation25_spill] sm:$0xff] }
 0x3d9   : > { %v2220_v49 = vmul.f32 %v7705_v43, %v2184_v48  ;;  %v2100_v3 = vmul.f32 0.03125, %v2058_v29  ;;  %v2067_v20 = vpop.xlane.xlu1 %2066  ;;  %v5760_v4 = vpop.eup %5759  ;;  %5771 = vrsqrt.f32 %v2131_v35  ;;  %v2221_v8 = vmul.f32 %v7705_v43, %v2185_v30 }
 0x3da   : > { %v2064_v51 = vpop.xlane.xlu0 %2063  ;;  %v7918_v1 = vmul.f32 %v9764_v56, %v2255_v40  ;;  %v2357_v37 = vsel %vm743_vm2, %v2317_v2, %v2318_v25  ;;  %5334 = vmatmul.mubr.msk.f32.gmra.mrb[10].mxu1 %vm1784_vm7, %v2381_v52  ;;  %v2133_v54 = vadd.f32 0.0001, %v2101_v11  ;;  %v2186_v29 = vmul.f32 %v5758_v62, %v7562_v24  ;;  %v9766_v2 = vld [vmem:[#allocation31_spill] sm:$0xff]  ;;  %v9768_v24 = vld [vmem:[#allocation30_spill] sm:$0xff] }
 0x3db   : > { %v2256_v58 = vadd.f32 %v7708_v21, %v2220_v49  ;;  %v2382_v27 = vmul.f32 %v9765_v45, %v2357_v37  ;;  %5773 = vrsqrt.f32 %v2130_v9  ;;  %v2257_v48 = vadd.f32 %v7708_v21, %v2221_v8  ;;  %v5762_v40 = vpop.eup %5761 }
 0x3dc   : > { %v2319_v35 = vrot.slane %v7918_v1, 7  ;;  %5281 = vmatmul.mubr.msk.f32.gmra.mrb[44].mxu0 %vm1784_vm7, %v7918_v1  ;;  %v2103_v30 = vmul.f32 0.03125, %v2067_v20  ;;  %v2132_v11 = vadd.f32 0.0001, %v2100_v3  ;;  %v2222_v52 = vmul.f32 %v7705_v43, %v2186_v29 }
 0x3dd   : > { %v7932_v63 = vmul.f32 %v9766_v2, %v2256_v58  ;;  %5336 = vmatprep.mubr.msk.f32.mxu1 %vm1784_vm7, %v2382_v27  ;;  %v2102_v49 = vmul.f32 0.03125, %v2064_v51  ;;  %v7937_v62 = vmul.f32 %v9768_v24, %v2257_v48  ;;  %v2187_v37 = vmul.f32 %v5756_v57, %v7582_v46  ;;  %v9770_v58 = vld [vmem:[#allocation56_spill] sm:$0xff]  ;;  %v9771_v2 = vld [vmem:[#allocation35_spill] sm:$0xff] }
 0x3de   : > { %v2356_v9 = vsel %vm743_vm2, %v2318_v25, %v2319_v35  ;;  %v2188_v20 = vmul.f32 %v5760_v4, %v7576_v41  ;;  %v2070_v8 = vpop.xlane.xlu0 %2069  ;;  %v5764_v56 = vpop.eup %5763  ;;  %5775 = vrsqrt.f32 %v2133_v54  ;;  %v2135_v25 = vadd.f32 0.0001, %v2103_v30 }
 0x3df   : > { %9767 = vst [vmem:[#allocation24_spill] sm:$0xff] %v7932_v63  ;;  %9769 = vst [vmem:[#allocation25_spill] sm:$0xff] %v7937_v62  ;;  %v2320_v3 = vrot.slane %v7932_v63, 7  ;;  %5283 = vmatprep.mubr.msk.f32.mxu0 %vm1784_vm7, %v7932_v63  ;;  %v2383_v51 = vmul.f32 %v9770_v58, %v2356_v9  ;;  %v5766_v27 = vpop.eup %5765  ;;  %v2321_v29 = vrot.slane %v7937_v62, 7  ;;  %v2258_v46 = vadd.f32 %v7708_v21, %v2222_v52 }
 0x3e0   : > { %5284 = vmatmul.mubr.msk.f32.gmra.mrb[46].mxu0 %vm1784_vm7, %v7937_v62  ;;  %v2134_v41 = vadd.f32 0.0001, %v2102_v49  ;;  %v2223_v57 = vmul.f32 %v7705_v43, %v2187_v37  ;;  %v2224_v54 = vmul.f32 %v7705_v43, %v2188_v20  ;;  %v2104_v48 = vmul.f32 0.03125, %v2070_v8  ;;  %v9773_v37 = vld [vmem:[#allocation28_spill] sm:$0xff] }
 0x3e1   : > { %5337 = vmatmul.mubr.msk.f32.gmra.mrb[12].mxu1 %vm1784_vm7, %v2383_v51  ;;  %v2355_v4 = vsel %vm743_vm2, %v2319_v35, %v2320_v3  ;;  %v5768_v9 = vpop.eup %5767  ;;  %5777 = vrsqrt.f32 %v2132_v11  ;;  %v7957_v24 = vmul.f32 %v9771_v2, %v2258_v46  ;;  %v2354_v52 = vsel %vm743_vm2, %v2320_v3, %v2321_v29  ;;  %v9774_v46 = vld [vmem:[#allocation34_spill] sm:$0xff] }
 0x3e2   : > { %v2384_v30 = vmul.f32 %v9772_v42, %v2355_v4  ;;  %v5770_v49 = vpop.eup %5769  ;;  %v2259_v51 = vadd.f32 %v7708_v21, %v2223_v57  ;;  %v2385_v62 = vmul.f32 %v9773_v37, %v2354_v52  ;;  %v2260_v35 = vadd.f32 %v7708_v21, %v2224_v54  ;;  %v9775_v4 = vld [vmem:[#allocation39_spill] sm:$0xff] }
 0x3e3   : > { %v2136_v63 = vadd.f32 0.0001, %v2104_v48  ;;  %v5772_v20 = vpop.eup %5771  ;;  %5779 = vrsqrt.f32 %v2135_v25  ;;  %v2322_v11 = vrot.slane %v7957_v24, 7  ;;  %5286 = vmatprep.mubr.msk.f32.mxu0 %vm1784_vm7, %v7957_v24  ;;  %v2189_v8 = vmul.f32 %v5762_v40, %v7597_v15 }
 0x3e4   : > { %5339 = vmatprep.mubr.msk.f32.mxu1 %vm1784_vm7, %v2384_v30  ;;  %v2190_v3 = vmul.f32 %v5766_v27, %v7593_v7  ;;  %5781 = vrsqrt.f32 %v2134_v41  ;;  %v7972_v57 = vmul.f32 %v9774_v46, %v2259_v51  ;;  %v7976_v54 = vmul.f32 %v9775_v4, %v2260_v35  ;;  %v9776_v35 = vld [vmem:[#allocation38_spill] sm:$0xff] }
 0x3e5   : > { %5340 = vmatmul.mubr.msk.f32.gmra.mrb[14].mxu1 %vm1784_vm7, %v2385_v62  ;;  %v2191_v25 = vmul.f32 %v5764_v56, %v7609_v38  ;;  %v5774_v48 = vpop.eup %5773  ;;  %v2225_v52 = vmul.f32 %v7705_v43, %v2189_v8  ;;  %v2353_v30 = vsel %vm743_vm2, %v2321_v29, %v2322_v11  ;;  %v2192_v7 = vmul.f32 %v5770_v49, %v7605_v60 }
 0x3e6   : > { %v2226_v15 = vmul.f32 %v7705_v43, %v2190_v3  ;;  %v2323_v40 = vrot.slane %v7972_v57, 7  ;;  %5287 = vmatmul.mubr.msk.f32.gmra.mrb[48].mxu0 %vm1784_vm7, %v7972_v57  ;;  %v2324_v62 = vrot.slane %v7976_v54, 7  ;;  %5783 = vrsqrt.f32 %v2136_v63  ;;  %v9777_v3 = vld [vmem:[#allocation42_spill] sm:$0xff] }
 0x3e7   : > { %5289 = vmatprep.mubr.msk.f32.mxu0 %vm1784_vm7, %v7976_v54  ;;  %v2261_v38 = vadd.f32 %v7708_v21, %v2225_v52  ;;  %v2386_v56 = vmul.f32 %v6985_v50, %v2353_v30  ;;  %v2227_v29 = vmul.f32 %v7705_v43, %v2191_v25  ;;  %v2228_v63 = vmul.f32 %v7705_v43, %v2192_v7 }
 0x3e8   : > { %v2262_v27 = vadd.f32 %v7708_v21, %v2226_v15  ;;  %v5776_v60 = vpop.eup %5775  ;;  %v2352_v41 = vsel %vm743_vm2, %v2322_v11, %v2323_v40  ;;  %v2351_v49 = vsel %vm743_vm2, %v2323_v40, %v2324_v62  ;;  %v2193_v51 = vmul.f32 %v5768_v9, %v7622_v12 }
 0x3e9   : > { %v8001_v8 = vmul.f32 %v9776_v35, %v2261_v38  ;;  %5342 = vmatprep.mubr.msk.f32.mxu1 %vm1784_vm7, %v2386_v56  ;;  %v2387_v50 = vmul.f32 %v6982_v53, %v2352_v41  ;;  %v2263_v52 = vadd.f32 %v7708_v21, %v2227_v29  ;;  %v2388_v11 = vmul.f32 %v6995_v28, %v2351_v49  ;;  %v9778_v28 = vld [vmem:[#allocation41_spill] sm:$0xff]  ;;  %v9779_v38 = vld [vmem:[#allocation40_spill] sm:$0xff] }
 0x3ea   : > { %v8006_v25 = vmul.f32 %v9777_v3, %v2262_v27  ;;  %v2264_v30 = vadd.f32 %v7708_v21, %v2228_v63  ;;  %v2229_v15 = vmul.f32 %v7705_v43, %v2193_v51  ;;  %v2194_v12 = vmul.f32 %v5774_v48, %v7618_v19 }
 0x3eb   : > { %v5778_v9 = vpop.eup %5777  ;;  %v2325_v7 = vrot.slane %v8001_v8, 7  ;;  %5290 = vmatmul.mubr.msk.f32.gmra.mrb[50].mxu0 %vm1784_vm7, %v8001_v8  ;;  %5343 = vmatmul.mubr.msk.f32.gmra.mrb[16].mxu1 %vm1784_vm7, %v2387_v50  ;;  %v8021_v40 = vmul.f32 %v9778_v28, %v2263_v52  ;;  %v2195_v49 = vmul.f32 %v5772_v20, %v7644_v10 }
 0x3ec   : > { %v2326_v53 = vrot.slane %v8006_v25, 7  ;;  %5292 = vmatprep.mubr.msk.f32.mxu0 %vm1784_vm7, %v8006_v25  ;;  %5345 = vmatprep.mubr.msk.f32.mxu1 %vm1784_vm7, %v2388_v11  ;;  %v8025_v19 = vmul.f32 %v9779_v38, %v2264_v30  ;;  %v2265_v48 = vadd.f32 %v7708_v21, %v2229_v15  ;;  %v2230_v41 = vmul.f32 %v7705_v43, %v2194_v12  ;;  %v9780_v11 = vld [vmem:[#allocation59_spill] sm:$0xff] }
 0x3ed   : > { %v5780_v56 = vpop.eup %5779  ;;  %v2350_v27 = vsel %vm743_vm2, %v2324_v62, %v2325_v7  ;;  %v2327_v51 = vrot.slane %v8021_v40, 7  ;;  %v2231_v10 = vmul.f32 %v7705_v43, %v2195_v49  ;;  %v2405_v38 = vrot.slane %v7767_v26, 1 }
 0x3ee   : > { %v2349_v29 = vsel %vm743_vm2, %v2325_v7, %v2326_v53  ;;  %v5782_v63 = vpop.eup %5781  ;;  %v2389_v50 = vmul.f32 %v6992_v13, %v2350_v27  ;;  %v2328_v52 = vrot.slane %v8025_v19, 7  ;;  %v8040_v30 = vmul.f32 %v9780_v11, %v2265_v48  ;;  %v9781_v48 = vld [vmem:[#allocation61_spill] sm:$0xff] }
 0x3ef   : > { %5293 = vmatmul.mubr.msk.f32.gmra.mrb[52].mxu0 %vm1784_vm7, %v8021_v40  ;;  %v2390_v62 = vmul.f32 %v7009_v18, %v2349_v29  ;;  %v2266_v15 = vadd.f32 %v7708_v21, %v2230_v41  ;;  %v2348_v13 = vsel %vm743_vm2, %v2326_v53, %v2327_v51  ;;  %v2267_v29 = vadd.f32 %v7708_v21, %v2231_v10 }
 0x3f0   : > { %v5784_v12 = vpop.eup %5783  ;;  %5346 = vmatmul.mubr.msk.f32.gmra.mrb[18].mxu1 %vm1784_vm7, %v2389_v50  ;;  %5295 = vmatprep.mubr.msk.f32.mxu0 %vm1784_vm7, %v8025_v19  ;;  %v2347_v20 = vsel %vm743_vm2, %v2327_v51, %v2328_v52  ;;  %v2329_v7 = vrot.slane %v8040_v30, 7  ;;  %v2391_v18 = vmul.f32 %v7006_v36, %v2348_v13  ;;  %v2196_v53 = vmul.f32 %v5778_v9, %v7638_v47  ;;  %v9782_v50 = vld [vmem:[#allocation36_spill] sm:$0xff] }
 0x3f1   : > { %5348 = vmatprep.mubr.msk.f32.mxu1 %vm1784_vm7, %v2390_v62  ;;  %v8056_v27 = vmul.f32 %v9781_v48, %v2266_v15  ;;  %v2392_v41 = vmul.f32 %v7025_v61, %v2347_v20  ;;  %v2197_v49 = vmul.f32 %v5776_v60, %v9782_v50  ;;  %v9783_v62 = vld [vmem:[#allocation33_spill] sm:$0xff]  ;;  %v2404_v13 = vrot.slane %v7777_v0, 1  ;;  %v9784_v61 = vld [vmem:[#allocation60_spill] sm:$0xff] }
 0x3f2   : > { %v2346_v36 = vsel %vm743_vm2, %v2328_v52, %v2329_v7  ;;  %v2198_v15 = vmul.f32 %v5782_v63, %v9783_v62  ;;  %v8074_v47 = vmul.f32 %v9784_v61, %v2267_v29  ;;  %v2232_v60 = vmul.f32 %v7705_v43, %v2196_v53  ;;  %v9785_v52 = vld [vmem:[#allocation62_spill] sm:$0xff] }
 0x3f3   : > { %5296 = vmatmul.mubr.msk.f32.gmra.mrb[54].mxu0 %vm1784_vm7, %v8040_v30  ;;  %v2330_v51 = vrot.slane %v8056_v27, 7  ;;  %v2393_v26 = vmul.f32 %v7022_v16, %v2346_v36  ;;  %v2233_v9 = vmul.f32 %v7705_v43, %v2197_v49  ;;  %v2199_v10 = vmul.f32 %v5780_v56, %v9785_v52  ;;  %v9787_v56 = vld [vmem:[#allocation64_spill] sm:$0xff]  ;;  %v9791_v52 = vld [vmem:[#allocation74_spill] sm:$0xff] }
 0x3f4   : > { %5349 = vmatmul.mubr.msk.f32.gmra.mrb[20].mxu1 %vm1784_vm7, %v2391_v18  ;;  %5298 = vmatprep.mubr.msk.f32.mxu0 %vm1784_vm7, %v8056_v27  ;;  %v2234_v0 = vmul.f32 %v7705_v43, %v2198_v15  ;;  %v2331_v20 = vrot.slane %v8074_v47, 7  ;;  %v2268_v18 = vadd.f32 %v7708_v21, %v2232_v60  ;;  %v8107_v15 = vsel %vm920_vm3, %v2404_v13, %v2405_v38  ;;  %v9789_v60 = vld [vmem:[#allocation63_spill] sm:$0xff] }
 0x3f5   : > { %5351 = vmatprep.mubr.msk.f32.mxu1 %vm1784_vm7, %v2392_v41  ;;  %v2345_v63 = vsel %vm743_vm2, %v2329_v7, %v2330_v51  ;;  %v2269_v16 = vadd.f32 %v7708_v21, %v2233_v9  ;;  %v2235_v53 = vmul.f32 %v7705_v43, %v2199_v10  ;;  %v9786_v7 = vld [vmem:[#allocation37_spill] sm:$0xff]  ;;  %v2407_v10 = vrot.slane %v9791_v52, 1 }
 0x3f6   : > { %v2394_v29 = vmul.f32 %v7041_v31, %v2345_v63  ;;  %v2270_v41 = vadd.f32 %v7708_v21, %v2234_v0  ;;  %v2200_v50 = vmul.f32 %v5784_v12, %v9786_v7  ;;  %v8095_v49 = vmul.f32 %v9787_v56, %v2268_v18  ;;  %v9790_v9 = vld [vmem:[#allocation69_spill] sm:$0xff] }
 0x3f7   : > { %5299 = vmatmul.mubr.msk.f32.gmra.mrb[56].mxu0 %vm1784_vm7, %v8074_v47  ;;  %v2344_v36 = vsel %vm743_vm2, %v2330_v51, %v2331_v20  ;;  %v9788_v31 = vrot.slane %v7722_v59, 1  ;;  %v8110_v12 = vmul.f32 %v9789_v60, %v2269_v16  ;;  %v2271_v59 = vadd.f32 %v7708_v21, %v2235_v53  ;;  %v9792_v16 = vld [vmem:[#allocation72_spill] sm:$0xff] }
 0x3f8   : > { %5352 = vmatmul.mubr.msk.f32.gmra.mrb[22].mxu1 %vm1784_vm7, %v2393_v26  ;;  %v2395_v26 = vmul.f32 %v7038_v14, %v2344_v36  ;;  %v8115_v63 = vmul.f32 %v9790_v9, %v2270_v41  ;;  %v2406_v51 = vrot.slane %v7803_v22, 1  ;;  %v2332_v0 = vrot.slane %v8095_v49, 7  ;;  %5301 = vmatprep.mubr.msk.f32.mxu0 %vm1784_vm7, %v8095_v49 }
 0x3f9   : > { %v8103_v62 = vsel %vm920_vm3, %v9788_v31, %v2404_v13  ;;  %5354 = vmatprep.mubr.msk.f32.mxu1 %vm1784_vm7, %v2394_v29  ;;  %v2236_v13 = vmul.f32 %v7705_v43, %v2200_v50  ;;  %v2408_v18 = vrot.slane %v7830_v34, 1  ;;  %v2333_v14 = vrot.slane %v8110_v12, 7 }
 0x3fa   : > { %v2334_v29 = vrot.slane %v8115_v63, 7  ;;  %v2409_v22 = vrot.slane %v7842_v23, 1  ;;  %v8134_v43 = vmul.f32 %v9792_v16, %v2271_v59  ;;  %v2343_v34 = vsel %vm743_vm2, %v2331_v20, %v2332_v0  ;;  %v9793_v59 = vld [vmem:[#allocation71_spill] sm:$0xff] }
 0x3fb   : > { %5302 = vmatmul.mubr.msk.f32.gmra.mrb[58].mxu0 %vm1784_vm7, %v8110_v12  ;;  %v2272_v41 = vadd.f32 %v7708_v21, %v2236_v13  ;;  %v2410_v53 = vrot.slane %v7853_v17, 1  ;;  %v2396_v7 = vmul.f32 %v7057_v39, %v2343_v34  ;;  %v2342_v23 = vsel %vm743_vm2, %v2332_v0, %v2333_v14 }
 0x3fc   : > { %5355 = vmatmul.mubr.msk.f32.gmra.mrb[24].mxu1 %vm1784_vm7, %v2395_v26  ;;  %5304 = vmatprep.mubr.msk.f32.mxu0 %vm1784_vm7, %v8115_v63  ;;  %v2341_v50 = vsel %vm743_vm2, %v2333_v14, %v2334_v29  ;;  %v2411_v36 = vrot.slane %v7864_v55, 1  ;;  %v2335_v31 = vrot.slane %v8134_v43, 7  ;;  %v2397_v26 = vmul.f32 %v9763_v44, %v2342_v23  ;;  %v9795_v14 = vld [vmem:[#allocation25_spill] sm:$0xff] }
 0x3fd   : > { %v8149_v20 = vmul.f32 %v9793_v59, %v2272_v41  ;;  %v2412_v21 = vrot.slane %v7878_v6, 1  ;;  %5357 = vmatprep.mubr.msk.f32.mxu1 %vm1784_vm7, %v2396_v7  ;;  %v2398_v39 = vmul.f32 %v9765_v45, %v2341_v50  ;;  %v2461_v17 = vsel %vm920_vm3, %v2405_v38, %v2406_v51 }
 0x3fe   : > { %v2460_v55 = vsel %vm920_vm3, %v2406_v51, %v2407_v10  ;;  %v2413_v44 = vrot.slane %v7889_v33, 1  ;;  %v2414_v0 = vrot.slane %v7903_v32, 1  ;;  %v2340_v45 = vsel %vm743_vm2, %v2334_v29, %v2335_v31  ;;  %v9794_v51 = vld [vmem:[#allocation24_spill] sm:$0xff]  ;;  %v9796_v29 = vld [vmem:[#allocation49_spill] sm:$0xff] }
 0x3ff   : > { %5305 = vmatmul.mubr.msk.f32.gmra.mrb[60].mxu0 %vm1784_vm7, %v8134_v43  ;;  %v2336_v6 = vrot.slane %v8149_v20, 7  ;;  %v2415_v13 = vrot.slane %v7918_v1, 1  ;;  %v2399_v38 = vmul.f32 %v9770_v58, %v2340_v45  ;;  %v2459_v33 = vsel %vm920_vm3, %v2407_v10, %v2408_v18  ;;  %v9801_v45 = vld [vmem:[#allocation47_spill] sm:$0xff] }
 0x400   : > { %5358 = vmatmul.mubr.msk.f32.gmra.mrb[26].mxu1 %vm1784_vm7, %v2397_v26  ;;  %5307 = vmatprep.mubr.msk.f32.mxu0 %vm1784_vm7, %v8149_v20  ;;  %v2458_v32 = vsel %vm920_vm3, %v2408_v18, %v2409_v22  ;;  %v2416_v52 = vrot.slane %v9794_v51, 1  ;;  %v2417_v34 = vrot.slane %v9795_v14, 1  ;;  %v9797_v7 = vrot.slane %v9796_v29, 7 }
 0x401   : > { %5360 = vmatprep.mubr.msk.f32.mxu1 %vm1784_vm7, %v2398_v39  ;;  %v2339_v41 = vsel %vm743_vm2, %v2335_v31, %v2336_v6  ;;  %v2418_v58 = vrot.slane %v7957_v24, 1  ;;  %v2457_v18 = vsel %vm920_vm3, %v2409_v22, %v2410_v53  ;;  %v2456_v23 = vsel %vm920_vm3, %v2410_v53, %v2411_v36  ;;  %v9798_v39 = vld [vmem:[#allocation73_spill] sm:$0xff] }
 0x402   : > { %v2338_v1 = vsel %vm743_vm2, %v2336_v6, %v9797_v7  ;;  %v2400_v10 = vmul.f32 %v9772_v42, %v2339_v41  ;;  %v2455_v31 = vsel %vm920_vm3, %v2411_v36, %v2412_v21  ;;  %v2454_v26 = vsel %vm920_vm3, %v2412_v21, %v2413_v44  ;;  %v9799_v6 = vld [vmem:[#allocation43_spill] sm:$0xff]  ;;  %v9806_v7 = vld [vmem:[#allocation10_spill] sm:$0xff] }
 0x403   : > { %5308 = vmatmul.mubr.msk.f32.gmra.mrb[62].mxu0 %vm1784_vm7, %v9796_v29  ;;  %v2401_v50 = vmul.f32 %v9773_v37, %v2338_v1  ;;  %v2453_v42 = vsel %vm920_vm3, %v2413_v44, %v2414_v0  ;;  %v2452_v22 = vsel %vm920_vm3, %v2414_v0, %v2415_v13  ;;  %v2451_v53 = vsel %vm920_vm3, %v2415_v13, %v2416_v52  ;;  %v9800_v44 = vld [vmem:[#allocation45_spill] sm:$0xff] }
 0x404   : > { %5361 = vmatmul.mubr.msk.f32.gmra.mrb[28].mxu1 %vm1784_vm7, %v2399_v38  ;;  %v2450_v37 = vsel %vm920_vm3, %v2416_v52, %v2417_v34  ;;  %v2466_v36 = vmul.f32 %v9799_v6, %v9798_v39  ;;  %v2449_v21 = vsel %vm920_vm3, %v2417_v34, %v2418_v58  ;;  %v2467_v0 = vmul.f32 %v9800_v44, %v8103_v62  ;;  %v9804_v52 = vld [vmem:[#allocation46_spill] sm:$0xff] }
 0x405   : > { %5363 = vmatprep.mubr.msk.f32.mxu1 %vm1784_vm7, %v2400_v10  ;;  %v2468_v13 = vmul.f32 %v9801_v45, %v8107_v15  ;;  %v9802_v38 = vlaneseq  ;;  %v2469_v14 = vmul.f32 %v9804_v52, %v2461_v17  ;;  %v9805_v34 = vld [vmem:[#allocation50_spill] sm:$0xff]  ;;  %v9807_v62 = vmov 0.0   ;;  %v9808_v15 = vld [vmem:[#allocation11_spill] sm:$0xff] }
 0x406   : > { %v2470_v41 = vmul.f32 %v9805_v34, %v2460_v55  ;;  %v9810_v55 = vld [vmem:[#allocation51_spill] sm:$0xff]  ;;  %v2423_v24 = vrot.slane %v8021_v40, 1  ;;  %vm4650_vm2 = vcmask 589312  }
 0x407   : > { %v8219_v51 = vand.u32 127, %v9802_v38  ;;  %v9812_v38 = vld [vmem:[#allocation52_spill] sm:$0xff] }
 0x408   : > { %5364 = vmatmul.mubr.msk.f32.gmra.mrb[30].mxu1 %vm1784_vm7, %v2401_v50  ;;  %v9809_v50 = vld [vmem:[#allocation48_spill] sm:$0xff] }
 0x409   : > { %5374 = vmatprep.mubr.msk.f32.mxu1 %vm1784_vm7, %v2466_v36  ;;  %9803 = vst [vmem:[#allocation56_spill] sm:$0xff] %v8219_v51  ;;  %vm380_vm8 = vcmp.lt.s32.totalorder %v8219_v51, %v9806_v7  ;;  %vm383_vm10 = vcmp.lt.s32.totalorder %v8219_v51, %v9808_v15  ;;  %v2471_v39 = vmul.f32 %v9809_v50, %v2459_v33  ;;  %v9817_v15 = vld [vmem:[#allocation65_spill] sm:$0xff] }
 0x40a   : > { %v4912_v1 = vsel %vm380_vm8, 1.0, %v9807_v62  ;;  %v4913_v10 = vsel %vm383_vm10, 1.0, %v9807_v62  ;;  %v2472_v36 = vmul.f32 %v9810_v55, %v2458_v32  ;;  %v9814_v32 = vld [vmem:[#allocation54_spill] sm:$0xff]  ;;  %v9815_v62 = vld [vmem:[#allocation55_spill] sm:$0xff]  ;;  %vm4692_vm8 = vcmask 982912  }
 0x40b   : > { %v8234_v17 = vsel %vm386_vm9, %v4912_v1, %v4913_v10  ;;  %v2475_v7 = vmul.f32 %v9814_v32, %v2455_v31  ;;  %v2476_v1 = vmul.f32 %v9815_v62, %v2454_v26  ;;  %v2478_v10 = vmul.f32 %v9817_v15, %v2452_v22  ;;  %v9818_v31 = vld [vmem:[#allocation58_spill] sm:$0xff]  ;;  %v9820_v22 = vld [vmem:[#allocation67_spill] sm:$0xff] }
 0x40c   : > { %5375 = vmatmul.mubr.msk.f32.vlgmr.msra.gmra.mrb[0].mxu1 %vm1784_vm7, %v2467_v0  ;;  %v9811_v0 = vld [vmem:[#allocation32_spill] sm:$0xff]  ;;  %v2479_v26 = vmul.f32 %v9818_v31, %v2451_v53  ;;  %v2481_v53 = vmul.f32 %v9820_v22, %v2449_v21  ;;  %vm4699_vm9 = vcmask 1048512   ;;  %vm4780_vm10 = vcmask 1041409  }
 0x40d   : > { %5377 = vmatprep.mubr.msk.f32.mxu1 %vm1784_vm7, %v2468_v13  ;;  %v8239_v13 = vrot.slane %v8234_v17, %v9811_v0  ;;  %v9819_v0 = vld [vmem:[#allocation68_spill] sm:$0xff] }
 0x40f   : > { %4271 = vbcast.lane.b32.xlu1 %v8239_v13, 256  ;;  %4275 = vbcast.lane.b32.xlu0 %v8239_v13, 264 }
 0x410   : > { %5378 = vmatmul.mubr.msk.f32.gmra.mrb[2].mxu1 %vm1784_vm7, %v2469_v14  ;;  %v2473_v14 = vmul.f32 %v9812_v38, %v2457_v18  ;;  %v9816_v18 = vld [vmem:[#allocation57_spill] sm:$0xff] }
 0x411   : > { %5380 = vmatprep.mubr.msk.f32.mxu1 %vm1784_vm7, %v2470_v41  ;;  %v9813_v41 = vld [vmem:[#allocation53_spill] sm:$0xff] }
 0x412   : > { %v2474_v33 = vmul.f32 %v9813_v41, %v2456_v23  ;;  %v2477_v23 = vmul.f32 %v9816_v18, %v2453_v42  ;;  %v2480_v42 = vmul.f32 %v9819_v0, %v2450_v37 }
 0x413   : > { %4279 = vbcast.lane.b32.xlu1 %v8239_v13, 272  ;;  %4287 = vbcast.lane.b32.xlu0 %v8239_v13, 288 }
 0x414   : > { %5381 = vmatmul.mubr.msk.f32.gmra.mrb[4].mxu1 %vm1784_vm7, %v2471_v39  ;;  %v2419_v39 = vrot.slane %v7972_v57, 1 }
 0x415   : > { %5383 = vmatprep.mubr.msk.f32.mxu1 %vm1784_vm7, %v2472_v36  ;;  %v2420_v36 = vrot.slane %v7976_v54, 1  ;;  %v2422_v54 = vrot.slane %v8006_v25, 1  ;;  %v2424_v25 = vrot.slane %v8025_v19, 1  ;;  %v2426_v19 = vrot.slane %v8056_v27, 1 }
 0x416   : > { %v2448_v57 = vsel %vm920_vm3, %v2418_v58, %v2419_v39 }
 0x417   : > { %4283 = vbcast.lane.b32.xlu1 %v8239_v13, 280  ;;  %4295 = vbcast.lane.b32.xlu0 %v8239_v13, 304  ;;  %v2482_v37 = vmul.f32 %v9799_v6, %v2448_v57 }
 0x418   : > { %5384 = vmatmul.mubr.msk.f32.gmra.mrb[6].mxu1 %vm1784_vm7, %v2473_v14  ;;  %v2421_v14 = vrot.slane %v8001_v8, 1  ;;  %v2447_v8 = vsel %vm920_vm3, %v2419_v39, %v2420_v36 }
 0x419   : > { %5386 = vmatprep.mubr.msk.f32.mxu1 %vm1784_vm7, %v2474_v33  ;;  %v2483_v21 = vmul.f32 %v9800_v44, %v2447_v8  ;;  %v2425_v33 = vrot.slane %v8040_v30, 1  ;;  %v2443_v30 = vsel %vm920_vm3, %v2423_v24, %v2424_v25 }
 0x41a   : > { %v2446_v58 = vsel %vm920_vm3, %v2420_v36, %v2421_v14  ;;  %v2445_v40 = vsel %vm920_vm3, %v2421_v14, %v2422_v54  ;;  %v2487_v27 = vmul.f32 %v9809_v50, %v2443_v30  ;;  %v2431_v36 = vrot.slane %v8134_v43, 1 }
 0x41b   : > { %4291 = vbcast.lane.b32.xlu1 %v8239_v13, 296  ;;  %4303 = vbcast.lane.b32.xlu0 %v8239_v13, 320  ;;  %v2484_v6 = vmul.f32 %v9801_v45, %v2446_v58  ;;  %v2485_v44 = vmul.f32 %v9804_v52, %v2445_v40  ;;  %v2428_v52 = vrot.slane %v8095_v49, 1  ;;  %v2430_v49 = vrot.slane %v8115_v63, 1 }
 0x41c   : > { %5387 = vmatmul.mubr.msk.f32.gmra.mrb[8].mxu1 %vm1784_vm7, %v2475_v7  ;;  %v2444_v7 = vsel %vm920_vm3, %v2422_v54, %v2423_v24  ;;  %v2432_v63 = vrot.slane %v8149_v20, 1  ;;  %v2433_v14 = vrot.slane %v9796_v29, 1 }
 0x41d   : > { %5389 = vmatprep.mubr.msk.f32.mxu1 %vm1784_vm7, %v2476_v1  ;;  %v2486_v45 = vmul.f32 %v9805_v34, %v2444_v7  ;;  %v2427_v1 = vrot.slane %v8074_v47, 1  ;;  %v2441_v34 = vsel %vm920_vm3, %v2425_v33, %v2426_v19 }
 0x41e   : > { %v2489_v50 = vmul.f32 %v9812_v38, %v2441_v34  ;;  %v2434_v54 = vsel %vm920_vm3, %v2432_v63, %v2433_v14 }
 0x41f   : > { %4299 = vbcast.lane.b32.xlu1 %v8239_v13, 312  ;;  %4311 = vbcast.lane.b32.xlu0 %v8239_v13, 336 }
 0x420   : > { %5390 = vmatmul.mubr.msk.f32.gmra.mrb[10].mxu1 %vm1784_vm7, %v2477_v23  ;;  %v2442_v23 = vsel %vm920_vm3, %v2424_v25, %v2425_v33 }
 0x421   : > { %5392 = vmatprep.mubr.msk.f32.mxu1 %vm1784_vm7, %v2478_v10  ;;  %v9821_v10 = vld [vmem:[#allocation70_spill] sm:$0xff]  ;;  %v2488_v47 = vmul.f32 %v9810_v55, %v2442_v23 }
 0x422   : > { %v8311_v39 = vrot.slane %v8234_v17, %v9821_v10  ;;  %v2440_v17 = vsel %vm920_vm3, %v2426_v19, %v2427_v1 }
 0x423   : > { %4307 = vbcast.lane.b32.xlu1 %v8239_v13, 328  ;;  %4319 = vbcast.lane.b32.xlu0 %v8239_v13, 352  ;;  %v2490_v55 = vmul.f32 %v9813_v41, %v2440_v17  ;;  %v2436_v41 = vsel %vm920_vm3, %v2430_v49, %v2431_v36 }
 0x424   : > { %5393 = vmatmul.mubr.msk.f32.gmra.mrb[12].mxu1 %vm1784_vm7, %v2479_v26  ;;  %v2429_v26 = vrot.slane %v8110_v12, 1  ;;  %v2439_v12 = vsel %vm920_vm3, %v2427_v1, %v2428_v52  ;;  %v2494_v20 = vmul.f32 %v9817_v15, %v2436_v41  ;;  %v9822_v15 = vld [vmem:[#allocation66_spill] sm:$0xff] }
 0x425   : > { %5395 = vmatprep.mubr.msk.f32.mxu1 %vm1784_vm7, %v2480_v42 }
 0x426   : > { %v2438_v42 = vsel %vm920_vm3, %v2428_v52, %v2429_v26  ;;  %v2437_v43 = vsel %vm920_vm3, %v2429_v26, %v2430_v49 }
 0x427   : > { %4315 = vbcast.lane.b32.xlu1 %v8239_v13, 344  ;;  %4327 = vbcast.lane.b32.xlu0 %v8239_v13, 368  ;;  %v2492_v38 = vmul.f32 %v9815_v62, %v2438_v42  ;;  %v2435_v62 = vsel %vm920_vm3, %v2431_v36, %v2432_v63 }
 0x428   : > { %5396 = vmatmul.mubr.msk.f32.gmra.mrb[14].mxu1 %vm1784_vm7, %v2481_v53  ;;  %v2495_v29 = vmul.f32 %v9818_v31, %v2435_v62 }
 0x429   : > { %5398 = vmatprep.mubr.msk.f32.mxu1 %vm1784_vm7, %v2482_v37  ;;  %v9823_v37 = vrot.slane %v9822_v15, 1 }
 0x42b   : > { %4323 = vbcast.lane.b32.xlu1 %v8239_v13, 360  ;;  %4338 = vbcast.lane.b32.xlu0 %v8311_v39, 256  ;;  %v2465_v8 = vsel %vm920_vm3, %v2433_v14, %v9823_v37  ;;  %vm4657_vm3 = vcmask 654912  }
 0x42c   : > { %5399 = vmatmul.mubr.msk.f32.gmra.mrb[16].mxu1 %vm1784_vm7, %v2483_v21  ;;  %v2497_v24 = vmul.f32 %v9820_v22, %v2465_v8 }
 0x42d   : > { %5401 = vmatprep.mubr.msk.f32.mxu1 %vm1784_vm7, %v2484_v6 }
 0x42f   : > { %4331 = vbcast.lane.b32.xlu1 %v8239_v13, 376  ;;  %4346 = vbcast.lane.b32.xlu0 %v8311_v39, 272  ;;  %v2491_v13 = vmul.f32 %v9814_v32, %v2439_v12  ;;  %v2493_v32 = vmul.f32 %v9816_v18, %v2437_v43  ;;  %v2496_v18 = vmul.f32 %v9819_v0, %v2434_v54 }
 0x430   : > { %5402 = vmatmul.mubr.msk.f32.gmra.mrb[18].mxu1 %vm1784_vm7, %v2485_v44 }
 0x431   : > { %5404 = vmatprep.mubr.msk.f32.mxu1 %vm1784_vm7, %v2486_v45 }
 0x433   : > { %4342 = vbcast.lane.b32.xlu1 %v8311_v39, 264  ;;  %4354 = vbcast.lane.b32.xlu0 %v8311_v39, 288 }
 0x434   : > { %5405 = vmatmul.mubr.msk.f32.gmra.mrb[20].mxu1 %vm1784_vm7, %v2487_v27 }
 0x435   : > { %5407 = vmatprep.mubr.msk.f32.mxu1 %vm1784_vm7, %v2488_v47 }
 0x437   : > { %4350 = vbcast.lane.b32.xlu1 %v8311_v39, 280  ;;  %4362 = vbcast.lane.b32.xlu0 %v8311_v39, 304 }
 0x438   : > { %5408 = vmatmul.mubr.msk.f32.gmra.mrb[22].mxu1 %vm1784_vm7, %v2489_v50 }
 0x439   : > { %5410 = vmatprep.mubr.msk.f32.mxu1 %vm1784_vm7, %v2490_v55 }
 0x43b   : > { %4358 = vbcast.lane.b32.xlu1 %v8311_v39, 296  ;;  %4370 = vbcast.lane.b32.xlu0 %v8311_v39, 320 }
 0x43c   : > { %5411 = vmatmul.mubr.msk.f32.gmra.mrb[24].mxu1 %vm1784_vm7, %v2491_v13 }
 0x43d   : > { %5413 = vmatprep.mubr.msk.f32.mxu1 %vm1784_vm7, %v2492_v38  ;;  %v5849_v38 = vld [vmem:[%s7222_s22] sm:$0x3] }
 0x43e   : > { %v8428_v43 = vrot.slane %v5849_v38, %v9821_v10 }
 0x43f   : > { %4366 = vbcast.lane.b32.xlu1 %v8311_v39, 312  ;;  %4378 = vbcast.lane.b32.xlu0 %v8311_v39, 336 }
 0x440   : > { %v5264_v57 = vpop.f32.mrb[32].mxu0  ;;  %5414 = vmatmul.mubr.msk.f32.gmra.mrb[26].mxu1 %vm1784_vm7, %v2493_v32 }
 0x441   : > { %v2669_v53 = vpop.f32.mrb[33].mxu0  ;;  %5416 = vmatprep.mubr.msk.f32.mxu1 %vm1784_vm7, %v2494_v20 }
 0x443   : > { %4374 = vbcast.lane.b32.xlu1 %v8311_v39, 328  ;;  %4386 = vbcast.lane.b32.xlu0 %v8311_v39, 352 }
 0x444   : > { %5417 = vmatmul.mubr.msk.f32.gmra.mrb[28].mxu1 %vm1784_vm7, %v2495_v29 }
 0x445   : > { %5419 = vmatprep.mubr.msk.f32.mxu1 %vm1784_vm7, %v2496_v18 }
 0x447   : > { %4382 = vbcast.lane.b32.xlu1 %v8311_v39, 344 }
 0x448   : > { %5420 = vmatmul.mubr.msk.f32.gmra.mrb[30].mxu1 %vm1784_vm7, %v2497_v24 }
 0x44b   : > { %4390 = vbcast.lane.b32.xlu1 %v8311_v39, 360 }
 0x492   : > { %v5267_v31 = vpop.f32.mrb[34].mxu0 }
 0x493   : > { %v2679_v0 = vpop.f32.mrb[35].mxu0 }
 0x496   : > { %v5270_v58 = vpop.f32.mrb[36].mxu0 }
 0x497   : > { %v2689_v21 = vpop.f32.mrb[37].mxu0 }
 0x49e   : > { %v5273_v25 = vpop.f32.mrb[38].mxu0 }
 0x49f   : > { %v2699_v6 = vpop.f32.mrb[39].mxu0 }
 0x4a3   : > { %v8378_v40 = vpop.f32.mrb[40].mxu0 }
 0x4a4   : > { %v8380_v22 = vpop.f32.mrb[41].mxu0 }
 0x4a8   : > { %v8382_v33 = vpop.f32.mrb[42].mxu0 }
 0x4a9   : > { %v8384_v7 = vpop.f32.mrb[43].mxu0 }
 0x4af   : > { %v8386_v44 = vpop.f32.mrb[44].mxu0 }
 0x4b0   : > { %v8388_v19 = vpop.f32.mrb[45].mxu0 }
 0x4b3   : > { %v8390_v45 = vpop.f32.mrb[46].mxu0 }
 0x4b4   : > { %v8392_v30 = vpop.f32.mrb[47].mxu0 }
 0x4b9   : > { %v8394_v1 = vpop.f32.mrb[48].mxu0 }
 0x4ba   : > { %v8396_v23 = vpop.f32.mrb[49].mxu0 }
 0x4be   : > { %v8398_v27 = vpop.f32.mrb[50].mxu0 }
 0x4bf   : > { %v8400_v52 = vpop.f32.mrb[51].mxu0 }
 0x4c2   : > { %v8402_v47 = vpop.f32.mrb[52].mxu0 }
 0x4c3   : > { %v8404_v34 = vpop.f32.mrb[53].mxu0 }
 0x4c6   : > { %v8406_v26 = vpop.f32.mrb[54].mxu0 }
 0x4c7   : > { %v8408_v17 = vpop.f32.mrb[55].mxu0 }
 0x4ca   : > { %v8410_v50 = vpop.f32.mrb[56].mxu0 }
 0x4cb   : > { %v8412_v49 = vpop.f32.mrb[57].mxu0 }
 0x4ce   : > { %v8414_v55 = vpop.f32.mrb[58].mxu0 }
 0x4cf   : > { %v8416_v12 = vpop.f32.mrb[59].mxu0 }
 0x4d2   : > { %v8418_v36 = vpop.f32.mrb[60].mxu0 }
 0x4d3   : > { %v8420_v42 = vpop.f32.mrb[61].mxu0 }
 0x4d6   : > { %v8422_v13 = vpop.f32.mrb[62].mxu0 }
 0x4d7   : > { %v8424_v63 = vpop.f32.mrb[63].mxu0 }
 0x4df   : > { %v5376_v41 = vpop.f32.mrb[0].mxu1 }
 0x4e0   : > { %v5450_v32 = vadd.f32 %v5376_v41, %v5264_v57  ;;  %v3316_v14 = vpop.f32.mrb[1].mxu1 }
 0x4e1   : > { %v5451_v20 = vadd.f32 %v3316_v14, %v2669_v53 }
 0x4e2   : > { %v8431_v62 = vadd.f32 %v5450_v32, %v8428_v43 }
 0x4e3   : > { %v8434_v54 = vadd.f32 %v5451_v20, %v8428_v43  ;;  %v5379_v29 = vpop.f32.mrb[2].mxu1 }
 0x4e4   : > { %v9591_v18 = vmax.f32 %v8431_v62, 0.0  ;;  %v5452_v15 = vadd.f32 %v5379_v29, %v5267_v31  ;;  %v3326_v37 = vpop.f32.mrb[3].mxu1 }
 0x4e5   : > { %v9561_v8 = vmax.f32 %v8434_v54, 0.0  ;;  %v5453_v24 = vadd.f32 %v3326_v37, %v2679_v0 }
 0x4e6   : > { %v8439_v38 = vadd.f32 %v5452_v15, %v8428_v43  ;;  %v3582_v57 = vsel %vm1784_vm7, %v9591_v18, 0.0 }
 0x4e7   : > { %v8445_v53 = vadd.f32 %v5453_v24, %v8428_v43  ;;  %3583 = vadd.xlane.f32.xlu0 %v3582_v57  ;;  %v5382_v41 = vpop.f32.mrb[4].mxu1  ;;  %v3579_v31 = vsel %vm1784_vm7, %v9561_v8, 0.0 }
 0x4e8   : > { %v9571_v32 = vmax.f32 %v8439_v38, 0.0  ;;  %v5454_v14 = vadd.f32 %v5382_v41, %v5270_v58  ;;  %3580 = vadd.xlane.f32.xlu1 %v3579_v31  ;;  %v3336_v0 = vpop.f32.mrb[5].mxu1 }
 0x4e9   : > { %v9562_v20 = vmax.f32 %v8445_v53, 0.0  ;;  %v5455_v29 = vadd.f32 %v3336_v0, %v2689_v21 }
 0x4ea   : > { %v8453_v15 = vadd.f32 %v5454_v14, %v8428_v43  ;;  %v3588_v37 = vsel %vm1784_vm7, %v9571_v32, 0.0 }
 0x4eb   : > { %v8459_v24 = vadd.f32 %v5455_v29, %v8428_v43  ;;  %3589 = vadd.xlane.f32.xlu0 %v3588_v37  ;;  %v5385_v57 = vpop.f32.mrb[6].mxu1  ;;  %v3585_v58 = vsel %vm1784_vm7, %v9562_v20, 0.0 }
 0x4ec   : > { %v9563_v41 = vmax.f32 %v8453_v15, 0.0  ;;  %v5456_v31 = vadd.f32 %v5385_v57, %v5273_v25  ;;  %3586 = vadd.xlane.f32.xlu1 %v3585_v58  ;;  %v3346_v21 = vpop.f32.mrb[7].mxu1 }
 0x4ed   : > { %v9564_v14 = vmax.f32 %v8459_v24, 0.0  ;;  %v5457_v0 = vadd.f32 %v3346_v21, %v2699_v6 }
 0x4ee   : > { %v8467_v8 = vadd.f32 %v5456_v31, %v8428_v43  ;;  %v3594_v29 = vsel %vm1784_vm7, %v9563_v41, 0.0 }
 0x4ef   : > { %v8473_v37 = vadd.f32 %v5457_v0, %v8428_v43  ;;  %3595 = vadd.xlane.f32.xlu0 %v3594_v29  ;;  %v5388_v20 = vpop.f32.mrb[8].mxu1  ;;  %v3591_v25 = vsel %vm1784_vm7, %v9564_v14, 0.0 }
 0x4f0   : > { %v9565_v57 = vmax.f32 %v8467_v8, 0.0  ;;  %v5458_v6 = vadd.f32 %v5388_v20, %v8378_v40  ;;  %3592 = vadd.xlane.f32.xlu1 %v3591_v25  ;;  %v3356_v58 = vpop.f32.mrb[9].mxu1 }
 0x4f1   : > { %v9566_v31 = vmax.f32 %v8473_v37, 0.0  ;;  %v5459_v21 = vadd.f32 %v3356_v58, %v8380_v22 }
 0x4f2   : > { %v8483_v41 = vadd.f32 %v5458_v6, %v8428_v43  ;;  %v3600_v0 = vsel %vm1784_vm7, %v9565_v57, 0.0 }
 0x4f3   : > { %v8489_v29 = vadd.f32 %v5459_v21, %v8428_v43  ;;  %3601 = vadd.xlane.f32.xlu0 %v3600_v0  ;;  %v5391_v14 = vpop.f32.mrb[10].mxu1  ;;  %v3597_v40 = vsel %vm1784_vm7, %v9566_v31, 0.0 }
 0x4f4   : > { %v9568_v20 = vmax.f32 %v8483_v41, 0.0  ;;  %v5460_v22 = vadd.f32 %v5391_v14, %v8382_v33  ;;  %3598 = vadd.xlane.f32.xlu1 %v3597_v40  ;;  %v3366_v25 = vpop.f32.mrb[11].mxu1 }
 0x4f5   : > { %v9567_v6 = vmax.f32 %v8489_v29, 0.0  ;;  %v5461_v58 = vadd.f32 %v3366_v25, %v8384_v7 }
 0x4f6   : > { %v8499_v57 = vadd.f32 %v5460_v22, %v8428_v43  ;;  %v3606_v21 = vsel %vm1784_vm7, %v9568_v20, 0.0 }
 0x4f7   : > { %v8505_v0 = vadd.f32 %v5461_v58, %v8428_v43  ;;  %3607 = vadd.xlane.f32.xlu0 %v3606_v21  ;;  %v5394_v31 = vpop.f32.mrb[12].mxu1  ;;  %v3603_v33 = vsel %vm1784_vm7, %v9567_v6, 0.0 }
 0x4f8   : > { %v9569_v14 = vmax.f32 %v8499_v57, 0.0  ;;  %v5462_v7 = vadd.f32 %v5394_v31, %v8386_v44  ;;  %3604 = vadd.xlane.f32.xlu1 %v3603_v33  ;;  %v3376_v40 = vpop.f32.mrb[13].mxu1 }
 0x4f9   : > { %v9570_v22 = vmax.f32 %v8505_v0, 0.0  ;;  %v5463_v25 = vadd.f32 %v3376_v40, %v8388_v19 }
 0x4fa   : > { %v8515_v58 = vadd.f32 %v5462_v7, %v8428_v43  ;;  %v3612_v21 = vsel %vm1784_vm7, %v9569_v14, 0.0  ;;  %v5850_v14 = vld [vmem:[%s7222_s22 + $0x2] sm:$0x3] }
 0x4fb   : > { %v8521_v6 = vadd.f32 %v5463_v25, %v8428_v43  ;;  %3613 = vadd.xlane.f32.xlu0 %v3612_v21  ;;  %v5397_v20 = vpop.f32.mrb[14].mxu1  ;;  %v3609_v44 = vsel %vm1784_vm7, %v9570_v22, 0.0  ;;  %v8532_v25 = vrot.slane %v5850_v14, %v9821_v10 }
 0x4fc   : > { %v9589_v31 = vmax.f32 %v8515_v58, 0.0  ;;  %v5464_v19 = vadd.f32 %v5397_v20, %v8390_v45  ;;  %3610 = vadd.xlane.f32.xlu1 %v3609_v44  ;;  %v3386_v33 = vpop.f32.mrb[15].mxu1 }
 0x4fd   : > { %v9583_v7 = vmax.f32 %v8521_v6, 0.0  ;;  %v5465_v40 = vadd.f32 %v3386_v33, %v8392_v30 }
 0x4fe   : > { %v8535_v21 = vadd.f32 %v5464_v19, %v8428_v43  ;;  %v3618_v22 = vsel %vm1784_vm7, %v9589_v31, 0.0 }
 0x4ff   : > { %v8541_v32 = vadd.f32 %v5465_v40, %v8428_v43  ;;  %3619 = vadd.xlane.f32.xlu0 %v3618_v22  ;;  %v5400_v45 = vpop.f32.mrb[16].mxu1  ;;  %v3615_v30 = vsel %vm1784_vm7, %v9583_v7, 0.0 }
 0x500   : > { %v9572_v20 = vmax.f32 %v8535_v21, 0.0  ;;  %v5466_v10 = vadd.f32 %v5400_v45, %v8394_v1  ;;  %3616 = vadd.xlane.f32.xlu1 %v3615_v30  ;;  %v3396_v14 = vpop.f32.mrb[17].mxu1 }
 0x501   : > { %v9573_v44 = vmax.f32 %v8541_v32, 0.0  ;;  %v5467_v19 = vadd.f32 %v3396_v14, %v8396_v23 }
 0x502   : > { %v8551_v33 = vadd.f32 %v5466_v10, %v8532_v25  ;;  %v3624_v43 = vsel %vm1784_vm7, %v9572_v20, 0.0 }
 0x503   : > { %v8557_v22 = vadd.f32 %v5467_v19, %v8532_v25  ;;  %3625 = vadd.xlane.f32.xlu0 %v3624_v43  ;;  %v5403_v40 = vpop.f32.mrb[18].mxu1  ;;  %v3621_v1 = vsel %vm1784_vm7, %v9573_v44, 0.0 }
 0x504   : > { %v9574_v45 = vmax.f32 %v8551_v33, 0.0  ;;  %v5468_v23 = vadd.f32 %v5403_v40, %v8398_v27  ;;  %3622 = vadd.xlane.f32.xlu1 %v3621_v1  ;;  %v3406_v30 = vpop.f32.mrb[19].mxu1 }
 0x505   : > { %v9575_v10 = vmax.f32 %v8557_v22, 0.0  ;;  %v5469_v14 = vadd.f32 %v3406_v30, %v8400_v52 }
 0x506   : > { %v8567_v20 = vadd.f32 %v5468_v23, %v8532_v25  ;;  %v3630_v19 = vsel %vm1784_vm7, %v9574_v45, 0.0 }
 0x507   : > { %v8573_v43 = vadd.f32 %v5469_v14, %v8532_v25  ;;  %3631 = vadd.xlane.f32.xlu0 %v3630_v19  ;;  %v5406_v44 = vpop.f32.mrb[20].mxu1  ;;  %v3627_v27 = vsel %vm1784_vm7, %v9575_v10, 0.0 }
 0x508   : > { %v9576_v40 = vmax.f32 %v8567_v20, 0.0  ;;  %v5470_v52 = vadd.f32 %v5406_v44, %v8402_v47  ;;  %3628 = vadd.xlane.f32.xlu1 %v3627_v27  ;;  %v3416_v1 = vpop.f32.mrb[21].mxu1 }
 0x509   : > { %v9577_v23 = vmax.f32 %v8573_v43, 0.0  ;;  %v5471_v30 = vadd.f32 %v3416_v1, %v8404_v34 }
 0x50a   : > { %v8583_v45 = vadd.f32 %v5470_v52, %v8532_v25  ;;  %v3636_v14 = vsel %vm1784_vm7, %v9576_v40, 0.0 }
 0x50b   : > { %v8589_v19 = vadd.f32 %v5471_v30, %v8532_v25  ;;  %3637 = vadd.xlane.f32.xlu0 %v3636_v14  ;;  %v5409_v10 = vpop.f32.mrb[22].mxu1  ;;  %v3633_v47 = vsel %vm1784_vm7, %v9577_v23, 0.0 }
 0x50c   : > { %v9578_v44 = vmax.f32 %v8583_v45, 0.0  ;;  %v5472_v34 = vadd.f32 %v5409_v10, %v8406_v26  ;;  %3634 = vadd.xlane.f32.xlu1 %v3633_v47  ;;  %v3426_v27 = vpop.f32.mrb[23].mxu1 }
 0x50d   : > { %v9579_v52 = vmax.f32 %v8589_v19, 0.0  ;;  %v5473_v1 = vadd.f32 %v3426_v27, %v8408_v17 }
 0x50e   : > { %v8599_v40 = vadd.f32 %v5472_v34, %v8532_v25  ;;  %v3642_v30 = vsel %vm1784_vm7, %v9578_v44, 0.0 }
 0x50f   : > { %v8605_v14 = vadd.f32 %v5473_v1, %v8532_v25  ;;  %3643 = vadd.xlane.f32.xlu0 %v3642_v30  ;;  %v5412_v23 = vpop.f32.mrb[24].mxu1  ;;  %v3639_v26 = vsel %vm1784_vm7, %v9579_v52, 0.0 }
 0x510   : > { %v9580_v10 = vmax.f32 %v8599_v40, 0.0  ;;  %v5474_v17 = vadd.f32 %v5412_v23, %v8410_v50  ;;  %3640 = vadd.xlane.f32.xlu1 %v3639_v26  ;;  %v3436_v47 = vpop.f32.mrb[25].mxu1 }
 0x511   : > { %v9581_v34 = vmax.f32 %v8605_v14, 0.0  ;;  %v5475_v27 = vadd.f32 %v3436_v47, %v8412_v49 }
 0x512   : > { %v8615_v44 = vadd.f32 %v5474_v17, %v8532_v25  ;;  %v3648_v1 = vsel %vm1784_vm7, %v9580_v10, 0.0 }
 0x513   : > { %v8621_v30 = vadd.f32 %v5475_v27, %v8532_v25  ;;  %3649 = vadd.xlane.f32.xlu0 %v3648_v1  ;;  %v5415_v52 = vpop.f32.mrb[26].mxu1  ;;  %v3645_v50 = vsel %vm1784_vm7, %v9581_v34, 0.0  ;;  %v8636_v1 = vpop.permute.xlu1 %4271 }
 0x514   : > { %v9582_v23 = vmax.f32 %v8615_v44, 0.0  ;;  %v5476_v49 = vadd.f32 %v5415_v52, %v8414_v55  ;;  %3646 = vadd.xlane.f32.xlu1 %v3645_v50  ;;  %v3446_v26 = vpop.f32.mrb[27].mxu1  ;;  %9824 = vst [vmem:[#allocation35_spill] sm:$0xff] %v8636_v1 }
 0x515   : > { %v9584_v17 = vmax.f32 %v8621_v30, 0.0  ;;  %v5477_v47 = vadd.f32 %v3446_v26, %v8416_v12 }
 0x516   : > { %v8631_v10 = vadd.f32 %v5476_v49, %v8532_v25  ;;  %v3654_v27 = vsel %vm1784_vm7, %v9582_v23, 0.0 }
 0x517   : > { %v8639_v34 = vadd.f32 %v5477_v47, %v8532_v25  ;;  %3655 = vadd.xlane.f32.xlu0 %v3654_v27  ;;  %v5418_v55 = vpop.f32.mrb[28].mxu1  ;;  %v3651_v52 = vsel %vm1784_vm7, %v9584_v17, 0.0 }
 0x518   : > { %v9585_v12 = vmax.f32 %v8631_v10, 0.0  ;;  %v5478_v50 = vadd.f32 %v5418_v55, %v8418_v36  ;;  %3652 = vadd.xlane.f32.xlu1 %v3651_v52  ;;  %v3456_v49 = vpop.f32.mrb[29].mxu1 }
 0x519   : > { %v9586_v26 = vmax.f32 %v8639_v34, 0.0  ;;  %v5479_v23 = vadd.f32 %v3456_v49, %v8420_v42 }
 0x51a   : > { %v8649_v7 = vadd.f32 %v5478_v50, %v8532_v25  ;;  %v3660_v47 = vsel %vm1784_vm7, %v9585_v12, 0.0  ;;  %v8662_v50 = vpop.permute.xlu1 %4279 }
 0x51b   : > { %v8655_v27 = vadd.f32 %v5479_v23, %v8532_v25  ;;  %3661 = vadd.xlane.f32.xlu0 %v3660_v47  ;;  %v5421_v17 = vpop.f32.mrb[30].mxu1  ;;  %v3657_v36 = vsel %vm1784_vm7, %v9586_v26, 0.0  ;;  %9825 = vst [vmem:[#allocation29_spill] sm:$0xff] %v8662_v50 }
 0x51c   : > { %v9588_v55 = vmax.f32 %v8649_v7, 0.0  ;;  %v5480_v42 = vadd.f32 %v5421_v17, %v8422_v13  ;;  %3658 = vadd.xlane.f32.xlu1 %v3657_v36  ;;  %v3466_v52 = vpop.f32.mrb[31].mxu1  ;;  %v8680_v36 = vpop.permute.xlu0 %4275 }
 0x51d   : > { %v9587_v49 = vmax.f32 %v8655_v27, 0.0  ;;  %v5481_v12 = vadd.f32 %v3466_v52, %v8424_v63  ;;  %9826 = vst [vmem:[#allocation28_spill] sm:$0xff] %v8680_v36 }
 0x51e   : > { %v8667_v23 = vadd.f32 %v5480_v42, %v8532_v25  ;;  %v3666_v47 = vsel %vm1784_vm7, %v9588_v55, 0.0  ;;  %v8685_v52 = vpop.permute.xlu1 %4283 }
 0x51f   : > { %v8673_v26 = vadd.f32 %v5481_v12, %v8532_v25  ;;  %3667 = vadd.xlane.f32.xlu0 %v3666_v47  ;;  %v3663_v13 = vsel %vm1784_vm7, %v9587_v49, 0.0  ;;  %9827 = vst [vmem:[#allocation34_spill] sm:$0xff] %v8685_v52 }
 0x520   : > { %v9590_v17 = vmax.f32 %v8667_v23, 0.0  ;;  %3664 = vadd.xlane.f32.xlu1 %v3663_v13  ;;  %v8690_v12 = vpop.permute.xlu0 %4287 }
 0x521   : > { %v9592_v63 = vmax.f32 %v8673_v26, 0.0  ;;  %9828 = vst [vmem:[#allocation39_spill] sm:$0xff] %v8690_v12 }
 0x522   : > { %v3672_v42 = vsel %vm1784_vm7, %v9590_v17, 0.0  ;;  %v8692_v47 = vpop.permute.xlu1 %4291 }
 0x523   : > { %3673 = vadd.xlane.f32.xlu0 %v3672_v42  ;;  %v3669_v25 = vsel %vm1784_vm7, %v9592_v63, 0.0  ;;  %9829 = vst [vmem:[#allocation38_spill] sm:$0xff] %v8692_v47 }
 0x524   : > { %3670 = vadd.xlane.f32.xlu1 %v3669_v25  ;;  %v8694_v13 = vpop.permute.xlu0 %4295 }
 0x525   : > { %9830 = vst [vmem:[#allocation42_spill] sm:$0xff] %v8694_v13 }
 0x526   : > { %v8696_v49 = vpop.permute.xlu1 %4299 }
 0x527   : > { %9831 = vst [vmem:[#allocation41_spill] sm:$0xff] %v8696_v49 }
 0x528   : > { %v8698_v55 = vpop.permute.xlu0 %4303 }
 0x529   : > { %9832 = vst [vmem:[#allocation59_spill] sm:$0xff] %v8698_v55 }
 0x52a   : > { %v8700_v31 = vpop.permute.xlu1 %4307 }
 0x52b   : > { %9833 = vst [vmem:[#allocation61_spill] sm:$0xff] %v8700_v31 }
 0x52c   : > { %v8702_v17 = vpop.permute.xlu0 %4311 }
 0x52d   : > { %9834 = vst [vmem:[#allocation36_spill] sm:$0xff] %v8702_v17 }
 0x52e   : > { %v8704_v42 = vpop.permute.xlu1 %4315 }
 0x52f   : > { %9835 = vst [vmem:[#allocation33_spill] sm:$0xff] %v8704_v42 }
 0x530   : > { %v8706_v18 = vpop.permute.xlu0 %4319 }
 0x531   : > { %9836 = vst [vmem:[#allocation60_spill] sm:$0xff] %v8706_v18 }
 0x532   : > { %v8708_v63 = vpop.permute.xlu1 %4323 }
 0x533   : > { %9837 = vst [vmem:[#allocation62_spill] sm:$0xff] %v8708_v63 }
 0x534   : > { %v8710_v25 = vpop.permute.xlu0 %4327 }
 0x535   : > { %9838 = vst [vmem:[#allocation37_spill] sm:$0xff] %v8710_v25 }
 0x536   : > { %v8712_v51 = vpop.permute.xlu1 %4331 }
 0x537   : > { %9839 = vst [vmem:[#allocation64_spill] sm:$0xff] %v8712_v51 }
 0x538   : > { %v8714_v12 = vpop.permute.xlu0 %4338 }
 0x539   : > { %9840 = vst [vmem:[#allocation63_spill] sm:$0xff] %v8714_v12 }
 0x53a   : > { %v8716_v13 = vpop.permute.xlu1 %4342 }
 0x53b   : > { %9841 = vst [vmem:[#allocation74_spill] sm:$0xff] %v8716_v13 }
 0x53c   : > { %v8718_v49 = vpop.permute.xlu0 %4346 }
 0x53d   : > { %9842 = vst [vmem:[#allocation24_spill] sm:$0xff] %v8718_v49 }
 0x53e   : > { %v8720_v55 = vpop.permute.xlu1 %4350 }
 0x53f   : > { %9843 = vst [vmem:[#allocation25_spill] sm:$0xff] %v8720_v55 }
 0x540   : > { %v8722_v31 = vpop.permute.xlu0 %4354 }
 0x541   : > { %9844 = vst [vmem:[#allocation49_spill] sm:$0xff] %v8722_v31 }
 0x542   : > { %v8724_v17 = vpop.permute.xlu1 %4358 }
 0x543   : > { %9845 = vst [vmem:[#allocation73_spill] sm:$0xff] %v8724_v17 }
 0x544   : > { %v8726_v42 = vpop.permute.xlu0 %4362 }
 0x545   : > { %9846 = vst [vmem:[#allocation43_spill] sm:$0xff] %v8726_v42  ;;  %v9854_v42 = vmax.f32 %v8431_v62, 0.0 }
 0x546   : > { %v8728_v18 = vpop.permute.xlu1 %4366 }
 0x547   : > { %9847 = vst [vmem:[#allocation45_spill] sm:$0xff] %v8728_v18 }
 0x548   : > { %v8730_v63 = vpop.permute.xlu0 %4370 }
 0x549   : > { %9848 = vst [vmem:[#allocation47_spill] sm:$0xff] %v8730_v63  ;;  %v9855_v63 = vmax.f32 %v8434_v54, 0.0  ;;  %v9857_v54 = vmax.f32 %v8445_v53, 0.0 }
 0x54a   : > { %v8732_v25 = vpop.permute.xlu1 %4374 }
 0x54b   : > { %9849 = vst [vmem:[#allocation46_spill] sm:$0xff] %v8732_v25 }
 0x54c   : > { %v8734_v51 = vpop.permute.xlu0 %4378 }
 0x54d   : > { %9850 = vst [vmem:[#allocation50_spill] sm:$0xff] %v8734_v51 }
 0x54e   : > { %v8736_v12 = vpop.permute.xlu1 %4382 }
 0x54f   : > { %9851 = vst [vmem:[#allocation10_spill] sm:$0xff] %v8736_v12 }
 0x550   : > { %v8738_v13 = vpop.permute.xlu0 %4386 }
 0x551   : > { %9852 = vst [vmem:[#allocation11_spill] sm:$0xff] %v8738_v13 }
 0x552   : > { %v8740_v49 = vpop.permute.xlu1 %4390 }
 0x553   : > { %9853 = vst [vmem:[#allocation48_spill] sm:$0xff] %v8740_v49 }
 0x574   : > { %v3584_v55 = vpop.xlane.xlu0 %3583 }
 0x575   : > { %v3676_v31 = vmul.f32 0.03125, %v3584_v55  ;;  %v3581_v47 = vpop.xlane.xlu1 %3580 }
 0x576   : > { %v3675_v17 = vmul.f32 0.03125, %v3581_v47  ;;  %v9856_v47 = vmax.f32 %v8439_v38, 0.0  ;;  %v9858_v38 = vmax.f32 %v8453_v15, 0.0 }
 0x577   : > { %v8744_v50 = vsub.f32 %v9854_v42, %v3676_v31 }
 0x578   : > { %v8748_v18 = vsub.f32 %v9855_v63, %v3675_v17  ;;  %v3590_v25 = vpop.xlane.xlu0 %3589 }
 0x579   : > { %v3678_v51 = vmul.f32 0.03125, %v3590_v25  ;;  %v3587_v52 = vpop.xlane.xlu1 %3586  ;;  %v3740_v13 = vmul.f32 %v8744_v50, %v8744_v50 }
 0x57a   : > { %v3677_v12 = vmul.f32 0.03125, %v3587_v52  ;;  %v3739_v55 = vmul.f32 %v8748_v18, %v8748_v18 }
 0x57b   : > { %v8756_v49 = vsub.f32 %v9856_v47, %v3678_v51  ;;  %v3774_v62 = vsel %vm1784_vm7, %v3740_v13, 0.0 }
 0x57c   : > { %v8761_v31 = vsub.f32 %v9857_v54, %v3677_v12  ;;  %3775 = vadd.xlane.f32.xlu0 %v3774_v62  ;;  %v3596_v17 = vpop.xlane.xlu0 %3595  ;;  %v3771_v63 = vsel %vm1784_vm7, %v3739_v55, 0.0  ;;  %v9859_v12 = vmax.f32 %v8459_v24, 0.0 }
 0x57d   : > { %v3680_v42 = vmul.f32 0.03125, %v3596_v17  ;;  %v3593_v25 = vpop.xlane.xlu1 %3592  ;;  %3772 = vadd.xlane.f32.xlu1 %v3771_v63  ;;  %v3742_v52 = vmul.f32 %v8756_v49, %v8756_v49 }
 0x57e   : > { %v3679_v1 = vmul.f32 0.03125, %v3593_v25  ;;  %v3741_v51 = vmul.f32 %v8761_v31, %v8761_v31 }
 0x57f   : > { %v8770_v13 = vsub.f32 %v9858_v38, %v3680_v42  ;;  %v3780_v53 = vsel %vm1784_vm7, %v3742_v52, 0.0  ;;  %v9860_v42 = vmax.f32 %v8467_v8, 0.0 }
 0x580   : > { %v8775_v47 = vsub.f32 %v9859_v12, %v3679_v1  ;;  %3781 = vadd.xlane.f32.xlu0 %v3780_v53  ;;  %v3602_v55 = vpop.xlane.xlu0 %3601  ;;  %v3777_v62 = vsel %vm1784_vm7, %v3741_v51, 0.0  ;;  %v9861_v1 = vmax.f32 %v8473_v37, 0.0 }
 0x581   : > { %v3682_v54 = vmul.f32 0.03125, %v3602_v55  ;;  %v3599_v17 = vpop.xlane.xlu1 %3598  ;;  %3778 = vadd.xlane.f32.xlu1 %v3777_v62  ;;  %v3744_v63 = vmul.f32 %v8770_v13, %v8770_v13 }
 0x582   : > { %v3681_v25 = vmul.f32 0.03125, %v3599_v17  ;;  %v3743_v15 = vmul.f32 %v8775_v47, %v8775_v47 }
 0x583   : > { %v8784_v52 = vsub.f32 %v9860_v42, %v3682_v54  ;;  %v3786_v24 = vsel %vm1784_vm7, %v3744_v63, 0.0  ;;  %v9862_v54 = vmax.f32 %v8483_v41, 0.0 }
 0x584   : > { %v8789_v38 = vsub.f32 %v9861_v1, %v3681_v25  ;;  %3787 = vadd.xlane.f32.xlu0 %v3786_v24  ;;  %v3608_v51 = vpop.xlane.xlu0 %3607  ;;  %v3783_v53 = vsel %vm1784_vm7, %v3743_v15, 0.0  ;;  %v9863_v25 = vmax.f32 %v8489_v29, 0.0 }
 0x585   : > { %v3684_v12 = vmul.f32 0.03125, %v3608_v51  ;;  %v3605_v55 = vpop.xlane.xlu1 %3604  ;;  %3784 = vadd.xlane.f32.xlu1 %v3783_v53  ;;  %v3746_v62 = vmul.f32 %v8784_v52, %v8784_v52 }
 0x586   : > { %v3683_v17 = vmul.f32 0.03125, %v3605_v55  ;;  %v3745_v8 = vmul.f32 %v8789_v38, %v8789_v38 }
 0x587   : > { %v8798_v63 = vsub.f32 %v9862_v54, %v3684_v12  ;;  %v3792_v37 = vsel %vm1784_vm7, %v3746_v62, 0.0  ;;  %v9864_v12 = vmax.f32 %v8499_v57, 0.0 }
 0x588   : > { %v8803_v42 = vsub.f32 %v9863_v25, %v3683_v17  ;;  %3793 = vadd.xlane.f32.xlu0 %v3792_v37  ;;  %v3614_v15 = vpop.xlane.xlu0 %3613  ;;  %v3789_v24 = vsel %vm1784_vm7, %v3745_v8, 0.0  ;;  %v9865_v17 = vmax.f32 %v8505_v0, 0.0 }
 0x589   : > { %v3686_v1 = vmul.f32 0.03125, %v3614_v15  ;;  %v3611_v51 = vpop.xlane.xlu1 %3610  ;;  %3790 = vadd.xlane.f32.xlu1 %v3789_v24  ;;  %v3748_v53 = vmul.f32 %v8798_v63, %v8798_v63 }
 0x58a   : > { %v3685_v55 = vmul.f32 0.03125, %v3611_v51  ;;  %v3747_v41 = vmul.f32 %v8803_v42, %v8803_v42 }
 0x58b   : > { %v8812_v62 = vsub.f32 %v9864_v12, %v3686_v1  ;;  %v3798_v29 = vsel %vm1784_vm7, %v3748_v53, 0.0  ;;  %v9866_v1 = vmax.f32 %v8515_v58, 0.0 }
 0x58c   : > { %v8817_v54 = vsub.f32 %v9865_v17, %v3685_v55  ;;  %3799 = vadd.xlane.f32.xlu0 %v3798_v29  ;;  %v3620_v8 = vpop.xlane.xlu0 %3619  ;;  %v3795_v37 = vsel %vm1784_vm7, %v3747_v41, 0.0  ;;  %v9867_v55 = vmax.f32 %v8521_v6, 0.0 }
 0x58d   : > { %v3688_v25 = vmul.f32 0.03125, %v3620_v8  ;;  %v3617_v15 = vpop.xlane.xlu1 %3616  ;;  %3796 = vadd.xlane.f32.xlu1 %v3795_v37  ;;  %v3750_v24 = vmul.f32 %v8812_v62, %v8812_v62 }
 0x58e   : > { %v3687_v51 = vmul.f32 0.03125, %v3617_v15  ;;  %v3749_v57 = vmul.f32 %v8817_v54, %v8817_v54 }
 0x58f   : > { %v8826_v53 = vsub.f32 %v9866_v1, %v3688_v25  ;;  %v3804_v0 = vsel %vm1784_vm7, %v3750_v24, 0.0  ;;  %v9868_v25 = vmax.f32 %v8535_v21, 0.0 }
 0x590   : > { %v8831_v12 = vsub.f32 %v9867_v55, %v3687_v51  ;;  %3805 = vadd.xlane.f32.xlu0 %v3804_v0  ;;  %v3626_v41 = vpop.xlane.xlu0 %3625  ;;  %v3801_v29 = vsel %vm1784_vm7, %v3749_v57, 0.0  ;;  %v9869_v51 = vmax.f32 %v8541_v32, 0.0 }
 0x591   : > { %v3690_v17 = vmul.f32 0.03125, %v3626_v41  ;;  %v3623_v8 = vpop.xlane.xlu1 %3622  ;;  %3802 = vadd.xlane.f32.xlu1 %v3801_v29  ;;  %v3752_v37 = vmul.f32 %v8826_v53, %v8826_v53 }
 0x592   : > { %v3689_v15 = vmul.f32 0.03125, %v3623_v8  ;;  %v3751_v58 = vmul.f32 %v8831_v12, %v8831_v12 }
 0x593   : > { %v8840_v24 = vsub.f32 %v9868_v25, %v3690_v17  ;;  %v3810_v6 = vsel %vm1784_vm7, %v3752_v37, 0.0  ;;  %v9870_v17 = vmax.f32 %v8551_v33, 0.0 }
 0x594   : > { %v8845_v1 = vsub.f32 %v9869_v51, %v3689_v15  ;;  %3811 = vadd.xlane.f32.xlu0 %v3810_v6  ;;  %v3632_v57 = vpop.xlane.xlu0 %3631  ;;  %v3807_v0 = vsel %vm1784_vm7, %v3751_v58, 0.0  ;;  %v9871_v15 = vmax.f32 %v8557_v22, 0.0 }
 0x595   : > { %v3692_v55 = vmul.f32 0.03125, %v3632_v57  ;;  %v3629_v41 = vpop.xlane.xlu1 %3628  ;;  %3808 = vadd.xlane.f32.xlu1 %v3807_v0  ;;  %v3754_v29 = vmul.f32 %v8840_v24, %v8840_v24 }
 0x596   : > { %v3691_v8 = vmul.f32 0.03125, %v3629_v41  ;;  %v3753_v21 = vmul.f32 %v8845_v1, %v8845_v1 }
 0x597   : > { %v8854_v37 = vsub.f32 %v9870_v17, %v3692_v55  ;;  %v3816_v32 = vsel %vm1784_vm7, %v3754_v29, 0.0  ;;  %v9872_v55 = vmax.f32 %v8567_v20, 0.0 }
 0x598   : > { %v8859_v25 = vsub.f32 %v9871_v15, %v3691_v8  ;;  %3817 = vadd.xlane.f32.xlu0 %v3816_v32  ;;  %v3638_v58 = vpop.xlane.xlu0 %3637  ;;  %v3813_v6 = vsel %vm1784_vm7, %v3753_v21, 0.0  ;;  %v9873_v8 = vmax.f32 %v8573_v43, 0.0 }
 0x599   : > { %v3694_v51 = vmul.f32 0.03125, %v3638_v58  ;;  %v3635_v57 = vpop.xlane.xlu1 %3634  ;;  %3814 = vadd.xlane.f32.xlu1 %v3813_v6  ;;  %v3756_v0 = vmul.f32 %v8854_v37, %v8854_v37 }
 0x59a   : > { %v3693_v41 = vmul.f32 0.03125, %v3635_v57  ;;  %v3755_v33 = vmul.f32 %v8859_v25, %v8859_v25 }
 0x59b   : > { %v8868_v29 = vsub.f32 %v9872_v55, %v3694_v51  ;;  %v3822_v22 = vsel %vm1784_vm7, %v3756_v0, 0.0  ;;  %v9874_v51 = vmax.f32 %v8583_v45, 0.0 }
 0x59c   : > { %v8873_v17 = vsub.f32 %v9873_v8, %v3693_v41  ;;  %3823 = vadd.xlane.f32.xlu0 %v3822_v22  ;;  %v3644_v21 = vpop.xlane.xlu0 %3643  ;;  %v3819_v32 = vsel %vm1784_vm7, %v3755_v33, 0.0  ;;  %v9875_v41 = vmax.f32 %v8589_v19, 0.0 }
 0x59d   : > { %v3696_v15 = vmul.f32 0.03125, %v3644_v21  ;;  %v3641_v58 = vpop.xlane.xlu1 %3640  ;;  %3820 = vadd.xlane.f32.xlu1 %v3819_v32  ;;  %v3758_v6 = vmul.f32 %v8868_v29, %v8868_v29 }
 0x59e   : > { %v3695_v57 = vmul.f32 0.03125, %v3641_v58  ;;  %v3757_v20 = vmul.f32 %v8873_v17, %v8873_v17 }
 0x59f   : > { %v8882_v0 = vsub.f32 %v9874_v51, %v3696_v15  ;;  %v3828_v43 = vsel %vm1784_vm7, %v3758_v6, 0.0  ;;  %v9876_v15 = vmax.f32 %v8599_v40, 0.0 }
 0x5a0   : > { %v8887_v55 = vsub.f32 %v9875_v41, %v3695_v57  ;;  %3829 = vadd.xlane.f32.xlu0 %v3828_v43  ;;  %v3650_v33 = vpop.xlane.xlu0 %3649  ;;  %v3825_v22 = vsel %vm1784_vm7, %v3757_v20, 0.0  ;;  %v9877_v57 = vmax.f32 %v8605_v14, 0.0 }
 0x5a1   : > { %v3698_v8 = vmul.f32 0.03125, %v3650_v33  ;;  %v3647_v21 = vpop.xlane.xlu1 %3646  ;;  %3826 = vadd.xlane.f32.xlu1 %v3825_v22  ;;  %v3760_v32 = vmul.f32 %v8882_v0, %v8882_v0 }
 0x5a2   : > { %v3697_v58 = vmul.f32 0.03125, %v3647_v21  ;;  %v3759_v45 = vmul.f32 %v8887_v55, %v8887_v55 }
 0x5a3   : > { %v8896_v6 = vsub.f32 %v9876_v15, %v3698_v8  ;;  %v3834_v19 = vsel %vm1784_vm7, %v3760_v32, 0.0  ;;  %v9878_v8 = vmax.f32 %v8615_v44, 0.0 }
 0x5a4   : > { %v8901_v51 = vsub.f32 %v9877_v57, %v3697_v58  ;;  %3835 = vadd.xlane.f32.xlu0 %v3834_v19  ;;  %v3656_v20 = vpop.xlane.xlu0 %3655  ;;  %v3831_v43 = vsel %vm1784_vm7, %v3759_v45, 0.0  ;;  %v9879_v58 = vmax.f32 %v8621_v30, 0.0 }
 0x5a5   : > { %v3700_v41 = vmul.f32 0.03125, %v3656_v20  ;;  %v3653_v33 = vpop.xlane.xlu1 %3652  ;;  %3832 = vadd.xlane.f32.xlu1 %v3831_v43  ;;  %v3762_v22 = vmul.f32 %v8896_v6, %v8896_v6 }
 0x5a6   : > { %v3699_v21 = vmul.f32 0.03125, %v3653_v33  ;;  %v3761_v40 = vmul.f32 %v8901_v51, %v8901_v51 }
 0x5a7   : > { %v8910_v32 = vsub.f32 %v9878_v8, %v3700_v41  ;;  %v3840_v14 = vsel %vm1784_vm7, %v3762_v22, 0.0  ;;  %v9880_v41 = vmax.f32 %v8631_v10, 0.0 }
 0x5a8   : > { %v8915_v15 = vsub.f32 %v9879_v58, %v3699_v21  ;;  %3841 = vadd.xlane.f32.xlu0 %v3840_v14  ;;  %v3662_v45 = vpop.xlane.xlu0 %3661  ;;  %v3837_v19 = vsel %vm1784_vm7, %v3761_v40, 0.0  ;;  %v9881_v21 = vmax.f32 %v8639_v34, 0.0 }
 0x5a9   : > { %v3702_v57 = vmul.f32 0.03125, %v3662_v45  ;;  %v3659_v20 = vpop.xlane.xlu1 %3658  ;;  %3838 = vadd.xlane.f32.xlu1 %v3837_v19  ;;  %v3764_v43 = vmul.f32 %v8910_v32, %v8910_v32 }
 0x5aa   : > { %v3701_v33 = vmul.f32 0.03125, %v3659_v20  ;;  %v3763_v44 = vmul.f32 %v8915_v15, %v8915_v15 }
 0x5ab   : > { %v8924_v22 = vsub.f32 %v9880_v41, %v3702_v57  ;;  %v3846_v30 = vsel %vm1784_vm7, %v3764_v43, 0.0  ;;  %v9882_v57 = vmax.f32 %v8649_v7, 0.0 }
 0x5ac   : > { %v8929_v8 = vsub.f32 %v9881_v21, %v3701_v33  ;;  %3847 = vadd.xlane.f32.xlu0 %v3846_v30  ;;  %v3668_v40 = vpop.xlane.xlu0 %3667  ;;  %v3843_v14 = vsel %vm1784_vm7, %v3763_v44, 0.0  ;;  %v9883_v33 = vmax.f32 %v8655_v27, 0.0 }
 0x5ad   : > { %v3704_v58 = vmul.f32 0.03125, %v3668_v40  ;;  %v3665_v45 = vpop.xlane.xlu1 %3664  ;;  %3844 = vadd.xlane.f32.xlu1 %v3843_v14  ;;  %v3766_v19 = vmul.f32 %v8924_v22, %v8924_v22 }
 0x5ae   : > { %v3703_v20 = vmul.f32 0.03125, %v3665_v45  ;;  %v3765_v10 = vmul.f32 %v8929_v8, %v8929_v8 }
 0x5af   : > { %v8938_v43 = vsub.f32 %v9882_v57, %v3704_v58  ;;  %v3852_v34 = vsel %vm1784_vm7, %v3766_v19, 0.0  ;;  %v9884_v58 = vmax.f32 %v8667_v23, 0.0 }
 0x5b0   : > { %v8943_v41 = vsub.f32 %v9883_v33, %v3703_v20  ;;  %3853 = vadd.xlane.f32.xlu0 %v3852_v34  ;;  %v3674_v44 = vpop.xlane.xlu0 %3673  ;;  %v3849_v30 = vsel %vm1784_vm7, %v3765_v10, 0.0  ;;  %v9885_v20 = vmax.f32 %v8673_v26, 0.0 }
 0x5b1   : > { %v3706_v21 = vmul.f32 0.03125, %v3674_v44  ;;  %3850 = vadd.xlane.f32.xlu1 %v3849_v30  ;;  %v3671_v40 = vpop.xlane.xlu1 %3670  ;;  %v3768_v14 = vmul.f32 %v8938_v43, %v8938_v43 }
 0x5b2   : > { %v3705_v45 = vmul.f32 0.03125, %v3671_v40  ;;  %v3767_v7 = vmul.f32 %v8943_v41, %v8943_v41 }
 0x5b3   : > { %v8952_v19 = vsub.f32 %v9884_v58, %v3706_v21  ;;  %v3858_v27 = vsel %vm1784_vm7, %v3768_v14, 0.0 }
 0x5b4   : > { %v8957_v57 = vsub.f32 %v9885_v20, %v3705_v45  ;;  %3859 = vadd.xlane.f32.xlu0 %v3858_v27  ;;  %v3855_v10 = vsel %vm1784_vm7, %v3767_v7, 0.0 }
 0x5b5   : > { %3856 = vadd.xlane.f32.xlu1 %v3855_v10  ;;  %v3770_v34 = vmul.f32 %v8952_v19, %v8952_v19 }
 0x5b6   : > { %9886 = vst [vmem:[#allocation51_spill] sm:$0xff] %v8957_v57  ;;  %v3769_v33 = vmul.f32 %v8957_v57, %v8957_v57 }
 0x5b7   : > { %v3864_v23 = vsel %vm1784_vm7, %v3770_v34, 0.0 }
 0x5b8   : > { %3865 = vadd.xlane.f32.xlu0 %v3864_v23  ;;  %v3861_v44 = vsel %vm1784_vm7, %v3769_v33, 0.0 }
 0x5b9   : > { %3862 = vadd.xlane.f32.xlu1 %v3861_v44 }
 0x5ca   : > { %4398 = vbcast.lane.b32.xlu1 %v8311_v39, 376 }
 0x5ce   : > { %4394 = vbcast.lane.b32.xlu0 %v8311_v39, 368 }
 0x609   : > { %v3776_v26 = vpop.xlane.xlu0 %3775 }
 0x60a   : > { %v3868_v30 = vmul.f32 0.03125, %v3776_v26  ;;  %v3773_v21 = vpop.xlane.xlu1 %3772  ;;  %v3997_v26 = vsub.s32 2, %v9703_v5 }
 0x60b   : > { %v3867_v40 = vmul.f32 0.03125, %v3773_v21 }
 0x60c   : > { %v3900_v14 = vadd.f32 0.0001, %v3868_v30 }
 0x60d   : > { %v3899_v45 = vadd.f32 0.0001, %v3867_v40  ;;  %v3782_v7 = vpop.xlane.xlu0 %3781  ;;  %v4033_v40 = vsub.s32 3, %v9703_v5 }
 0x60e   : > { %5785 = vrsqrt.f32 %v3900_v14  ;;  %v3870_v58 = vmul.f32 0.03125, %v3782_v7  ;;  %v3779_v27 = vpop.xlane.xlu1 %3778 }
 0x60f   : > { %5787 = vrsqrt.f32 %v3899_v45  ;;  %v3869_v20 = vmul.f32 0.03125, %v3779_v27 }
 0x610   : > { %v3902_v10 = vadd.f32 0.0001, %v3870_v58  ;;  %v5851_v58 = vld [vmem:[%s9390_s6] sm:$0x1f] }
 0x611   : > { %v3901_v34 = vadd.f32 0.0001, %v3869_v20  ;;  %v3788_v33 = vpop.xlane.xlu0 %3787  ;;  %v8973_v27 = vrot.slane %v5851_v58, %v3997_v26 }
 0x612   : > { %5789 = vrsqrt.f32 %v3902_v10  ;;  %v3872_v23 = vmul.f32 0.03125, %v3788_v33  ;;  %v3785_v44 = vpop.xlane.xlu1 %3784 }
 0x613   : > { %5791 = vrsqrt.f32 %v3901_v34  ;;  %v3871_v39 = vmul.f32 0.03125, %v3785_v44 }
 0x614   : > { %v3904_v36 = vadd.f32 0.0001, %v3872_v23 }
 0x615   : > { %v3903_v21 = vadd.f32 0.0001, %v3871_v39  ;;  %v3794_v30 = vpop.xlane.xlu0 %3793  ;;  %v8976_v39 = vrot.slane %v5851_v58, %v4033_v40 }
 0x616   : > { %5793 = vrsqrt.f32 %v3904_v36  ;;  %v3874_v14 = vmul.f32 0.03125, %v3794_v30  ;;  %v3791_v7 = vpop.xlane.xlu1 %3790  ;;  %v4101_v36 = vsub.s32 4, %v9703_v5 }
 0x617   : > { %v3873_v45 = vmul.f32 0.03125, %v3791_v7  ;;  %5795 = vrsqrt.f32 %v3903_v21 }
 0x618   : > { %v5786_v20 = vpop.eup %5785  ;;  %v3906_v10 = vadd.f32 0.0001, %v3874_v14 }
 0x619   : > { %v5788_v34 = vpop.eup %5787  ;;  %v3905_v33 = vadd.f32 0.0001, %v3873_v45  ;;  %v3800_v23 = vpop.xlane.xlu0 %3799  ;;  %v3964_v44 = vmul.f32 %v5786_v20, %v8744_v50  ;;  %v8983_v20 = vrot.slane %v5851_v58, %v4101_v36 }
 0x61a   : > { %5797 = vrsqrt.f32 %v3906_v10  ;;  %v3876_v30 = vmul.f32 0.03125, %v3800_v23  ;;  %v3797_v7 = vpop.xlane.xlu1 %3796  ;;  %v3963_v59 = vmul.f32 %v5788_v34, %v8748_v18 }
 0x61b   : > { %v3875_v9 = vmul.f32 0.03125, %v3797_v7  ;;  %v4000_v26 = vmul.f32 %v8973_v27, %v3964_v44  ;;  %5799 = vrsqrt.f32 %v3905_v33 }
 0x61c   : > { %v5790_v16 = vpop.eup %5789  ;;  %v3908_v21 = vadd.f32 0.0001, %v3876_v30  ;;  %v3999_v14 = vmul.f32 %v8973_v27, %v3963_v59  ;;  %v9887_v30 = vld [vmem:[#allocation12_spill] sm:$0xff] }
 0x61d   : > { %v5792_v45 = vpop.eup %5791  ;;  %v3907_v57 = vadd.f32 0.0001, %v3875_v9  ;;  %v3806_v50 = vpop.xlane.xlu0 %3805  ;;  %v4036_v40 = vadd.f32 %v8976_v39, %v4000_v26  ;;  %v3966_v10 = vmul.f32 %v5790_v16, %v8756_v49  ;;  %v9888_v26 = vld [vmem:[#allocation13_spill] sm:$0xff] }
 0x61e   : > { %5801 = vrsqrt.f32 %v3908_v21  ;;  %v3878_v23 = vmul.f32 0.03125, %v3806_v50  ;;  %v3803_v18 = vpop.xlane.xlu1 %3802  ;;  %v4035_v34 = vadd.f32 %v8976_v39, %v3999_v14  ;;  %v3965_v44 = vmul.f32 %v5792_v45, %v8761_v31 }
 0x61f   : > { %v3877_v33 = vmul.f32 0.03125, %v3803_v18  ;;  %v4068_v7 = vmul.f32 %v9887_v30, %v4036_v40  ;;  %v4002_v59 = vmul.f32 %v8973_v27, %v3966_v10  ;;  %5803 = vrsqrt.f32 %v3907_v57 }
 0x620   : > { %v5794_v9 = vpop.eup %5793  ;;  %v3910_v5 = vadd.f32 0.0001, %v3878_v23  ;;  %v4067_v58 = vmul.f32 %v9888_v26, %v4035_v34  ;;  %v4001_v36 = vmul.f32 %v8973_v27, %v3965_v44  ;;  %v9889_v34 = vld [vmem:[#allocation14_spill] sm:$0xff] }
 0x621   : > { %v3909_v16 = vadd.f32 0.0001, %v3877_v33  ;;  %v3812_v49 = vpop.xlane.xlu0 %3811  ;;  %v4104_v21 = vmul.f32 %v8983_v20, %v4068_v7  ;;  %v4038_v14 = vadd.f32 %v8976_v39, %v4002_v59  ;;  %v3968_v31 = vmul.f32 %v5794_v9, %v8770_v13  ;;  %v5796_v45 = vpop.eup %5795  ;;  %v9890_v13 = vld [vmem:[#allocation15_spill] sm:$0xff] }
 0x622   : > { %5805 = vrsqrt.f32 %v3910_v5  ;;  %v3880_v50 = vmul.f32 0.03125, %v3812_v49  ;;  %v3809_v40 = vpop.xlane.xlu1 %3808  ;;  %v4103_v10 = vmul.f32 %v8983_v20, %v4067_v58  ;;  %v4037_v57 = vadd.f32 %v8976_v39, %v4001_v36 }
 0x623   : > { %5807 = vrsqrt.f32 %v3909_v16  ;;  %v3879_v23 = vmul.f32 0.03125, %v3809_v40  ;;  %v4138_v18 = vsel %vm1784_vm7, %v4104_v21, 0.0  ;;  %v4070_v44 = vmul.f32 %v9889_v34, %v4038_v14 }
 0x624   : > { %v5798_v33 = vpop.eup %5797  ;;  %v3912_v30 = vadd.f32 0.0001, %v3880_v50  ;;  %4139 = vadd.xlane.f32.xlu0 %v4138_v18  ;;  %v4135_v7 = vsel %vm1784_vm7, %v4103_v10, 0.0  ;;  %v4069_v59 = vmul.f32 %v9890_v13, %v4037_v57  ;;  %v4004_v5 = vmul.f32 %v8973_v27, %v3968_v31 }
 0x625   : > { %v3911_v9 = vadd.f32 0.0001, %v3879_v23  ;;  %4136 = vadd.xlane.f32.xlu1 %v4135_v7  ;;  %v3818_v26 = vpop.xlane.xlu0 %3817  ;;  %v4106_v58 = vmul.f32 %v8983_v20, %v4070_v44  ;;  %v3967_v36 = vmul.f32 %v5796_v45, %v8775_v47  ;;  %v3970_v16 = vmul.f32 %v5798_v33, %v8784_v52  ;;  %v5800_v49 = vpop.eup %5799  ;;  %v9891_v52 = vld [vmem:[#allocation17_spill] sm:$0xff] }
 0x626   : > { %5809 = vrsqrt.f32 %v3912_v30  ;;  %v3882_v21 = vmul.f32 0.03125, %v3818_v26  ;;  %v3815_v14 = vpop.xlane.xlu1 %3814  ;;  %v4105_v50 = vmul.f32 %v8983_v20, %v4069_v59  ;;  %v4040_v40 = vadd.f32 %v8976_v39, %v4004_v5 }
 0x627   : > { %5811 = vrsqrt.f32 %v3911_v9  ;;  %v3881_v10 = vmul.f32 0.03125, %v3815_v14  ;;  %v4144_v31 = vsel %vm1784_vm7, %v4106_v58, 0.0  ;;  %v4003_v57 = vmul.f32 %v8973_v27, %v3967_v36 }
 0x628   : > { %v5802_v23 = vpop.eup %5801  ;;  %v3914_v18 = vadd.f32 0.0001, %v3882_v21  ;;  %4145 = vadd.xlane.f32.xlu0 %v4144_v31  ;;  %v4141_v47 = vsel %vm1784_vm7, %v4105_v50, 0.0  ;;  %v4072_v45 = vmul.f32 %v9891_v52, %v4040_v40  ;;  %v4006_v34 = vmul.f32 %v8973_v27, %v3970_v16  ;;  %v9892_v16 = vld [vmem:[#allocation16_spill] sm:$0xff] }
 0x629   : > { %v3913_v44 = vadd.f32 0.0001, %v3881_v10  ;;  %4142 = vadd.xlane.f32.xlu1 %v4141_v47  ;;  %v3824_v33 = vpop.xlane.xlu0 %3823  ;;  %v4039_v30 = vadd.f32 %v8976_v39, %v4003_v57  ;;  %v3969_v7 = vmul.f32 %v5800_v49, %v8789_v38  ;;  %v3972_v13 = vmul.f32 %v5802_v23, %v8798_v63  ;;  %v5804_v59 = vpop.eup %5803  ;;  %v9893_v49 = vld [vmem:[#allocation18_spill] sm:$0xff] }
 0x62a   : > { %5813 = vrsqrt.f32 %v3914_v18  ;;  %v3884_v5 = vmul.f32 0.03125, %v3824_v33  ;;  %v3821_v9 = vpop.xlane.xlu1 %3820  ;;  %v4108_v26 = vmul.f32 %v8983_v20, %v4072_v45  ;;  %v4042_v58 = vadd.f32 %v8976_v39, %v4006_v34 }
 0x62b   : > { %5815 = vrsqrt.f32 %v3913_v44  ;;  %v3883_v36 = vmul.f32 0.03125, %v3821_v9  ;;  %v4071_v21 = vmul.f32 %v9892_v16, %v4039_v30  ;;  %v4005_v14 = vmul.f32 %v8973_v27, %v3969_v7 }
 0x62c   : > { %v5806_v50 = vpop.eup %5805  ;;  %v3916_v40 = vadd.f32 0.0001, %v3884_v5  ;;  %v4150_v38 = vsel %vm1784_vm7, %v4108_v26, 0.0  ;;  %v4074_v63 = vmul.f32 %v9893_v49, %v4042_v58  ;;  %v4008_v10 = vmul.f32 %v8973_v27, %v3972_v13  ;;  %v9894_v13 = vld [vmem:[#allocation19_spill] sm:$0xff] }
 0x62d   : > { %v5808_v31 = vpop.eup %5807  ;;  %v3915_v57 = vadd.f32 0.0001, %v3883_v36  ;;  %4151 = vadd.xlane.f32.xlu0 %v4150_v38  ;;  %v4107_v23 = vmul.f32 %v8983_v20, %v4071_v21  ;;  %v3830_v18 = vpop.xlane.xlu0 %3829  ;;  %v4041_v47 = vadd.f32 %v8976_v39, %v4005_v14  ;;  %v3971_v52 = vmul.f32 %v5804_v59, %v8803_v42  ;;  %v9895_v36 = vld [vmem:[#allocation20_spill] sm:$0xff] }
 0x62e   : > { %5817 = vrsqrt.f32 %v3916_v40  ;;  %v3886_v45 = vmul.f32 0.03125, %v3830_v18  ;;  %v3827_v34 = vpop.xlane.xlu1 %3826  ;;  %v4110_v44 = vmul.f32 %v8983_v20, %v4074_v63  ;;  %v4044_v33 = vadd.f32 %v8976_v39, %v4008_v10 }
 0x62f   : > { %5819 = vrsqrt.f32 %v3915_v57  ;;  %v4147_v30 = vsel %vm1784_vm7, %v4107_v23, 0.0  ;;  %v3885_v7 = vmul.f32 0.03125, %v3827_v34  ;;  %v4073_v5 = vmul.f32 %v9894_v13, %v4041_v47 }
 0x630   : > { %v5810_v9 = vpop.eup %5809  ;;  %4148 = vadd.xlane.f32.xlu1 %v4147_v30  ;;  %v3918_v26 = vadd.f32 0.0001, %v3886_v45  ;;  %v4156_v58 = vsel %vm1784_vm7, %v4110_v44, 0.0  ;;  %v4076_v42 = vmul.f32 %v9895_v36, %v4044_v33  ;;  %v4007_v59 = vmul.f32 %v8973_v27, %v3971_v52 }
 0x631   : > { %v5812_v16 = vpop.eup %5811  ;;  %v3917_v21 = vadd.f32 0.0001, %v3885_v7  ;;  %4157 = vadd.xlane.f32.xlu0 %v4156_v58  ;;  %v4109_v14 = vmul.f32 %v8983_v20, %v4073_v5  ;;  %v3836_v40 = vpop.xlane.xlu0 %3835  ;;  %v3974_v38 = vmul.f32 %v5806_v50, %v8812_v62  ;;  %v3973_v49 = vmul.f32 %v5808_v31, %v8817_v54  ;;  %v9896_v50 = vld [vmem:[#allocation21_spill] sm:$0xff] }
 0x632   : > { %5821 = vrsqrt.f32 %v3918_v26  ;;  %v3888_v63 = vmul.f32 0.03125, %v3836_v40  ;;  %v3833_v10 = vpop.xlane.xlu1 %3832  ;;  %v4112_v57 = vmul.f32 %v8983_v20, %v4076_v42  ;;  %v4043_v23 = vadd.f32 %v8976_v39, %v4007_v59 }
 0x633   : > { %5823 = vrsqrt.f32 %v3917_v21  ;;  %v4153_v18 = vsel %vm1784_vm7, %v4109_v14, 0.0  ;;  %v3887_v47 = vmul.f32 0.03125, %v3833_v10  ;;  %v4010_v52 = vmul.f32 %v8973_v27, %v3974_v38  ;;  %v9897_v21 = vld [vmem:[#allocation22_spill] sm:$0xff] }
 0x634   : > { %v5814_v45 = vpop.eup %5813  ;;  %4154 = vadd.xlane.f32.xlu1 %v4153_v18  ;;  %v3920_v34 = vadd.f32 0.0001, %v3888_v63  ;;  %v4162_v62 = vsel %vm1784_vm7, %v4112_v57, 0.0  ;;  %v4075_v54 = vmul.f32 %v9896_v50, %v4043_v23  ;;  %v4009_v31 = vmul.f32 %v8973_v27, %v3973_v49 }
 0x635   : > { %v5816_v44 = vpop.eup %5815  ;;  %v3919_v33 = vadd.f32 0.0001, %v3887_v47  ;;  %4163 = vadd.xlane.f32.xlu0 %v4162_v62  ;;  %v3842_v30 = vpop.xlane.xlu0 %3841  ;;  %v4046_v7 = vadd.f32 %v8976_v39, %v4010_v52  ;;  %v3976_v13 = vmul.f32 %v5810_v9, %v8826_v53  ;;  %v3975_v5 = vmul.f32 %v5812_v16, %v8831_v12  ;;  %v9898_v53 = vld [vmem:[#allocation23_spill] sm:$0xff] }
 0x636   : > { %5825 = vrsqrt.f32 %v3920_v34  ;;  %v4111_v26 = vmul.f32 %v8983_v20, %v4075_v54  ;;  %v3890_v58 = vmul.f32 0.03125, %v3842_v30  ;;  %v3839_v36 = vpop.xlane.xlu1 %3838  ;;  %v4045_v42 = vadd.f32 %v8976_v39, %v4009_v31 }
 0x637   : > { %5827 = vrsqrt.f32 %v3919_v33  ;;  %v3889_v59 = vmul.f32 0.03125, %v3839_v36  ;;  %v4078_v14 = vmul.f32 %v9897_v21, %v4046_v7  ;;  %v4012_v40 = vmul.f32 %v8973_v27, %v3976_v13  ;;  %v9899_v33 = vld [vmem:[#allocation26_spill] sm:$0xff] }
 0x638   : > { %v5818_v38 = vpop.eup %5817  ;;  %v4159_v49 = vsel %vm1784_vm7, %v4111_v26, 0.0  ;;  %v3922_v63 = vadd.f32 0.0001, %v3890_v58  ;;  %v4077_v9 = vmul.f32 %v9898_v53, %v4045_v42  ;;  %v4011_v12 = vmul.f32 %v8973_v27, %v3975_v5  ;;  %v9900_v26 = vld [vmem:[#allocation27_spill] sm:$0xff] }
 0x639   : > { %v5820_v16 = vpop.eup %5819  ;;  %4160 = vadd.xlane.f32.xlu1 %v4159_v49  ;;  %v3921_v10 = vadd.f32 0.0001, %v3889_v59  ;;  %v4114_v57 = vmul.f32 %v8983_v20, %v4078_v14  ;;  %v3848_v23 = vpop.xlane.xlu0 %3847  ;;  %v4048_v18 = vadd.f32 %v8976_v39, %v4012_v40  ;;  %v3978_v47 = vmul.f32 %v5814_v45, %v8840_v24 }
 0x63a   : > { %5829 = vrsqrt.f32 %v3922_v63  ;;  %v4113_v52 = vmul.f32 %v8983_v20, %v4077_v9  ;;  %v3892_v34 = vmul.f32 0.03125, %v3848_v23  ;;  %v3845_v62 = vpop.xlane.xlu1 %3844  ;;  %v4047_v50 = vadd.f32 %v8976_v39, %v4011_v12 }
 0x63b   : > { %5831 = vrsqrt.f32 %v3921_v10  ;;  %v4168_v54 = vsel %vm1784_vm7, %v4114_v57, 0.0  ;;  %v3891_v31 = vmul.f32 0.03125, %v3845_v62  ;;  %v4080_v30 = vmul.f32 %v9899_v33, %v4048_v18 }
 0x63c   : > { %v5822_v7 = vpop.eup %5821  ;;  %4169 = vadd.xlane.f32.xlu0 %v4168_v54  ;;  %v4165_v13 = vsel %vm1784_vm7, %v4113_v52, 0.0  ;;  %v3924_v5 = vadd.f32 0.0001, %v3892_v34  ;;  %v4079_v24 = vmul.f32 %v9900_v26, %v4047_v50  ;;  %v4014_v45 = vmul.f32 %v8973_v27, %v3978_v47 }
 0x63d   : > { %v5824_v58 = vpop.eup %5823  ;;  %4166 = vadd.xlane.f32.xlu1 %v4165_v13  ;;  %v3923_v36 = vadd.f32 0.0001, %v3891_v31  ;;  %v4116_v42 = vmul.f32 %v8983_v20, %v4080_v30  ;;  %v3854_v59 = vpop.xlane.xlu0 %3853  ;;  %v3977_v21 = vmul.f32 %v5816_v44, %v8845_v1  ;;  %v3980_v14 = vmul.f32 %v5818_v38, %v8854_v37  ;;  %v9901_v44 = vld [vmem:[#allocation30_spill] sm:$0xff]  ;;  %v9902_v13 = vld [vmem:[#allocation31_spill] sm:$0xff] }
 0x63e   : > { %5833 = vrsqrt.f32 %v3924_v5  ;;  %v4115_v40 = vmul.f32 %v8983_v20, %v4079_v24  ;;  %v3894_v49 = vmul.f32 0.03125, %v3854_v59  ;;  %v3851_v63 = vpop.xlane.xlu1 %3850  ;;  %v4050_v53 = vadd.f32 %v8976_v39, %v4014_v45 }
 0x63f   : > { %5835 = vrsqrt.f32 %v3923_v36  ;;  %v4174_v9 = vsel %vm1784_vm7, %v4116_v42, 0.0  ;;  %v3893_v12 = vmul.f32 0.03125, %v3851_v63  ;;  %v4013_v10 = vmul.f32 %v8973_v27, %v3977_v21 }
 0x640   : > { %v5826_v57 = vpop.eup %5825  ;;  %4175 = vadd.xlane.f32.xlu0 %v4174_v9  ;;  %v4171_v23 = vsel %vm1784_vm7, %v4115_v40, 0.0  ;;  %v3926_v1 = vadd.f32 0.0001, %v3894_v49  ;;  %v4082_v37 = vmul.f32 %v9901_v44, %v4050_v53  ;;  %v4016_v38 = vmul.f32 %v8973_v27, %v3980_v14 }
 0x641   : > { %v5828_v18 = vpop.eup %5827  ;;  %4172 = vadd.xlane.f32.xlu1 %v4171_v23  ;;  %v3925_v47 = vadd.f32 0.0001, %v3893_v12  ;;  %v4049_v52 = vadd.f32 %v8976_v39, %v4013_v10  ;;  %v3860_v34 = vpop.xlane.xlu0 %3859  ;;  %v3979_v62 = vmul.f32 %v5820_v16, %v8859_v25  ;;  %v3982_v50 = vmul.f32 %v5822_v7, %v8868_v29 }
 0x642   : > { %5837 = vrsqrt.f32 %v3926_v1  ;;  %v4118_v54 = vmul.f32 %v8983_v20, %v4082_v37  ;;  %v3896_v31 = vmul.f32 0.03125, %v3860_v34  ;;  %v3857_v33 = vpop.xlane.xlu1 %3856  ;;  %v4052_v30 = vadd.f32 %v8976_v39, %v4016_v38 }
 0x643   : > { %5839 = vrsqrt.f32 %v3925_v47  ;;  %v4081_v5 = vmul.f32 %v9902_v13, %v4049_v52  ;;  %v3895_v26 = vmul.f32 0.03125, %v3857_v33  ;;  %v4015_v24 = vmul.f32 %v8973_v27, %v3979_v62 }
 0x644   : > { %v5830_v45 = vpop.eup %5829  ;;  %v4180_v36 = vsel %vm1784_vm7, %v4118_v54, 0.0  ;;  %v3928_v42 = vadd.f32 0.0001, %v3896_v31  ;;  %v4084_v25 = vmul.f32 %v9774_v46, %v4052_v30  ;;  %v4018_v29 = vmul.f32 %v8973_v27, %v3982_v50 }
 0x645   : > { %v5832_v16 = vpop.eup %5831  ;;  %4181 = vadd.xlane.f32.xlu0 %v4180_v36  ;;  %v4117_v7 = vmul.f32 %v8983_v20, %v4081_v5  ;;  %v3927_v59 = vadd.f32 0.0001, %v3895_v26  ;;  %v4051_v21 = vadd.f32 %v8976_v39, %v4015_v24  ;;  %v3866_v14 = vpop.xlane.xlu0 %3865  ;;  %v3981_v40 = vmul.f32 %v5824_v58, %v8873_v17 }
 0x646   : > { %5841 = vrsqrt.f32 %v3928_v42  ;;  %v4120_v49 = vmul.f32 %v8983_v20, %v4084_v25  ;;  %v3898_v63 = vmul.f32 0.03125, %v3866_v14  ;;  %v3863_v53 = vpop.xlane.xlu1 %3862  ;;  %v4054_v9 = vadd.f32 %v8976_v39, %v4018_v29 }
 0x647   : > { %v4177_v46 = vsel %vm1784_vm7, %v4117_v7, 0.0  ;;  %5843 = vrsqrt.f32 %v3927_v59  ;;  %v4083_v12 = vmul.f32 %v9771_v2, %v4051_v21  ;;  %v3897_v10 = vmul.f32 0.03125, %v3863_v53 }
 0x648   : > { %v5834_v23 = vpop.eup %5833  ;;  %4178 = vadd.xlane.f32.xlu1 %v4177_v46  ;;  %v4186_v1 = vsel %vm1784_vm7, %v4120_v49, 0.0  ;;  %v3930_v44 = vadd.f32 0.0001, %v3898_v63  ;;  %v4086_v17 = vmul.f32 %v9776_v35, %v4054_v9  ;;  %v4017_v58 = vmul.f32 %v8973_v27, %v3981_v40  ;;  %v9903_v49 = vld [vmem:[#allocation40_spill] sm:$0xff] }
 0x649   : > { %v5836_v37 = vpop.eup %5835  ;;  %4187 = vadd.xlane.f32.xlu0 %v4186_v1  ;;  %v4119_v38 = vmul.f32 %v8983_v20, %v4083_v12  ;;  %v3929_v47 = vadd.f32 0.0001, %v3897_v10  ;;  %v3984_v52 = vmul.f32 %v5826_v57, %v8882_v0  ;;  %v3983_v34 = vmul.f32 %v5828_v18, %v8887_v55 }
 0x64a   : > { %5845 = vrsqrt.f32 %v3930_v44  ;;  %v4122_v2 = vmul.f32 %v8983_v20, %v4086_v17  ;;  %v4053_v62 = vadd.f32 %v8976_v39, %v4017_v58  ;;  %v3986_v50 = vmul.f32 %v5830_v45, %v8896_v6 }
 0x64b   : > { %v4183_v35 = vsel %vm1784_vm7, %v4119_v38, 0.0  ;;  %5847 = vrsqrt.f32 %v3929_v47  ;;  %v4020_v54 = vmul.f32 %v8973_v27, %v3984_v52  ;;  %v4019_v31 = vmul.f32 %v8973_v27, %v3983_v34 }
 0x64c   : > { %v5838_v33 = vpop.eup %5837  ;;  %4184 = vadd.xlane.f32.xlu1 %v4183_v35  ;;  %v4192_v0 = vsel %vm1784_vm7, %v4122_v2, 0.0  ;;  %v4085_v55 = vmul.f32 %v9775_v4, %v4053_v62  ;;  %v4022_v57 = vmul.f32 %v8973_v27, %v3986_v50  ;;  %v3985_v18 = vmul.f32 %v5832_v16, %v8901_v51 }
 0x64d   : > { %v5840_v30 = vpop.eup %5839  ;;  %4193 = vadd.xlane.f32.xlu0 %v4192_v0  ;;  %v4056_v6 = vadd.f32 %v8976_v39, %v4020_v54  ;;  %v4055_v13 = vadd.f32 %v8976_v39, %v4019_v31  ;;  %v3988_v5 = vmul.f32 %v5834_v23, %v8910_v32  ;;  %v3987_v26 = vmul.f32 %v5836_v37, %v8915_v15 }
 0x64e   : > { %v4121_v24 = vmul.f32 %v8983_v20, %v4085_v55  ;;  %v4058_v45 = vadd.f32 %v8976_v39, %v4022_v57  ;;  %v4021_v4 = vmul.f32 %v8973_v27, %v3985_v18  ;;  %v3990_v36 = vmul.f32 %v5838_v33, %v8924_v22  ;;  %v9905_v57 = vld [vmem:[#allocation72_spill] sm:$0xff] }
 0x64f   : > { %v4088_v51 = vmul.f32 %v9778_v28, %v4056_v6  ;;  %v4087_v42 = vmul.f32 %v9777_v3, %v4055_v13  ;;  %v4024_v25 = vmul.f32 %v8973_v27, %v3988_v5  ;;  %v4023_v29 = vmul.f32 %v8973_v27, %v3987_v26  ;;  %v9907_v13 = vld [vmem:[#allocation44_spill] sm:$0xff] }
 0x650   : > { %v5842_v16 = vpop.eup %5841  ;;  %v4189_v32 = vsel %vm1784_vm7, %v4121_v24, 0.0  ;;  %v4090_v15 = vmul.f32 %v9780_v11, %v4058_v45  ;;  %v4057_v7 = vadd.f32 %v8976_v39, %v4021_v4  ;;  %v4026_v59 = vmul.f32 %v8973_v27, %v3990_v36 }
 0x651   : > { %v5844_v21 = vpop.eup %5843  ;;  %4190 = vadd.xlane.f32.xlu1 %v4189_v32  ;;  %v4124_v22 = vmul.f32 %v8983_v20, %v4088_v51  ;;  %v4123_v28 = vmul.f32 %v8983_v20, %v4087_v42  ;;  %v4060_v3 = vadd.f32 %v8976_v39, %v4024_v25  ;;  %v4059_v14 = vadd.f32 %v8976_v39, %v4023_v29  ;;  %v9908_v51 = vld [vmem:[#allocation71_spill] sm:$0xff] }
 0x652   : > { %v4126_v40 = vmul.f32 %v8983_v20, %v4090_v15  ;;  %v4089_v63 = vmul.f32 %v9903_v49, %v4057_v7  ;;  %v4062_v11 = vadd.f32 %v8976_v39, %v4026_v59  ;;  %v3989_v53 = vmul.f32 %v5840_v30, %v8929_v8  ;;  %v9906_v30 = vld [vmem:[#allocation69_spill] sm:$0xff]  ;;  %v9172_v15 = vpop.permute.xlu0 %4394  ;;  %v9174_v7 = vpop.permute.xlu1 %4398 }
 0x653   : > { %v4198_v9 = vsel %vm1784_vm7, %v4124_v22, 0.0  ;;  %v4195_v46 = vsel %vm1784_vm7, %v4123_v28, 0.0  ;;  %v4092_v12 = vmul.f32 %v9784_v61, %v4060_v3  ;;  %v4091_v10 = vmul.f32 %v9781_v48, %v4059_v14  ;;  %v9909_v3 = vld [vmem:[#allocation28_spill] sm:$0xff] }
 0x654   : > { %v5846_v23 = vpop.eup %5845  ;;  %4199 = vadd.xlane.f32.xlu0 %v4198_v9  ;;  %v4204_v1 = vsel %vm1784_vm7, %v4126_v40, 0.0  ;;  %v4125_v44 = vmul.f32 %v8983_v20, %v4089_v63  ;;  %v4025_v17 = vmul.f32 %v8973_v27, %v3989_v53  ;;  %v4094_v37 = vmul.f32 %v9789_v60, %v4062_v11  ;;  %v9910_v40 = vld [vmem:[#allocation35_spill] sm:$0xff] }
 0x655   : > { %v5848_v58 = vpop.eup %5847  ;;  %4196 = vadd.xlane.f32.xlu1 %v4195_v46  ;;  %v4128_v8 = vmul.f32 %v8983_v20, %v4092_v12  ;;  %v3992_v38 = vmul.f32 %v5842_v16, %v8938_v43  ;;  %v3991_v61 = vmul.f32 %v5844_v21, %v8943_v41  ;;  %v4127_v47 = vmul.f32 %v8983_v20, %v4091_v10  ;;  %v9904_v43 = vld [vmem:[#allocation51_spill] sm:$0xff]  ;;  %v9911_v46 = vld [vmem:[#allocation34_spill] sm:$0xff]  ;;  %v9912_v10 = vld [vmem:[#allocation29_spill] sm:$0xff] }
 0x656   : > { %v4201_v48 = vsel %vm1784_vm7, %v4125_v44, 0.0  ;;  %v4061_v52 = vadd.f32 %v8976_v39, %v4025_v17  ;;  %v3994_v34 = vmul.f32 %v5846_v23, %v8952_v19  ;;  %v3993_v35 = vmul.f32 %v5848_v58, %v9904_v43  ;;  %v9913_v17 = vld [vmem:[#allocation38_spill] sm:$0xff] }
 0x657   : > { %v4028_v2 = vmul.f32 %v8973_v27, %v3992_v38  ;;  %v4027_v62 = vmul.f32 %v8973_v27, %v3991_v61  ;;  %v4210_v41 = vsel %vm1784_vm7, %v4128_v8, 0.0  ;;  %v4130_v54 = vmul.f32 %v8983_v20, %v4094_v37  ;;  %v9916_v43 = vld [vmem:[#allocation42_spill] sm:$0xff] }
 0x658   : > { %4205 = vadd.xlane.f32.xlu0 %v4204_v1  ;;  %v4093_v50 = vmul.f32 %v9787_v56, %v4061_v52  ;;  %v4030_v60 = vmul.f32 %v8973_v27, %v3994_v34  ;;  %v4207_v33 = vsel %vm1784_vm7, %v4127_v47, 0.0  ;;  %v4029_v56 = vmul.f32 %v8973_v27, %v3993_v35  ;;  %v9915_v52 = vld [vmem:[#allocation41_spill] sm:$0xff] }
 0x659   : > { %4202 = vadd.xlane.f32.xlu1 %v4201_v48  ;;  %v4064_v31 = vadd.f32 %v8976_v39, %v4028_v2  ;;  %v4063_v19 = vadd.f32 %v8976_v39, %v4027_v62  ;;  %v4216_v24 = vsel %vm1784_vm7, %v4130_v54, 0.0  ;;  %v9176_v59 = vstv %s4231_s19  ;;  %v9914_v48 = vld [vmem:[#allocation39_spill] sm:$0xff] }
 0x65a   : > { %v4129_v0 = vmul.f32 %v8983_v20, %v4093_v50  ;;  %v4066_v55 = vadd.f32 %v8976_v39, %v4030_v60  ;;  %v4065_v26 = vadd.f32 %v8976_v39, %v4029_v56 }
 0x65b   : > { %v4096_v18 = vmul.f32 %v9905_v57, %v4064_v31  ;;  %v4095_v6 = vmul.f32 %v9906_v30, %v4063_v19 }
 0x65c   : > { %4211 = vadd.xlane.f32.xlu0 %v4210_v41  ;;  %v4098_v5 = vmul.f32 %v9907_v13, %v4066_v55  ;;  %v4213_v36 = vsel %vm1784_vm7, %v4129_v0, 0.0  ;;  %v4097_v42 = vmul.f32 %v9908_v51, %v4065_v26  ;;  %v9917_v41 = vld [vmem:[#allocation61_spill] sm:$0xff]  ;;  %v9920_v26 = vld [vmem:[#allocation36_spill] sm:$0xff] }
 0x65d   : > { %4208 = vadd.xlane.f32.xlu1 %v4207_v33  ;;  %v4132_v45 = vmul.f32 %v8983_v20, %v4096_v18  ;;  %v4131_v4 = vmul.f32 %v8983_v20, %v4095_v6  ;;  %v9918_v33 = vld [vmem:[#allocation59_spill] sm:$0xff]  ;;  %v9919_v18 = vld [vmem:[#allocation33_spill] sm:$0xff] }
 0x65e   : > { %v4134_v27 = vmul.f32 %v8983_v20, %v4098_v5  ;;  %v4133_v25 = vmul.f32 %v8983_v20, %v4097_v42 }
 0x65f   : > { %v4222_v29 = vsel %vm1784_vm7, %v4132_v45, 0.0  ;;  %v4219_v39 = vsel %vm1784_vm7, %v4131_v4, 0.0 }
 0x660   : > { %4217 = vadd.xlane.f32.xlu0 %v4216_v24  ;;  %v4228_v16 = vsel %vm1784_vm7, %v4134_v27, 0.0  ;;  %v4225_v32 = vsel %vm1784_vm7, %v4133_v25, 0.0  ;;  %vm4685_vm7 = vcmask 917312  }
 0x661   : > { %4214 = vadd.xlane.f32.xlu1 %v4213_v36  ;;  %v9921_v36 = vld [vmem:[#allocation62_spill] sm:$0xff] }
 0x664   : > { %4223 = vadd.xlane.f32.xlu0 %v4222_v29  ;;  %v9922_v29 = vld [vmem:[#allocation60_spill] sm:$0xff] }
 0x665   : > { %4220 = vadd.xlane.f32.xlu1 %v4219_v39 }
 0x668   : > { %4229 = vadd.xlane.f32.xlu0 %v4228_v16 }
 0x669   : > { %4226 = vadd.xlane.f32.xlu1 %v4225_v32 }
 0x6b1   : > { %v4140_v20 = vpop.xlane.xlu0 %4139 }
 0x6b2   : > { %v4234_v21 = vadd.f32 %v9176_v59, %v4140_v20  ;;  %v4137_v22 = vpop.xlane.xlu1 %4136 }
 0x6b3   : > { %v4233_v28 = vadd.f32 %v9176_v59, %v4137_v22  ;;  %v9923_v22 = vld [vmem:[#allocation63_spill] sm:$0xff] }
 0x6b4   : > { %v4433_v14 = vmul.f32 %v9909_v3, %v4234_v21  ;;  %v9924_v3 = vld [vmem:[#allocation74_spill] sm:$0xff] }
 0x6b5   : > { %v4432_v49 = vmul.f32 %v9910_v40, %v4233_v28  ;;  %v4146_v63 = vpop.xlane.xlu0 %4145 }
 0x6b6   : > { %v4236_v11 = vadd.f32 %v9176_v59, %v4146_v63  ;;  %v4143_v53 = vpop.xlane.xlu1 %4142  ;;  %4500 = vperm.xlu1 %5570, %v4433_v14  }
 0x6b7   : > { %v4235_v9 = vadd.f32 %v9176_v59, %v4143_v53  ;;  %4497 = vperm.xlu0 %5559, %v4432_v49  }
 0x6b8   : > { %v4435_v12 = vmul.f32 %v9911_v46, %v4236_v11  ;;  %v9925_v11 = vld [vmem:[#allocation25_spill] sm:$0xff] }
 0x6b9   : > { %v4434_v23 = vmul.f32 %v9912_v10, %v4235_v9  ;;  %v9926_v9 = vld [vmem:[#allocation24_spill] sm:$0xff] }
 0x6ba   : > { %v4152_v1 = vpop.xlane.xlu0 %4151  ;;  %4506 = vperm.xlu1 %5570, %v4435_v12  }
 0x6bb   : > { %v4238_v44 = vadd.f32 %v9176_v59, %v4152_v1  ;;  %4503 = vperm.xlu0 %5559, %v4434_v23  }
 0x6bd   : > { %v4437_v58 = vmul.f32 %v9913_v17, %v4238_v44  ;;  %v4149_v8 = vpop.xlane.xlu1 %4148  ;;  %v9927_v44 = vld [vmem:[#allocation73_spill] sm:$0xff] }
 0x6be   : > { %v4237_v37 = vadd.f32 %v9176_v59, %v4149_v8  ;;  %v4158_v38 = vpop.xlane.xlu0 %4157 }
 0x6bf   : > { %v4240_v61 = vadd.f32 %v9176_v59, %v4158_v38  ;;  %4512 = vperm.xlu1 %5570, %v4437_v58   ;;  %v9928_v58 = vld [vmem:[#allocation49_spill] sm:$0xff] }
 0x6c0   : > { %v4436_v47 = vmul.f32 %v9914_v48, %v4237_v37 }
 0x6c1   : > { %v4439_v34 = vmul.f32 %v9915_v52, %v4240_v61  ;;  %v4155_v2 = vpop.xlane.xlu1 %4154 }
 0x6c2   : > { %v4239_v62 = vadd.f32 %v9176_v59, %v4155_v2  ;;  %4509 = vperm.xlu0 %5559, %v4436_v47   ;;  %v4164_v50 = vpop.xlane.xlu0 %4163  ;;  %v9929_v47 = vld [vmem:[#allocation45_spill] sm:$0xff] }
 0x6c3   : > { %v4242_v60 = vadd.f32 %v9176_v59, %v4164_v50  ;;  %4518 = vperm.xlu1 %5570, %v4439_v34   ;;  %v9930_v34 = vld [vmem:[#allocation43_spill] sm:$0xff] }
 0x6c4   : > { %v4438_v35 = vmul.f32 %v9916_v43, %v4239_v62 }
 0x6c5   : > { %v4441_v54 = vmul.f32 %v9917_v41, %v4242_v60  ;;  %v9931_v41 = vld [vmem:[#allocation46_spill] sm:$0xff] }
 0x6c6   : > { %v4161_v31 = vpop.xlane.xlu1 %4160  ;;  %4515 = vperm.xlu0 %5559, %v4438_v35  }
 0x6c7   : > { %v4241_v19 = vadd.f32 %v9176_v59, %v4161_v31  ;;  %4524 = vperm.xlu1 %5570, %v4441_v54   ;;  %v9932_v31 = vld [vmem:[#allocation47_spill] sm:$0xff] }
 0x6c9   : > { %v4440_v0 = vmul.f32 %v9918_v33, %v4241_v19  ;;  %v4170_v55 = vpop.xlane.xlu0 %4169 }
 0x6ca   : > { %v4244_v56 = vadd.f32 %v9176_v59, %v4170_v55  ;;  %v4167_v57 = vpop.xlane.xlu1 %4166 }
 0x6cb   : > { %4521 = vperm.xlu0 %5559, %v4440_v0   ;;  %v4243_v6 = vadd.f32 %v9176_v59, %v4167_v57 }
 0x6cc   : > { %v4443_v30 = vmul.f32 %v9919_v18, %v4244_v56  ;;  %v9933_v56 = vld [vmem:[#allocation10_spill] sm:$0xff] }
 0x6cd   : > { %v4176_v13 = vpop.xlane.xlu0 %4175  ;;  %v4442_v24 = vmul.f32 %v9920_v26, %v4243_v6 }
 0x6ce   : > { %v4173_v5 = vpop.xlane.xlu1 %4172  ;;  %v4246_v45 = vadd.f32 %v9176_v59, %v4176_v13 }
 0x6cf   : > { %4530 = vperm.xlu0 %5559, %v4443_v30   ;;  %v4245_v51 = vadd.f32 %v9176_v59, %v4173_v5  ;;  %v9934_v30 = vld [vmem:[#allocation37_spill] sm:$0xff] }
 0x6d0   : > { %v4445_v27 = vmul.f32 %v9921_v36, %v4246_v45  ;;  %v9936_v36 = vld [vmem:[#allocation50_spill] sm:$0xff] }
 0x6d1   : > { %v4444_v39 = vmul.f32 %v9922_v29, %v4245_v51 }
 0x6d2   : > { %v4182_v4 = vpop.xlane.xlu0 %4181 }
 0x6d3   : > { %4527 = vperm.xlu0 %5559, %v4442_v24   ;;  %v4248_v18 = vadd.f32 %v9176_v59, %v4182_v4  ;;  %v9935_v24 = vld [vmem:[#allocation64_spill] sm:$0xff] }
 0x6d5   : > { %v4179_v42 = vpop.xlane.xlu1 %4178  ;;  %v4447_v45 = vmul.f32 %v9935_v24, %v4248_v18 }
 0x6d6   : > { %v4188_v25 = vpop.xlane.xlu0 %4187  ;;  %v4247_v35 = vadd.f32 %v9176_v59, %v4179_v42  ;;  %v9937_v42 = vld [vmem:[#allocation48_spill] sm:$0xff] }
 0x6d7   : > { %4536 = vperm.xlu0 %5559, %v4445_v27   ;;  %v4250_v16 = vadd.f32 %v9176_v59, %v4188_v25 }
 0x6d8   : > { %v4446_v6 = vmul.f32 %v9934_v30, %v4247_v35 }
 0x6d9   : > { %v4185_v32 = vpop.xlane.xlu1 %4184  ;;  %v4449_v14 = vmul.f32 %v9924_v3, %v4250_v16 }
 0x6da   : > { %v4249_v20 = vadd.f32 %v9176_v59, %v4185_v32  ;;  %v4194_v21 = vpop.xlane.xlu0 %4193 }
 0x6db   : > { %4533 = vperm.xlu0 %5559, %v4444_v39   ;;  %v4252_v40 = vadd.f32 %v9176_v59, %v4194_v21  ;;  %v9938_v39 = vld [vmem:[#allocation11_spill] sm:$0xff] }
 0x6dc   : > { %v4448_v28 = vmul.f32 %v9923_v22, %v4249_v20 }
 0x6dd   : > { %v4451_v53 = vmul.f32 %v9925_v11, %v4252_v40 }
 0x6de   : > { %v4191_v49 = vpop.xlane.xlu1 %4190  ;;  %4545 = vperm.xlu1 %5570, %v4448_v28  }
 0x6df   : > { %v4251_v63 = vadd.f32 %v9176_v59, %v4191_v49  ;;  %4548 = vperm.xlu0 %5559, %v4449_v14  }
 0x6e1   : > { %v4450_v46 = vmul.f32 %v9926_v9, %v4251_v63  ;;  %v4200_v12 = vpop.xlane.xlu0 %4199 }
 0x6e2   : > { %v4254_v10 = vadd.f32 %v9176_v59, %v4200_v12  ;;  %v4197_v23 = vpop.xlane.xlu1 %4196 }
 0x6e3   : > { %v4253_v1 = vadd.f32 %v9176_v59, %v4197_v23  ;;  %4551 = vperm.xlu1 %5570, %v4450_v46   ;;  %4554 = vperm.xlu0 %5559, %v4451_v53  }
 0x6e4   : > { %v4453_v17 = vmul.f32 %v9927_v44, %v4254_v10 }
 0x6e5   : > { %v4452_v8 = vmul.f32 %v9928_v58, %v4253_v1  ;;  %v4206_v37 = vpop.xlane.xlu0 %4205 }
 0x6e6   : > { %v4256_v38 = vadd.f32 %v9176_v59, %v4206_v37  ;;  %v4203_v61 = vpop.xlane.xlu1 %4202 }
 0x6e7   : > { %v4255_v48 = vadd.f32 %v9176_v59, %v4203_v61  ;;  %4557 = vperm.xlu1 %5570, %v4452_v8   ;;  %4560 = vperm.xlu0 %5559, %v4453_v17   ;;  %v9939_v17 = vld [vmem:[#allocation56_spill] sm:$0xff]  ;;  %v9940_v61 = vld [vmem:[#allocation9_spill] sm:$0xff] }
 0x6e8   : > { %v4455_v52 = vmul.f32 %v9929_v47, %v4256_v38  ;;  %v4596_v58 = vadd.s32 4294967288, %v9939_v17  ;;  %v4603_v8 = vadd.s32 4294967280, %v9939_v17  ;;  %v4594_v47 = vsub.s32 %v9939_v17, %v9940_v61 }
 0x6e9   : > { %v4454_v2 = vmul.f32 %v9930_v34, %v4255_v48  ;;  %v4212_v62 = vpop.xlane.xlu0 %4211  ;;  %v4617_v34 = vadd.s32 4294967264, %v9939_v17 }
 0x6ea   : > { %v4258_v50 = vadd.f32 %v9176_v59, %v4212_v62  ;;  %v4209_v60 = vpop.xlane.xlu1 %4208  ;;  %v4599_v48 = vsub.s32 %v4596_v58, %v9940_v61 }
 0x6eb   : > { %v4257_v43 = vadd.f32 %v9176_v59, %v4209_v60  ;;  %4563 = vperm.xlu1 %5570, %v4454_v2   ;;  %4566 = vperm.xlu0 %5559, %v4455_v52   ;;  %v4606_v52 = vsub.s32 %v4603_v8, %v9940_v61  ;;  %v4610_v2 = vadd.s32 4294967272, %v9939_v17  ;;  %v4673_v8 = vadd.s32 4294967200, %v9939_v17 }
 0x6ec   : > { %v4457_v54 = vmul.f32 %v9931_v41, %v4258_v50 }
 0x6ed   : > { %v4456_v19 = vmul.f32 %v9932_v31, %v4257_v43  ;;  %v4218_v33 = vpop.xlane.xlu0 %4217  ;;  %v4631_v31 = vadd.s32 4294967248, %v9939_v17 }
 0x6ee   : > { %v4260_v0 = vadd.f32 %v9176_v59, %v4218_v33  ;;  %v4215_v55 = vpop.xlane.xlu1 %4214  ;;  %v4624_v33 = vadd.s32 4294967256, %v9939_v17 }
 0x6ef   : > { %4569 = vperm.xlu1 %5570, %v4456_v19   ;;  %4572 = vperm.xlu0 %5559, %v4457_v54   ;;  %v4259_v13 = vadd.f32 %v9176_v59, %v4215_v55  ;;  %v4620_v54 = vsub.s32 %v4617_v34, %v9940_v61  ;;  %v4613_v19 = vsub.s32 %v4610_v2, %v9940_v61 }
 0x6f0   : > { %v4459_v57 = vmul.f32 %v9933_v56, %v4260_v0 }
 0x6f1   : > { %v4224_v5 = vpop.xlane.xlu0 %4223  ;;  %v4458_v27 = vmul.f32 %v9936_v36, %v4259_v13  ;;  %v4627_v36 = vsub.s32 %v4624_v33, %v9940_v61  ;;  %v4694_v33 = vadd.s32 4294967176, %v9939_v17 }
 0x6f2   : > { %v4221_v26 = vpop.xlane.xlu1 %4220  ;;  %v4262_v51 = vadd.f32 %v9176_v59, %v4224_v5  ;;  %v4634_v5 = vsub.s32 %v4631_v31, %v9940_v61 }
 0x6f3   : > { %4578 = vperm.xlu1 %5570, %v4459_v57   ;;  %4539 = vperm.xlu0 %5559, %v4446_v6   ;;  %v4261_v4 = vadd.f32 %v9176_v59, %v4221_v26  ;;  %v4645_v26 = vadd.s32 4294967232, %v9939_v17 }
 0x6f4   : > { %v4461_v25 = vmul.f32 %v9937_v42, %v4262_v51 }
 0x6f5   : > { %v4460_v16 = vmul.f32 %v9938_v39, %v4261_v4  ;;  %v4230_v20 = vpop.xlane.xlu0 %4229 }
 0x6f6   : > { %v4227_v29 = vpop.xlane.xlu1 %4226  ;;  %v4264_v21 = vadd.f32 %v9176_v59, %v4230_v20  ;;  %v4648_v20 = vsub.s32 %v4645_v26, %v9940_v61  ;;  %v4697_v26 = vsub.s32 %v4694_v33, %v9940_v61 }
 0x6f7   : > { %4575 = vperm.xlu1 %5570, %v4458_v27   ;;  %4542 = vperm.xlu0 %5559, %v4447_v45   ;;  %v4263_v32 = vadd.f32 %v9176_v59, %v4227_v29  ;;  %v4638_v27 = vadd.s32 4294967240, %v9939_v17 }
 0x6f8   : > { %v4463_v28 = vmul.f32 %v9174_v7, %v4264_v21  ;;  %v4659_v21 = vadd.s32 4294967216, %v9939_v17 }
 0x6f9   : > { %v4462_v22 = vmul.f32 %v9172_v15, %v4263_v32 }
 0x6fa   : > { %v4662_v58 = vsub.s32 %v4659_v21, %v9940_v61 }
 0x6fb   : > { %4584 = vperm.xlu1 %5570, %v4461_v25  }
 0x6ff   : > { %4581 = vperm.xlu1 %5570, %v4460_v16  }
 0x703   : > { %4587 = vperm.xlu1 %5570, %v4462_v22  }
 0x707   : > { %4590 = vperm.xlu1 %5570, %v4463_v28   ;;  %v4641_v28 = vsub.s32 %v4638_v27, %v9940_v61 }
 0x735   : > { %v4501_v40 = vpop.permute.xlu1 %4500 }
 0x736   : > { %v4498_v3 = vpop.permute.xlu0 %4497  ;;  %v4600_v60 = vrot.slane %v4501_v40, %v4599_v48 }
 0x737   : > { %v4595_v43 = vrot.slane %v4498_v3, %v4594_v47  ;;  %v4652_v3 = vadd.s32 4294967224, %v9939_v17 }
 0x739   : > { %v4507_v11 = vpop.permute.xlu1 %4506  ;;  %v4602_v57 = vsel %vm4601_vm11, %v4600_v60, %v4595_v43 }
 0x73a   : > { %v4504_v14 = vpop.permute.xlu0 %4503  ;;  %v4614_v45 = vrot.slane %v4507_v11, %v4613_v19 }
 0x73b   : > { %v4607_v41 = vrot.slane %v4504_v14, %v4606_v52 }
 0x73d   : > { %v4609_v6 = vsel %vm4608_vm12, %v4607_v41, %v4602_v57 }
 0x73e   : > { %v9246_v9 = vpop.permute.xlu1 %4512  ;;  %v4616_v4 = vsel %vm4615_vm13, %v4614_v45, %v4609_v6 }
 0x73f   : > { %v4628_v22 = vrot.slane %v9246_v9, %v4627_v36 }
 0x741   : > { %v4510_v49 = vpop.permute.xlu0 %4509 }
 0x742   : > { %v9252_v15 = vpop.permute.xlu1 %4518  ;;  %v4621_v13 = vrot.slane %v4510_v49, %v4620_v54 }
 0x744   : > { %v4623_v16 = vsel %vm4622_vm14, %v4621_v13, %v4616_v4 }
 0x745   : > { %v9242_v63 = vpop.permute.xlu0 %4515 }
 0x746   : > { %v9256_v7 = vpop.permute.xlu1 %4524  ;;  %v4635_v32 = vrot.slane %v9242_v63, %v4634_v5 }
 0x74a   : > { %v9244_v53 = vpop.permute.xlu0 %4521 }
 0x74b   : > { %v4649_v9 = vrot.slane %v9244_v53, %v4648_v20 }
 0x74e   : > { %v9248_v46 = vpop.permute.xlu0 %4530 }
 0x752   : > { %v9250_v59 = vpop.permute.xlu0 %4527 }
 0x753   : > { %v4663_v43 = vrot.slane %v9250_v59, %v4662_v58 }
 0x756   : > { %v9254_v12 = vpop.permute.xlu0 %4536 }
 0x75a   : > { %v9258_v10 = vpop.permute.xlu0 %4533 }
 0x75d   : > { %v4546_v23 = vpop.permute.xlu1 %4545 }
 0x75e   : > { %v4549_v1 = vpop.permute.xlu0 %4548  ;;  %v4704_v0 = vrot.slane %v4546_v23, %v4594_v47  ;;  %v4630_v23 = vsel %vm4629_vm15, %v4628_v22, %v4623_v16  ;;  %v4680_v47 = vadd.s32 4294967192, %v9939_v17 }
 0x75f   : > { %v4708_v35 = vrot.slane %v4549_v1, %v4599_v48  ;;  %v4666_v48 = vadd.s32 4294967208, %v9939_v17 }
 0x761   : > { %v4709_v18 = vsel %vm4601_vm11, %v4708_v35, %v4704_v0  ;;  %v4676_v35 = vsub.s32 %v4673_v8, %v9940_v61  ;;  %v4683_v0 = vsub.s32 %v4680_v47, %v9940_v61 }
 0x762   : > { %v4552_v44 = vpop.permute.xlu1 %4551  ;;  %v4555_v37 = vpop.permute.xlu0 %4554 }
 0x763   : > { %v4713_v55 = vrot.slane %v4552_v44, %v4606_v52  ;;  %v4718_v30 = vrot.slane %v4555_v37, %v4613_v19  ;;  %v4637_v44 = vsel %vm4636_vm0, %v4635_v32, %v4630_v23  ;;  %v4642_v37 = vrot.slane %v9252_v15, %v4641_v28 }
 0x764   : > { %v4687_v15 = vadd.s32 4294967184, %v9939_v17  ;;  %v4669_v19 = vsub.s32 %v4666_v48, %v9940_v61 }
 0x765   : > { %v4714_v42 = vsel %vm4608_vm12, %v4713_v55, %v4709_v18  ;;  %v4644_v2 = vsel %vm4643_vm1, %v4642_v37, %v4637_v44 }
 0x766   : > { %v4558_v38 = vpop.permute.xlu1 %4557  ;;  %v4561_v50 = vpop.permute.xlu0 %4560  ;;  %v4719_v29 = vsel %vm4615_vm13, %v4718_v30, %v4714_v42  ;;  %v4651_v60 = vsel %vm4650_vm2, %v4649_v9, %v4644_v2  ;;  %v4690_v18 = vsub.s32 %v4687_v15, %v9940_v61  ;;  %v4677_v30 = vrot.slane %v9258_v10, %v4676_v35 }
 0x767   : > { %v4723_v51 = vrot.slane %v4558_v38, %v4620_v54  ;;  %v4728_v39 = vrot.slane %v4561_v50, %v4627_v36  ;;  %v4655_v38 = vsub.s32 %v4652_v3, %v9940_v61  ;;  %v4670_v17 = vrot.slane %v9248_v46, %v4669_v19 }
 0x768   : > { %v4684_v46 = vrot.slane %v9254_v12, %v4683_v0 }
 0x769   : > { %v4724_v40 = vsel %vm4622_vm14, %v4723_v51, %v4719_v29  ;;  %v4656_v31 = vrot.slane %v9256_v7, %v4655_v38 }
 0x76a   : > { %v9268_v62 = vpop.permute.xlu1 %4563  ;;  %v4567_v24 = vpop.permute.xlu0 %4566  ;;  %v4729_v63 = vsel %vm4629_vm15, %v4728_v39, %v4724_v40 }
 0x76b   : > { %v4733_v14 = vrot.slane %v9268_v62, %v4634_v5  ;;  %v4738_v1 = vrot.slane %v4567_v24, %v4641_v28  ;;  %v4658_v59 = vsel %vm4657_vm3, %v4656_v31, %v4651_v60 }
 0x76c   : > { %v4665_v7 = vsel %vm4664_vm4, %v4663_v43, %v4658_v59 }
 0x76d   : > { %v4734_v34 = vsel %vm4636_vm0, %v4733_v14, %v4729_v63  ;;  %v4672_v36 = vsel %vm4671_vm5, %v4670_v17, %v4665_v7 }
 0x76e   : > { %v9274_v56 = vpop.permute.xlu1 %4569  ;;  %v4573_v49 = vpop.permute.xlu0 %4572  ;;  %v4739_v62 = vsel %vm4643_vm1, %v4738_v1, %v4734_v34  ;;  %v4679_v27 = vsel %vm4678_vm6, %v4677_v30, %v4672_v36 }
 0x76f   : > { %v4743_v52 = vrot.slane %v9274_v56, %v4648_v20  ;;  %v4748_v50 = vrot.slane %v4573_v49, %v4655_v38  ;;  %v4686_v39 = vsel %vm4685_vm7, %v4684_v46, %v4679_v27 }
 0x771   : > { %v4744_v55 = vsel %vm4650_vm2, %v4743_v52, %v4739_v62 }
 0x772   : > { %v9282_v25 = vpop.permute.xlu1 %4578  ;;  %v4540_v54 = vpop.permute.xlu0 %4539  ;;  %v4749_v57 = vsel %vm4657_vm3, %v4748_v50, %v4744_v55 }
 0x773   : > { %v4758_v5 = vrot.slane %v9282_v25, %v4669_v19  ;;  %v4691_v51 = vrot.slane %v4540_v54, %v4690_v18 }
 0x775   : > { %v4693_v20 = vsel %vm4692_vm8, %v4691_v51, %v4686_v39 }
 0x776   : > { %v4576_v11 = vpop.permute.xlu1 %4575  ;;  %v4543_v24 = vpop.permute.xlu0 %4542 }
 0x777   : > { %v4753_v41 = vrot.slane %v4576_v11, %v4662_v58  ;;  %v4698_v25 = vrot.slane %v4543_v24, %v4697_v26 }
 0x779   : > { %v4754_v6 = vsel %vm4664_vm4, %v4753_v41, %v4749_v57  ;;  %v4700_v22 = vsel %vm4699_vm9, %v4698_v25, %v4693_v20 }
 0x77a   : > { %v4585_v53 = vpop.permute.xlu1 %4584  ;;  %v4759_v10 = vsel %vm4671_vm5, %v4758_v5, %v4754_v6 }
 0x77b   : > { %v4768_v29 = vrot.slane %v4585_v53, %v4683_v0 }
 0x77e   : > { %v4582_v56 = vpop.permute.xlu1 %4581 }
 0x77f   : > { %v4763_v13 = vrot.slane %v4582_v56, %v4676_v35 }
 0x781   : > { %v4764_v42 = vsel %vm4678_vm6, %v4763_v13, %v4759_v10 }
 0x782   : > { %v4588_v45 = vpop.permute.xlu1 %4587  ;;  %v4769_v16 = vsel %vm4685_vm7, %v4768_v29, %v4764_v42 }
 0x783   : > { %v4773_v4 = vrot.slane %v4588_v45, %v4690_v18 }
 0x785   : > { %v4774_v21 = vsel %vm4692_vm8, %v4773_v4, %v4769_v16 }
 0x786   : > { %v4591_v61 = vpop.permute.xlu1 %4590 }
 0x787   : > { %v4778_v32 = vrot.slane %v4591_v61, %v4697_v26 }
 0x789   : > { %v4779_v12 = vsel %vm4699_vm9, %v4778_v32, %v4774_v21 }
 0x78a   : > { %v4781_v28 = vsel %vm4780_vm10, %v4779_v12, %v4700_v22 }
 0x78b   : > { %4783 = vst [vmem:[%s245_s23] sm:$0x3] %v4781_v28 }
 0x78c   : > { %5877 = shalt.err (!%p5874_p8)
}
 0x78d   : > { %s5878_s13 = scalar_lea.hbm %s9340_s27, 32  ;;  %s5882_s19 = scalar_lea.hbm %s9391_s7, 64 }
 0x78e   : > { %p5879_p9 = scmp.ne.s32.totalorder %s9340_s27, %s5878_s13  ;;  %p5883_p0 = scmp.lt.u32.totalorder %s9340_s27, %s9391_s7 }
 0x78f   : > { %p5884_p1 = scmp.lt.u32.totalorder %s5882_s19, %s5878_s13  ;;  %p5886_p3 = scmp.lt.u32.totalorder %s5878_s13, %s9340_s27 }
 0x790   : > { %p5880_p12 = pnand %p5879_p9, %p6022_p10 }
 0x791   : > { %p5885_p2 = por %p5884_p1, %p5883_p0 }
 0x792   : > { %p5881_p13 = pneg %p5880_p12 }
 0x793   : > { %p5887_p4 = por %p5886_p3, %p5885_p2 }
 0x795   : > { %p5888_p5 = pnand %p5887_p4, %p5881_p13 }
 0x797   : > { %5891 = shalt.err (!%p5888_p5)
}
 0x798   : > { %5514 = dma.vmem_to_hbm [thread:$0]  (%p6022_p10), %s9342_s24, 32, %s9340_s27, %s4785_s10  }
 0x799 PF: > { %p5520_p6 = scmp.ge.s32.totalorder %s5928_s9, 2  ;;  %s4810_s18 = sand.u32 1, %s5916_s0  }
 0x79a   : > { %s4811_s23 = scalar_lea.sflag [#allocation6], %s4810_s18 }
 0x79b   : > { %p5517_p7 = pnand %p5520_p6, %p6026_p11 }
 0x79d   : > { %5911 = dma.done.wait (!%p5517_p7), %s4811_s23, 32  }
 0x79e   : > { %5913 = vsyncadd (!%p5517_p7), %s4811_s23, 4294967264  ;;  %p24_p8 = scmp.ge.s32.totalorder %s6009_s12, 4   ;;  %s9941_s0 = smov %s5920_s8 }
 0x79f   : > { %s9942_s8 = smov %s5924_s1  ;;  %s9943_s1 = smov %s6020_s15 }
 0x7a0   : > { %s9944_s9 = smov %s6009_s12  ;;  %26 = sbr.rel (!%p24_p8) target bundleno = 18 (0x12), region = 80 }
 0x7a7   :  { %4816 = vsyncpa [#allocation6], 1 }
 0x7a8   :  { %4818 = vsyncpa [#allocation6 + $0x1], 1 }

</bundles_post_ra>
